<compile_context>
chip_gen: v7x
topology: tpu7x:2x2x1
jax: 0.10.0
libtpu: 0.0.40
codegen_flags: <defaults>
</compile_context>

<pallas_src>
import functools
import math

import jax
import jax.numpy as jnp
from jax.experimental import pallas as pl
from jax.experimental.pallas import tpu as pltpu


EPS = 1e-5                      # nn.Transformer default layer_norm_eps
_ACT_DTYPE = jnp.bfloat16       # inter-kernel activation dtype


def _tpu_vmem_limit():
    """Generation-aware scoped-VMEM budget (conservative fallback = v7x)."""
    try:
        phys = int(pltpu.get_tpu_info().vmem_capacity_bytes)
        if phys >= 100 * 1024 * 1024:        # v5e / v6e: 128 MiB physical
            return 96 * 1024 * 1024
        return 48 * 1024 * 1024              # v7x: 64 MiB physical
    except Exception:                        # noqa: BLE001 - query best-effort
        return 48 * 1024 * 1024


_VMEM_LIMIT = _tpu_vmem_limit()


# ----------------------------------------------------------------------------
# Small helpers (tile sizing / padding)
# ----------------------------------------------------------------------------
def _round_up(x, m):
    return (x + m - 1) // m * m


def _pick_tile(dim, target, mult):
    """`target` (a multiple of `mult`) if dim is big, else the whole
    (padded-to-mult) dim as a single tile."""
    if dim >= target:
        return target
    return _round_up(dim, mult)


def _pad2(a, rows, cols):
    pr, pc = rows - a.shape[0], cols - a.shape[1]
    if pr or pc:
        a = jnp.pad(a, ((0, pr), (0, pc)))
    return a


def _pad1(a, n):
    if a.shape[0] != n:
        a = jnp.pad(a, (0, n - a.shape[0]))
    return a


# ----------------------------------------------------------------------------
# Pallas kernels
# ----------------------------------------------------------------------------
def _matmul_kernel(*refs, relu, fuse_ln, eps):
    """Tiled y = x @ w (+ b), optional ReLU, optional fused residual+LayerNorm
    in the finalize epilogue (valid only when one N tile covers the full row).

    refs: x:(tm,tk) w:(tk,tn) b:(1,tn) [res:(tm,tn) g:(1,tn) beta:(1,tn)]
          o:(tm,tn) acc:(tm,tn) f32 scratch."""
    if fuse_ln:
        x_ref, w_ref, b_ref, r_ref, g_ref, bb_ref, o_ref, acc_ref = refs
    else:
        x_ref, w_ref, b_ref, o_ref, acc_ref = refs

    @pl.when(pl.program_id(2) == 0)
    def _init():
        acc_ref[...] = jnp.zeros_like(acc_ref)

    acc_ref[...] += jnp.dot(x_ref[...].astype(jnp.bfloat16),
                            w_ref[...].astype(jnp.bfloat16),
                            preferred_element_type=jnp.float32)

    @pl.when(pl.program_id(2) == pl.num_programs(2) - 1)
    def _fin():
        y = acc_ref[...] + b_ref[...].astype(jnp.float32)
        if relu:
            y = jnp.maximum(y, 0.0)
        if fuse_ln:
            y = y + r_ref[...].astype(jnp.float32)
            mu = jnp.mean(y, axis=-1, keepdims=True)
            var = jnp.mean(jnp.square(y - mu), axis=-1, keepdims=True)
            y = (y - mu) * jax.lax.rsqrt(var + eps)
            y = y * g_ref[...] + bb_ref[...]
        o_ref[...] = y.astype(o_ref.dtype)


def _flash_attn_kernel(*refs, scale, masked):
    """Flash-style attention: grid = (bh tiles, kv tiles). Online softmax with
    f32 m/l/acc scratch; EUP approx reciprocal for the final normalization.

    q:(bt,T,hd)  k,v:(bt,tkv,hd)  [mask:(T,tkv)]  o:(bt,T,hd)."""
    if masked:
        q_ref, k_ref, v_ref, m_ref, o_ref, m_sc, l_sc, acc_sc = refs
    else:
        q_ref, k_ref, v_ref, o_ref, m_sc, l_sc, acc_sc = refs

    kv = pl.program_id(1)

    @pl.when(kv == 0)
    def _init():
        m_sc[...] = jnp.full_like(m_sc, -jnp.inf)
        l_sc[...] = jnp.zeros_like(l_sc)
        acc_sc[...] = jnp.zeros_like(acc_sc)

    q = q_ref[...].astype(jnp.bfloat16)
    k = k_ref[...].astype(jnp.bfloat16)
    v = v_ref[...].astype(jnp.bfloat16)

    # Scores: contract the head dim (no in-kernel k transpose).
    s = jax.lax.dot_general(
        q, k, (((2,), (2,)), ((0,), (0,))),
        preferred_element_type=jnp.float32) * scale            # (bt, T, tkv)
    if masked:
        s = s + m_ref[...][None, :, :]

    m_new = jnp.maximum(m_sc[...], jnp.max(s, axis=-1, keepdims=True))
    a = jnp.exp(m_sc[...] - m_new)
    p = jnp.exp(s - m_new)
    l_sc[...] = a * l_sc[...] + jnp.sum(p, axis=-1, keepdims=True)
    acc_sc[...] = a * acc_sc[...] + jax.lax.dot_general(
        p.astype(jnp.bfloat16), v, (((2,), (1,)), ((0,), (0,))),
        preferred_element_type=jnp.float32)                     # (bt, T, hd)
    m_sc[...] = m_new

    @pl.when(kv == pl.num_programs(1) - 1)
    def _fin():
        inv_l = pl.reciprocal(l_sc[...], approx=True)
        o_ref[...] = (acc_sc[...] * inv_l).astype(o_ref.dtype)


def _ln_kernel(x_ref, g_ref, b_ref, o_ref, *, eps):
    """LayerNorm over last dim. x:(tr,E) g,b:(1,E)."""
    x = x_ref[...].astype(jnp.float32)
    mu = jnp.mean(x, axis=-1, keepdims=True)
    var = jnp.mean(jnp.square(x - mu), axis=-1, keepdims=True)
    y = (x - mu) * jax.lax.rsqrt(var + eps)
    o_ref[...] = (y * g_ref[...] + b_ref[...]).astype(o_ref.dtype)


def _ln_res_kernel(x_ref, r_ref, g_ref, b_ref, o_ref, *, eps):
    """Fused residual add + LayerNorm: LN(x + r)."""
    x = x_ref[...].astype(jnp.float32) + r_ref[...].astype(jnp.float32)
    mu = jnp.mean(x, axis=-1, keepdims=True)
    var = jnp.mean(jnp.square(x - mu), axis=-1, keepdims=True)
    y = (x - mu) * jax.lax.rsqrt(var + eps)
    o_ref[...] = (y * g_ref[...] + b_ref[...]).astype(o_ref.dtype)


# ----------------------------------------------------------------------------
# Pallas wrappers
# ----------------------------------------------------------------------------
def pallas_layernorm(x2d, gamma, beta, residual=None, eps=EPS,
                     out_dtype=_ACT_DTYPE):
    """LN(x [+ residual]) over the last dim.  x2d:(M,E) -> (M,E) bf16."""
    M, E = x2d.shape
    tr = _pick_tile(M, 1024, 16)
    Mp = _round_up(M, tr)
    if Mp // tr < 2 and M >= 64:          # give both v7x TensorCores work
        tr = _round_up((M + 1) // 2, 16)
        Mp = _round_up(M, tr)

    xp = _pad2(x2d.astype(_ACT_DTYPE), Mp, E)
    g = gamma.astype(jnp.float32).reshape(1, E)
    b = beta.astype(jnp.float32).reshape(1, E)

    row_spec = pl.BlockSpec((tr, E), lambda i: (i, 0))
    vec_spec = pl.BlockSpec((1, E), lambda i: (0, 0))

    if residual is None:
        kernel = functools.partial(_ln_kernel, eps=eps)
        in_specs = [row_spec, vec_spec, vec_spec]
        args = (xp, g, b)
    else:
        rp = _pad2(residual.astype(_ACT_DTYPE), Mp, E)
        kernel = functools.partial(_ln_res_kernel, eps=eps)
        in_specs = [row_spec, row_spec, vec_spec, vec_spec]
        args = (xp, rp, g, b)

    out = pl.pallas_call(
        kernel,
        out_shape=jax.ShapeDtypeStruct((Mp, E), out_dtype),
        grid=(Mp // tr,),
        in_specs=in_specs,
        out_specs=row_spec,
        compiler_params=pltpu.CompilerParams(
            dimension_semantics=("parallel",),
            vmem_limit_bytes=_VMEM_LIMIT),
    )(*args)

    if Mp != M:
        out = out[:M]
    return out


def pallas_linear(x, w, b, *, relu=False, residual_ln=None,
                  out_dtype=_ACT_DTYPE,
                  tm_target=512, tn_target=512, tk_target=512):
    """y = x:(M,K) @ w:(K,N) + b:(N,), optional ReLU, optional fused
    residual-add + LayerNorm epilogue (residual_ln = (res_2d, gamma, beta, eps)).
    Output dtype bf16 by default; f32 MXU accumulation inside."""
    M, K = x.shape
    K2, N = w.shape
    assert K2 == K

    fuse_ln = residual_ln is not None
    # Fused LN epilogue needs the full feature row present in one N tile.
    if fuse_ln and (N > tn_target or N % 128 != 0):
        y = pallas_linear(x, w, b, relu=relu, out_dtype=out_dtype,
                          tm_target=tm_target, tn_target=tn_target,
                          tk_target=tk_target)
        r, g, beta, eps = residual_ln
        return pallas_layernorm(y, g, beta, residual=r, eps=eps,
                                out_dtype=out_dtype)

    tm = _pick_tile(M, tm_target, 16)
    tn = N if fuse_ln else _pick_tile(N, tn_target, 128)
    tk = _pick_tile(K, tk_target, 128)
    Mp, Np, Kp = _round_up(M, tm), _round_up(N, tn), _round_up(K, tk)

    xp = _pad2(x.astype(_ACT_DTYPE), Mp, Kp)
    wp = _pad2(w.astype(_ACT_DTYPE), Kp, Np)
    bp = _pad1(b.astype(jnp.float32), Np).reshape(1, Np)

    in_specs = [
        pl.BlockSpec((tm, tk), lambda i, j, k: (i, k)),
        pl.BlockSpec((tk, tn), lambda i, j, k: (k, j)),
        pl.BlockSpec((1, tn), lambda i, j, k: (0, j)),
    ]
    args = [xp, wp, bp]
    eps = EPS
    if fuse_ln:
        r, g, beta, eps = residual_ln
        rp = _pad2(r.astype(_ACT_DTYPE), Mp, Np)
        in_specs += [
            pl.BlockSpec((tm, tn), lambda i, j, k: (i, j)),
            pl.BlockSpec((1, tn), lambda i, j, k: (0, j)),
            pl.BlockSpec((1, tn), lambda i, j, k: (0, j)),
        ]
        args += [rp,
                 g.astype(jnp.float32).reshape(1, N),
                 beta.astype(jnp.float32).reshape(1, N)]

    grid = (Mp // tm, Np // tn, Kp // tk)
    out = pl.pallas_call(
        functools.partial(_matmul_kernel, relu=relu, fuse_ln=fuse_ln, eps=eps),
        out_shape=jax.ShapeDtypeStruct((Mp, Np), out_dtype),
        grid=grid,
        in_specs=in_specs,
        out_specs=pl.BlockSpec((tm, tn), lambda i, j, k: (i, j)),
        scratch_shapes=[pltpu.VMEM((tm, tn), jnp.float32)],
        compiler_params=pltpu.CompilerParams(
            dimension_semantics=("parallel", "parallel", "arbitrary"),
            vmem_limit_bytes=_VMEM_LIMIT),
    )(*args)

    if (Mp, Np) != (M, N):
        out = out[:M, :N]
    return out


def pallas_attention(q, k, v, scale, mask=None):
    """q:(BH,T,hd) k,v:(BH,S,hd) mask:(T,S) additive -> (BH,T,hd) bf16."""
    BH, T, hd = q.shape
    S = k.shape[1]

    # KV tiling (flash style): bound VMEM for long sequences.
    tkv = S if S <= 512 else 512
    Sp = _round_up(S, tkv)

    masked = (mask is not None) or (Sp != S)
    if masked:
        m_full = jnp.zeros((T, Sp), jnp.float32)
        if mask is not None:
            m_full = m_full.at[:, :S].set(mask.astype(jnp.float32))
        if Sp != S:
            m_full = m_full.at[:, S:].set(-1e9)     # mask padded keys

    if Sp != S:
        pad = ((0, 0), (0, Sp - S), (0, 0))
        k, v = jnp.pad(k, pad), jnp.pad(v, pad)

    # (batch*head) tile derived from the actual per-step VMEM footprint:
    # double-buffered q/k/v/out bf16 blocks + f32 acc/score scratch.
    budget = min(_VMEM_LIMIT // 2, 24 * 1024 * 1024)
    per_bt = (2 * T * hd * 2          # q (double-buffered, bf16)
              + 2 * 2 * tkv * hd * 2  # k, v
              + 2 * T * hd * 2        # out
              + T * hd * 4            # acc scratch (f32)
              + T * tkv * 4           # score block (f32)
              + 2 * T * 4)            # m, l scratch
    bt = max(1, min(BH, budget // max(per_bt, 1)))
    if bt >= BH and BH > 1:           # >=2 parallel steps (v7x has 2 TCs)
        bt = (BH + 1) // 2
    BHp = _round_up(BH, bt)

    qp = q.astype(_ACT_DTYPE)
    kp = k.astype(_ACT_DTYPE)
    vp = v.astype(_ACT_DTYPE)
    if BHp != BH:
        padb = ((0, BHp - BH), (0, 0), (0, 0))
        qp, kp, vp = jnp.pad(qp, padb), jnp.pad(kp, padb), jnp.pad(vp, padb)

    q_spec = pl.BlockSpec((bt, T, hd), lambda i, kv: (i, 0, 0))
    kv_spec = pl.BlockSpec((bt, tkv, hd), lambda i, kv: (i, kv, 0))
    in_specs = [q_spec, kv_spec, kv_spec]
    args = [qp, kp, vp]
    if masked:
        in_specs.append(pl.BlockSpec((T, tkv), lambda i, kv: (0, kv)))
        args.append(m_full)

    out = pl.pallas_call(
        functools.partial(_flash_attn_kernel, scale=scale, masked=masked),
        out_shape=jax.ShapeDtypeStruct((BHp, T, hd), _ACT_DTYPE),
        grid=(BHp // bt, Sp // tkv),
        in_specs=in_specs,
        out_specs=pl.BlockSpec((bt, T, hd), lambda i, kv: (i, 0, 0)),
        scratch_shapes=[pltpu.VMEM((bt, T, 1), jnp.float32),
                        pltpu.VMEM((bt, T, 1), jnp.float32),
                        pltpu.VMEM((bt, T, hd), jnp.float32)],
        compiler_params=pltpu.CompilerParams(
            dimension_semantics=("parallel", "arbitrary"),
            vmem_limit_bytes=_VMEM_LIMIT),
    )(*args)

    if BHp != BH:
        out = out[:BH]
    return out


# ----------------------------------------------------------------------------
# Model pieces (glue in JAX, hot paths in Pallas)
# ----------------------------------------------------------------------------
def embed(params, tok, d_model, pos=0):
    # tok: (L, N) int32. Gather is glue; scale + PE add are cheap elementwise.
    e = params["emb_w"][tok].astype(jnp.float32) * (d_model ** 0.5)   # (L,N,E)
    L = tok.shape[0]
    e = e + params["pe"][pos:pos + L]
    return e.astype(_ACT_DTYPE)             # dropout: eval mode = identity


def _split_heads(x, L, N, H, hd):
    # (L*N, H*hd) -> (N*H, L, hd)   (bf16, so these HBM transposes are cheap)
    return x.reshape(L, N, H, hd).transpose(1, 2, 0, 3).reshape(N * H, L, hd)


def _merge_heads(o, T, N, H, hd):
    # (N*H, T, hd) -> (T*N, H*hd)
    return o.reshape(N, H, T, hd).transpose(2, 0, 1, 3).reshape(T * N, H * hd)


# TODO(synk): fully fusing the head split/merge into the QKV / out-projection
# matmuls (head index as part of the K-reduction grid) would remove these two
# plain-JAX transposes per attention block; they are done in bf16 for now.
def self_attention_block(x, p, nhead, mask=None, residual_ln=None):
    L, N, E = x.shape
    hd = E // nhead
    # Fused Q/K/V projection: one (E,3E) matmul instead of three.
    qkv = pallas_linear(x.reshape(L * N, E), p["w_qkv"], p["b_qkv"])  # (L*N,3E)
    q = _split_heads(qkv[:, :E], L, N, nhead, hd)
    k = _split_heads(qkv[:, E:2 * E], L, N, nhead, hd)
    v = _split_heads(qkv[:, 2 * E:], L, N, nhead, hd)
    o = pallas_attention(q, k, v, 1.0 / math.sqrt(hd), mask=mask)     # (N*H,L,hd)
    o = _merge_heads(o, L, N, nhead, hd)
    out = pallas_linear(o, p["w_o"], p["b_o"], residual_ln=residual_ln)
    return out.reshape(L, N, E)


def cross_attention_block(y, mem, p, nhead, residual_ln=None):
    T, N, E = y.shape
    S = mem.shape[0]
    hd = E // nhead
    q = pallas_linear(y.reshape(T * N, E), p["w_q"], p["b_q"])
    kv = pallas_linear(mem.reshape(S * N, E), p["w_kv"], p["b_kv"])   # (S*N,2E)
    qh = _split_heads(q, T, N, nhead, hd)
    kh = _split_heads(kv[:, :E], S, N, nhead, hd)
    vh = _split_heads(kv[:, E:], S, N, nhead, hd)
    o = pallas_attention(qh, kh, vh, 1.0 / math.sqrt(hd))
    o = _merge_heads(o, T, N, nhead, hd)
    out = pallas_linear(o, p["w_o"], p["b_o"], residual_ln=residual_ln)
    return out.reshape(T, N, E)


def encoder_layer(x, p, nhead):
    L, N, E = x.shape
    x2 = x.reshape(L * N, E)
    # self-attn; residual + norm1 fused into the out-projection matmul epilogue
    x = self_attention_block(
        x, p["self_attn"], nhead,
        residual_ln=(x2, p["norm1_g"], p["norm1_b"], EPS))
    x2 = x.reshape(L * N, E)
    h = pallas_linear(x2, p["w1"], p["b1"], relu=True)
    # FFN second matmul; residual + norm2 fused into its epilogue
    x = pallas_linear(h, p["w2"], p["b2"],
                      residual_ln=(x2, p["norm2_g"], p["norm2_b"], EPS))
    return x.reshape(L, N, E)


def decoder_layer(y, memory, p, nhead, tgt_mask):
    T, N, E = y.shape
    y2 = y.reshape(T * N, E)
    y = self_attention_block(
        y, p["self_attn"], nhead, mask=tgt_mask,
        residual_ln=(y2, p["norm1_g"], p["norm1_b"], EPS))
    y2 = y.reshape(T * N, E)
    y = cross_attention_block(
        y, memory, p["cross_attn"], nhead,
        residual_ln=(y2, p["norm2_g"], p["norm2_b"], EPS))
    y2 = y.reshape(T * N, E)
    h = pallas_linear(y2, p["w1"], p["b1"], relu=True)
    y = pallas_linear(h, p["w2"], p["b2"],
                      residual_ln=(y2, p["norm3_g"], p["norm3_b"], EPS))
    return y.reshape(T, N, E)


def transformer_forward(params, x_tok, y_tok, cfg):
    E, H = cfg["d_model"], cfg["nhead"]
    x = embed(params, x_tok, E)            # (S, N, E) bf16
    y = embed(params, y_tok, E)            # (T, N, E) bf16
    T = y.shape[0]

    # generate_square_subsequent_mask: 0 on/below diag, masked above.
    # Large finite negative instead of -inf (robust; identical softmax).
    rows = jnp.arange(T)[:, None]
    cols = jnp.arange(T)[None, :]
    tgt_mask = jnp.where(cols <= rows, 0.0, -1e9).astype(jnp.float32)

    mem = x
    for lp in params["enc_layers"]:
        mem = encoder_layer(mem, lp, H)
    S, N, _ = mem.shape
    mem = pallas_layernorm(mem.reshape(S * N, E), params["enc_norm_g"],
                           params["enc_norm_b"]).reshape(S, N, E)

    out = y
    for lp in params["dec_layers"]:
        out = decoder_layer(out, mem, lp, H, tgt_mask)
    Tn = out.shape[0] * out.shape[1]
    out2 = pallas_layernorm(out.reshape(Tn, E), params["dec_norm_g"],
                            params["dec_norm_b"])

    # Tied-embedding projection: logits = out @ emb_w^T + b using the
    # pre-transposed (E, vocab) bf16 table (normal MXU orientation, no
    # per-tile XLU transposes).  Logits kept in f32.
    logits = pallas_linear(out2, params["emb_wT"], params["proj_b"],
                           out_dtype=jnp.float32)
    return logits.reshape(out.shape[0], out.shape[1], -1)


# ----------------------------------------------------------------------------
# Deterministic synthetic parameter init (matmul weights stored in bf16)
# ----------------------------------------------------------------------------
def init_params(key, vocab, d_model, nhead, n_enc, n_dec, dff, max_len=1024):
    keys = iter(jax.random.split(key, 1024))

    def w(shape, scale=0.02, dtype=jnp.bfloat16):
        return (scale * jax.random.normal(next(keys), shape, jnp.float32)).astype(dtype)

    def self_attn_params(E):
        return dict(
            w_qkv=w((E, 3 * E)), b_qkv=w((3 * E,), dtype=jnp.float32),
            w_o=w((E, E)), b_o=w((E,), dtype=jnp.float32),
        )

    def cross_attn_params(E):
        return dict(
            w_q=w((E, E)), b_q=w((E,), dtype=jnp.float32),
            w_kv=w((E, 2 * E)), b_kv=w((2 * E,), dtype=jnp.float32),
            w_o=w((E, E)), b_o=w((E,), dtype=jnp.float32),
        )

    def enc_layer_params(E):
        return dict(
            self_attn=self_attn_params(E),
            w1=w((E, dff)), b1=w((dff,), dtype=jnp.float32),
            w2=w((dff, E)), b2=w((E,), dtype=jnp.float32),
            norm1_g=jnp.ones((E,)), norm1_b=jnp.zeros((E,)),
            norm2_g=jnp.ones((E,)), norm2_b=jnp.zeros((E,)),
        )

    def dec_layer_params(E):
        d = enc_layer_params(E)
        d["cross_attn"] = cross_attn_params(E)
        d["norm3_g"] = jnp.ones((E,))
        d["norm3_b"] = jnp.zeros((E,))
        return d

    # Embedding table (vocab, E), padding_idx=0 row zeroed; stored bf16.
    emb_w = w((vocab, d_model)).at[0].set(0.0)
    # Weight-tied projection: one-time pre-transposed copy (E, vocab) bf16.
    emb_wT = emb_w.T

    # Sinusoidal positional encoding, shape (max_len, 1, d_model), f32.
    position = jnp.arange(max_len, dtype=jnp.float32)[:, None]
    div_term = jnp.exp(jnp.arange(0, d_model, 2, dtype=jnp.float32)
                       * (-jnp.log(10000.0) / d_model))
    pe = jnp.zeros((max_len, d_model), jnp.float32)
    pe = pe.at[:, 0::2].set(jnp.sin(position * div_term))
    pe = pe.at[:, 1::2].set(jnp.cos(position * div_term))
    pe = pe[:, None, :]

    return dict(
        emb_w=emb_w,
        emb_wT=emb_wT,
        pe=pe,
        proj_b=w((vocab,), dtype=jnp.float32),
        enc_layers=[enc_layer_params(d_model) for _ in range(n_enc)],
        dec_layers=[dec_layer_params(d_model) for _ in range(n_dec)],
        enc_norm_g=jnp.ones((d_model,)), enc_norm_b=jnp.zeros((d_model,)),
        dec_norm_g=jnp.ones((d_model,)), dec_norm_b=jnp.zeros((d_model,)),
    )


# ----------------------------------------------------------------------------
if __name__ == "__main__":
    # Small, lane-friendly demo shapes (E, dff, vocab multiples of 128 avoid
    # any runtime padding in the tiled kernels).
    cfg = dict(vocab=128, d_model=128, nhead=4, n_enc=2, n_dec=2, dff=256)
    S, T, N = 8, 8, 2   # src len, tgt len, batch

    key = jax.random.PRNGKey(0)
    kp, kx, ky = jax.random.split(key, 3)
    params = init_params(kp, cfg["vocab"], cfg["d_model"], cfg["nhead"],
                         cfg["n_enc"], cfg["n_dec"], cfg["dff"])

    x_tok = jax.random.randint(kx, (S, N), 1, cfg["vocab"], dtype=jnp.int32)
    y_tok = jax.random.randint(ky, (T, N), 1, cfg["vocab"], dtype=jnp.int32)

    fwd = jax.jit(functools.partial(transformer_forward, cfg=cfg))
    logits = fwd(params, x_tok, y_tok)
    logits = jax.block_until_ready(logits)

    assert logits.shape == (T, N, cfg["vocab"])
    assert bool(jnp.all(jnp.isfinite(logits)))
    print("KERNEL_OK")
</pallas_src>

<mosaic_0001>
module attributes {stable_mosaic.version = 11 : i64} {
  func.func @_matmul_kernel(%arg0: i32, %arg1: i32, %arg2: i32, %arg3: memref<16x128xbf16, #tpu.memory_space<vmem>>, %arg4: memref<128x384xbf16, #tpu.memory_space<vmem>>, %arg5: memref<1x384xf32, #tpu.memory_space<vmem>>, %arg6: memref<16x384xbf16, #tpu.memory_space<vmem>>, %arg7: memref<16x384xf32, #tpu.memory_space<vmem>>) attributes {dimension_semantics = [#tpu.dimension_semantics<parallel>, #tpu.dimension_semantics<parallel>, #tpu.dimension_semantics<arbitrary>], iteration_bounds = array<i64: 1, 1, 1>, scalar_prefetch = 0 : i64, scratch_operands = 1 : i64, tpu.core_type = #tpu.core_type<tc>, window_params = [{transform_indices = @transform_0, window_bounds = array<i64: 16, 128>}, {transform_indices = @transform_1, window_bounds = array<i64: 128, 384>}, {transform_indices = @transform_2, window_bounds = array<i64: 1, 384>}, {transform_indices = @transform_3, window_bounds = array<i64: 16, 384>}]} {
    %c0_i32 = arith.constant 0 : i32
    %0 = arith.cmpi eq, %arg2, %c0_i32 : i32
    %1 = arith.extui %0 : i1 to i32
    %c0_i32_0 = arith.constant 0 : i32
    %2 = arith.cmpi ne, %1, %c0_i32_0 : i32
    scf.if %2 {
      %cst_10 = arith.constant 0.000000e+00 : f32
      %12 = vector.broadcast %cst_10 : f32 to vector<16x384xf32>
      %c0_11 = arith.constant 0 : index
      %c0_12 = arith.constant 0 : index
      %13 = vector.load %arg7[%c0_11, %c0_12] : memref<16x384xf32, #tpu.memory_space<vmem>>, vector<16x384xf32>
      tpu.vector_store %arg7[%c0_11, %c0_12], %12 {strides = array<i32>} : memref<16x384xf32, #tpu.memory_space<vmem>>, vector<16x384xf32>,
    } else {
    }
    %c0 = arith.constant 0 : index
    %c0_1 = arith.constant 0 : index
    %3 = vector.load %arg7[%c0, %c0_1] : memref<16x384xf32, #tpu.memory_space<vmem>>, vector<16x384xf32>
    %c0_2 = arith.constant 0 : index
    %c0_3 = arith.constant 0 : index
    %4 = vector.load %arg3[%c0_2, %c0_3] : memref<16x128xbf16, #tpu.memory_space<vmem>>, vector<16x128xbf16>
    %c0_4 = arith.constant 0 : index
    %c0_5 = arith.constant 0 : index
    %5 = vector.load %arg4[%c0_4, %c0_5] : memref<128x384xbf16, #tpu.memory_space<vmem>>, vector<128x384xbf16>
    %cst = arith.constant dense<0.000000e+00> : vector<16x384xf32>
    %6 = tpu.matmul %4, %5, %cst {dimension_numbers = #tpu.dot_dimension_numbers<[1], [0], [0], [1], [0, 0, 1, 1], [], []>} : vector<16x128xbf16>, vector<128x384xbf16>, vector<16x384xf32> -> vector<16x384xf32>
    %7 = arith.addf %3, %6 : vector<16x384xf32>
    %c0_6 = arith.constant 0 : index
    %c0_7 = arith.constant 0 : index
    %8 = vector.load %arg7[%c0_6, %c0_7] : memref<16x384xf32, #tpu.memory_space<vmem>>, vector<16x384xf32>
    tpu.vector_store %arg7[%c0_6, %c0_7], %7 {strides = array<i32>} : memref<16x384xf32, #tpu.memory_space<vmem>>, vector<16x384xf32>,
    %c0_i32_8 = arith.constant 0 : i32
    %9 = arith.cmpi eq, %arg2, %c0_i32_8 : i32
    %10 = arith.extui %9 : i1 to i32
    %c0_i32_9 = arith.constant 0 : i32
    %11 = arith.cmpi ne, %10, %c0_i32_9 : i32
    scf.if %11 {
      %c0_10 = arith.constant 0 : index
      %c0_11 = arith.constant 0 : index
      %12 = vector.load %arg7[%c0_10, %c0_11] : memref<16x384xf32, #tpu.memory_space<vmem>>, vector<16x384xf32>
      %c0_12 = arith.constant 0 : index
      %c0_13 = arith.constant 0 : index
      %13 = vector.load %arg5[%c0_12, %c0_13] : memref<1x384xf32, #tpu.memory_space<vmem>>, vector<1x384xf32>
      %14 = vector.broadcast %13 : vector<1x384xf32> to vector<16x384xf32>
      %15 = arith.addf %12, %14 : vector<16x384xf32>
      %16 = arith.truncf %15 : vector<16x384xf32> to vector<16x384xbf16>
      %c0_14 = arith.constant 0 : index
      %c0_15 = arith.constant 0 : index
      %17 = vector.load %arg6[%c0_14, %c0_15] : memref<16x384xbf16, #tpu.memory_space<vmem>>, vector<16x384xbf16>
      tpu.vector_store %arg6[%c0_14, %c0_15], %16 {strides = array<i32>} : memref<16x384xbf16, #tpu.memory_space<vmem>>, vector<16x384xbf16>,
    } else {
    }
    return
  }
  func.func @transform_0(%arg0: i32, %arg1: i32, %arg2: i32) -> (i32, i32) {
    %c0_i32 = arith.constant 0 : i32
    return %arg0, %arg2 : i32, i32
  }
  func.func @transform_1(%arg0: i32, %arg1: i32, %arg2: i32) -> (i32, i32) {
    %c0_i32 = arith.constant 0 : i32
    return %arg2, %arg1 : i32, i32
  }
  func.func @transform_2(%arg0: i32, %arg1: i32, %arg2: i32) -> (i32, i32) {
    %c0_i32 = arith.constant 0 : i32
    %c0_i32_0 = arith.constant 0 : i32
    return %c0_i32, %arg1 : i32, i32
  }
  func.func @transform_3(%arg0: i32, %arg1: i32, %arg2: i32) -> (i32, i32) {
    %c0_i32 = arith.constant 0 : i32
    return %arg0, %arg1 : i32, i32
  }
}

module attributes {stable_mosaic.version = 11 : i64} {
  func.func @_flash_attn_kernel(%arg0: i32, %arg1: i32, %arg2: memref<4x8x32xbf16, #tpu.memory_space<vmem>>, %arg3: memref<4x8x32xbf16, #tpu.memory_space<vmem>>, %arg4: memref<4x8x32xbf16, #tpu.memory_space<vmem>>, %arg5: memref<8x8xf32, #tpu.memory_space<vmem>>, %arg6: memref<4x8x32xbf16, #tpu.memory_space<vmem>>, %arg7: memref<4x8x1xf32, #tpu.memory_space<vmem>>, %arg8: memref<4x8x1xf32, #tpu.memory_space<vmem>>, %arg9: memref<4x8x32xf32, #tpu.memory_space<vmem>>) attributes {dimension_semantics = [#tpu.dimension_semantics<parallel>, #tpu.dimension_semantics<arbitrary>], iteration_bounds = array<i64: 2, 1>, scalar_prefetch = 0 : i64, scratch_operands = 3 : i64, tpu.core_type = #tpu.core_type<tc>, window_params = [{transform_indices = @transform_0, window_bounds = array<i64: 4, 8, 32>}, {transform_indices = @transform_1, window_bounds = array<i64: 4, 8, 32>}, {transform_indices = @transform_2, window_bounds = array<i64: 4, 8, 32>}, {transform_indices = @transform_3, window_bounds = array<i64: 8, 8>}, {transform_indices = @transform_4, window_bounds = array<i64: 4, 8, 32>}]} {
    %c0_i32 = arith.constant 0 : i32
    %0 = arith.cmpi eq, %arg1, %c0_i32 : i32
    %1 = arith.extui %0 : i1 to i32
    %c0_i32_0 = arith.constant 0 : i32
    %2 = arith.cmpi ne, %1, %c0_i32_0 : i32
    scf.if %2 {
      %cst_38 = arith.constant 0xFF800000 : f32
      %40 = vector.broadcast %cst_38 : f32 to vector<4x8x1xf32>
      %c0_39 = arith.constant 0 : index
      %c0_40 = arith.constant 0 : index
      %c0_41 = arith.constant 0 : index
      %41 = vector.load %arg7[%c0_39, %c0_40, %c0_41] : memref<4x8x1xf32, #tpu.memory_space<vmem>>, vector<4x8x1xf32>
      tpu.vector_store %arg7[%c0_39, %c0_40, %c0_41], %40 {strides = array<i32>} : memref<4x8x1xf32, #tpu.memory_space<vmem>>, vector<4x8x1xf32>,
      %cst_42 = arith.constant 0.000000e+00 : f32
      %42 = vector.broadcast %cst_42 : f32 to vector<4x8x1xf32>
      %c0_43 = arith.constant 0 : index
      %c0_44 = arith.constant 0 : index
      %c0_45 = arith.constant 0 : index
      %43 = vector.load %arg8[%c0_43, %c0_44, %c0_45] : memref<4x8x1xf32, #tpu.memory_space<vmem>>, vector<4x8x1xf32>
      tpu.vector_store %arg8[%c0_43, %c0_44, %c0_45], %42 {strides = array<i32>} : memref<4x8x1xf32, #tpu.memory_space<vmem>>, vector<4x8x1xf32>,
      %cst_46 = arith.constant 0.000000e+00 : f32
      %44 = vector.broadcast %cst_46 : f32 to vector<4x8x32xf32>
      %c0_47 = arith.constant 0 : index
      %c0_48 = arith.constant 0 : index
      %c0_49 = arith.constant 0 : index
      %45 = vector.load %arg9[%c0_47, %c0_48, %c0_49] : memref<4x8x32xf32, #tpu.memory_space<vmem>>, vector<4x8x32xf32>
      tpu.vector_store %arg9[%c0_47, %c0_48, %c0_49], %44 {strides = array<i32>} : memref<4x8x32xf32, #tpu.memory_space<vmem>>, vector<4x8x32xf32>,
    } else {
    }
    %c0 = arith.constant 0 : index
    %c0_1 = arith.constant 0 : index
    %c0_2 = arith.constant 0 : index
    %3 = vector.load %arg2[%c0, %c0_1, %c0_2] : memref<4x8x32xbf16, #tpu.memory_space<vmem>>, vector<4x8x32xbf16>
    %c0_3 = arith.constant 0 : index
    %c0_4 = arith.constant 0 : index
    %c0_5 = arith.constant 0 : index
    %4 = vector.load %arg3[%c0_3, %c0_4, %c0_5] : memref<4x8x32xbf16, #tpu.memory_space<vmem>>, vector<4x8x32xbf16>
    %c0_6 = arith.constant 0 : index
    %c0_7 = arith.constant 0 : index
    %c0_8 = arith.constant 0 : index
    %5 = vector.load %arg4[%c0_6, %c0_7, %c0_8] : memref<4x8x32xbf16, #tpu.memory_space<vmem>>, vector<4x8x32xbf16>
    %cst = arith.constant dense<0.000000e+00> : vector<4x8x8xf32>
    %6 = tpu.matmul %3, %4, %cst {dimension_numbers = #tpu.dot_dimension_numbers<[2], [2], [1], [1], [0, 0, 0, 1, 1, 1], [0], [0]>} : vector<4x8x32xbf16>, vector<4x8x32xbf16>, vector<4x8x8xf32> -> vector<4x8x8xf32>
    %cst_9 = arith.constant 0.176776692 : f32
    %7 = vector.broadcast %cst_9 : f32 to vector<4x8x8xf32>
    %8 = arith.mulf %6, %7 : vector<4x8x8xf32>
    %c0_10 = arith.constant 0 : index
    %c0_11 = arith.constant 0 : index
    %9 = vector.load %arg5[%c0_10, %c0_11] : memref<8x8xf32, #tpu.memory_space<vmem>>, vector<8x8xf32>
    %10 = vector.shape_cast %9 : vector<8x8xf32> to vector<1x8x8xf32>
    %11 = vector.broadcast %10 : vector<1x8x8xf32> to vector<4x8x8xf32>
    %12 = arith.addf %8, %11 : vector<4x8x8xf32>
    %c0_12 = arith.constant 0 : index
    %c0_13 = arith.constant 0 : index
    %c0_14 = arith.constant 0 : index
    %13 = vector.load %arg7[%c0_12, %c0_13, %c0_14] : memref<4x8x1xf32, #tpu.memory_space<vmem>>, vector<4x8x1xf32>
    %cst_15 = arith.constant dense<0xFF800000> : vector<4x8xf32>
    %14 = vector.multi_reduction <maximumf>, %12, %cst_15 [2] : vector<4x8x8xf32> to vector<4x8xf32>
    %15 = vector.shape_cast %14 : vector<4x8xf32> to vector<4x8x1xf32>
    %16 = arith.maximumf %13, %15 : vector<4x8x1xf32>
    %c0_16 = arith.constant 0 : index
    %c0_17 = arith.constant 0 : index
    %c0_18 = arith.constant 0 : index
    %17 = vector.load %arg7[%c0_16, %c0_17, %c0_18] : memref<4x8x1xf32, #tpu.memory_space<vmem>>, vector<4x8x1xf32>
    %18 = arith.subf %17, %16 : vector<4x8x1xf32>
    %19 = math.exp %18 : vector<4x8x1xf32>
    %20 = vector.broadcast %16 : vector<4x8x1xf32> to vector<4x8x8xf32>
    %21 = arith.subf %12, %20 : vector<4x8x8xf32>
    %22 = math.exp %21 : vector<4x8x8xf32>
    %c0_19 = arith.constant 0 : index
    %c0_20 = arith.constant 0 : index
    %c0_21 = arith.constant 0 : index
    %23 = vector.load %arg8[%c0_19, %c0_20, %c0_21] : memref<4x8x1xf32, #tpu.memory_space<vmem>>, vector<4x8x1xf32>
    %24 = arith.mulf %19, %23 : vector<4x8x1xf32>
    %cst_22 = arith.constant dense<0.000000e+00> : vector<4x8xf32>
    %25 = vector.multi_reduction <add>, %22, %cst_22 [2] : vector<4x8x8xf32> to vector<4x8xf32>
    %26 = vector.shape_cast %25 : vector<4x8xf32> to vector<4x8x1xf32>
    %27 = arith.addf %24, %26 : vector<4x8x1xf32>
    %c0_23 = arith.constant 0 : index
    %c0_24 = arith.constant 0 : index
    %c0_25 = arith.constant 0 : index
    %28 = vector.load %arg8[%c0_23, %c0_24, %c0_25] : memref<4x8x1xf32, #tpu.memory_space<vmem>>, vector<4x8x1xf32>
    tpu.vector_store %arg8[%c0_23, %c0_24, %c0_25], %27 {strides = array<i32>} : memref<4x8x1xf32, #tpu.memory_space<vmem>>, vector<4x8x1xf32>,
    %c0_26 = arith.constant 0 : index
    %c0_27 = arith.constant 0 : index
    %c0_28 = arith.constant 0 : index
    %29 = vector.load %arg9[%c0_26, %c0_27, %c0_28] : memref<4x8x32xf32, #tpu.memory_space<vmem>>, vector<4x8x32xf32>
    %30 = vector.broadcast %19 : vector<4x8x1xf32> to vector<4x8x32xf32>
    %31 = arith.mulf %30, %29 : vector<4x8x32xf32>
    %32 = arith.truncf %22 : vector<4x8x8xf32> to vector<4x8x8xbf16>
    %cst_29 = arith.constant dense<0.000000e+00> : vector<4x8x32xf32>
    %33 = tpu.matmul %32, %5, %cst_29 {dimension_numbers = #tpu.dot_dimension_numbers<[2], [1], [1], [2], [0, 0, 0, 1, 1, 2], [0], [0]>} : vector<4x8x8xbf16>, vector<4x8x32xbf16>, vector<4x8x32xf32> -> vector<4x8x32xf32>
    %34 = arith.addf %31, %33 : vector<4x8x32xf32>
    %c0_30 = arith.constant 0 : index
    %c0_31 = arith.constant 0 : index
    %c0_32 = arith.constant 0 : index
    %35 = vector.load %arg9[%c0_30, %c0_31, %c0_32] : memref<4x8x32xf32, #tpu.memory_space<vmem>>, vector<4x8x32xf32>
    tpu.vector_store %arg9[%c0_30, %c0_31, %c0_32], %34 {strides = array<i32>} : memref<4x8x32xf32, #tpu.memory_space<vmem>>, vector<4x8x32xf32>,
    %c0_33 = arith.constant 0 : index
    %c0_34 = arith.constant 0 : index
    %c0_35 = arith.constant 0 : index
    %36 = vector.load %arg7[%c0_33, %c0_34, %c0_35] : memref<4x8x1xf32, #tpu.memory_space<vmem>>, vector<4x8x1xf32>
    tpu.vector_store %arg7[%c0_33, %c0_34, %c0_35], %16 {strides = array<i32>} : memref<4x8x1xf32, #tpu.memory_space<vmem>>, vector<4x8x1xf32>,
    %c0_i32_36 = arith.constant 0 : i32
    %37 = arith.cmpi eq, %arg1, %c0_i32_36 : i32
    %38 = arith.extui %37 : i1 to i32
    %c0_i32_37 = arith.constant 0 : i32
    %39 = arith.cmpi ne, %38, %c0_i32_37 : i32
    scf.if %39 {
      %c0_38 = arith.constant 0 : index
      %c0_39 = arith.constant 0 : index
      %c0_40 = arith.constant 0 : index
      %40 = vector.load %arg8[%c0_38, %c0_39, %c0_40] : memref<4x8x1xf32, #tpu.memory_space<vmem>>, vector<4x8x1xf32>
      %41 = tpu.reciprocal %40 {approx = true} : vector<4x8x1xf32> -> vector<4x8x1xf32>
      %c0_41 = arith.constant 0 : index
      %c0_42 = arith.constant 0 : index
      %c0_43 = arith.constant 0 : index
      %42 = vector.load %arg9[%c0_41, %c0_42, %c0_43] : memref<4x8x32xf32, #tpu.memory_space<vmem>>, vector<4x8x32xf32>
      %43 = vector.broadcast %41 : vector<4x8x1xf32> to vector<4x8x32xf32>
      %44 = arith.mulf %42, %43 : vector<4x8x32xf32>
      %45 = arith.truncf %44 : vector<4x8x32xf32> to vector<4x8x32xbf16>
      %c0_44 = arith.constant 0 : index
      %c0_45 = arith.constant 0 : index
      %c0_46 = arith.constant 0 : index
      %46 = vector.load %arg6[%c0_44, %c0_45, %c0_46] : memref<4x8x32xbf16, #tpu.memory_space<vmem>>, vector<4x8x32xbf16>
      tpu.vector_store %arg6[%c0_44, %c0_45, %c0_46], %45 {strides = array<i32>} : memref<4x8x32xbf16, #tpu.memory_space<vmem>>, vector<4x8x32xbf16>,
    } else {
    }
    return
  }
  func.func @transform_0(%arg0: i32, %arg1: i32) -> (i32, i32, i32) {
    %c0_i32 = arith.constant 0 : i32
    %c0_i32_0 = arith.constant 0 : i32
    %c0_i32_1 = arith.constant 0 : i32
    return %arg0, %c0_i32, %c0_i32_0 : i32, i32, i32
  }
  func.func @transform_1(%arg0: i32, %arg1: i32) -> (i32, i32, i32) {
    %c0_i32 = arith.constant 0 : i32
    %c0_i32_0 = arith.constant 0 : i32
    return %arg0, %arg1, %c0_i32 : i32, i32, i32
  }
  func.func @transform_2(%arg0: i32, %arg1: i32) -> (i32, i32, i32) {
    %c0_i32 = arith.constant 0 : i32
    %c0_i32_0 = arith.constant 0 : i32
    return %arg0, %arg1, %c0_i32 : i32, i32, i32
  }
  func.func @transform_3(%arg0: i32, %arg1: i32) -> (i32, i32) {
    %c0_i32 = arith.constant 0 : i32
    %c0_i32_0 = arith.constant 0 : i32
    return %c0_i32, %arg1 : i32, i32
  }
  func.func @transform_4(%arg0: i32, %arg1: i32) -> (i32, i32, i32) {
    %c0_i32 = arith.constant 0 : i32
    %c0_i32_0 = arith.constant 0 : i32
    %c0_i32_1 = arith.constant 0 : i32
    return %arg0, %c0_i32, %c0_i32_0 : i32, i32, i32
  }
}

module attributes {stable_mosaic.version = 11 : i64} {
  func.func @_matmul_kernel(%arg0: i32, %arg1: i32, %arg2: i32, %arg3: memref<16x128xbf16, #tpu.memory_space<vmem>>, %arg4: memref<128x128xbf16, #tpu.memory_space<vmem>>, %arg5: memref<1x128xf32, #tpu.memory_space<vmem>>, %arg6: memref<16x128xbf16, #tpu.memory_space<vmem>>, %arg7: memref<1x128xf32, #tpu.memory_space<vmem>>, %arg8: memref<1x128xf32, #tpu.memory_space<vmem>>, %arg9: memref<16x128xbf16, #tpu.memory_space<vmem>>, %arg10: memref<16x128xf32, #tpu.memory_space<vmem>>) attributes {dimension_semantics = [#tpu.dimension_semantics<parallel>, #tpu.dimension_semantics<parallel>, #tpu.dimension_semantics<arbitrary>], iteration_bounds = array<i64: 1, 1, 1>, scalar_prefetch = 0 : i64, scratch_operands = 1 : i64, tpu.core_type = #tpu.core_type<tc>, window_params = [{transform_indices = @transform_0, window_bounds = array<i64: 16, 128>}, {transform_indices = @transform_1, window_bounds = array<i64: 128, 128>}, {transform_indices = @transform_2, window_bounds = array<i64: 1, 128>}, {transform_indices = @transform_3, window_bounds = array<i64: 16, 128>}, {transform_indices = @transform_4, window_bounds = array<i64: 1, 128>}, {transform_indices = @transform_5, window_bounds = array<i64: 1, 128>}, {transform_indices = @transform_6, window_bounds = array<i64: 16, 128>}]} {
    %c0_i32 = arith.constant 0 : i32
    %0 = arith.cmpi eq, %arg2, %c0_i32 : i32
    %1 = arith.extui %0 : i1 to i32
    %c0_i32_0 = arith.constant 0 : i32
    %2 = arith.cmpi ne, %1, %c0_i32_0 : i32
    scf.if %2 {
      %cst_10 = arith.constant 0.000000e+00 : f32
      %12 = vector.broadcast %cst_10 : f32 to vector<16x128xf32>
      %c0_11 = arith.constant 0 : index
      %c0_12 = arith.constant 0 : index
      %13 = vector.load %arg10[%c0_11, %c0_12] : memref<16x128xf32, #tpu.memory_space<vmem>>, vector<16x128xf32>
      tpu.vector_store %arg10[%c0_11, %c0_12], %12 {strides = array<i32>} : memref<16x128xf32, #tpu.memory_space<vmem>>, vector<16x128xf32>,
    } else {
    }
    %c0 = arith.constant 0 : index
    %c0_1 = arith.constant 0 : index
    %3 = vector.load %arg10[%c0, %c0_1] : memref<16x128xf32, #tpu.memory_space<vmem>>, vector<16x128xf32>
    %c0_2 = arith.constant 0 : index
    %c0_3 = arith.constant 0 : index
    %4 = vector.load %arg3[%c0_2, %c0_3] : memref<16x128xbf16, #tpu.memory_space<vmem>>, vector<16x128xbf16>
    %c0_4 = arith.constant 0 : index
    %c0_5 = arith.constant 0 : index
    %5 = vector.load %arg4[%c0_4, %c0_5] : memref<128x128xbf16, #tpu.memory_space<vmem>>, vector<128x128xbf16>
    %cst = arith.constant dense<0.000000e+00> : vector<16x128xf32>
    %6 = tpu.matmul %4, %5, %cst {dimension_numbers = #tpu.dot_dimension_numbers<[1], [0], [0], [1], [0, 0, 1, 1], [], []>} : vector<16x128xbf16>, vector<128x128xbf16>, vector<16x128xf32> -> vector<16x128xf32>
    %7 = arith.addf %3, %6 : vector<16x128xf32>
    %c0_6 = arith.constant 0 : index
    %c0_7 = arith.constant 0 : index
    %8 = vector.load %arg10[%c0_6, %c0_7] : memref<16x128xf32, #tpu.memory_space<vmem>>, vector<16x128xf32>
    tpu.vector_store %arg10[%c0_6, %c0_7], %7 {strides = array<i32>} : memref<16x128xf32, #tpu.memory_space<vmem>>, vector<16x128xf32>,
    %c0_i32_8 = arith.constant 0 : i32
    %9 = arith.cmpi eq, %arg2, %c0_i32_8 : i32
    %10 = arith.extui %9 : i1 to i32
    %c0_i32_9 = arith.constant 0 : i32
    %11 = arith.cmpi ne, %10, %c0_i32_9 : i32
    scf.if %11 {
      %c0_10 = arith.constant 0 : index
      %c0_11 = arith.constant 0 : index
      %12 = vector.load %arg10[%c0_10, %c0_11] : memref<16x128xf32, #tpu.memory_space<vmem>>, vector<16x128xf32>
      %c0_12 = arith.constant 0 : index
      %c0_13 = arith.constant 0 : index
      %13 = vector.load %arg5[%c0_12, %c0_13] : memref<1x128xf32, #tpu.memory_space<vmem>>, vector<1x128xf32>
      %14 = vector.broadcast %13 : vector<1x128xf32> to vector<16x128xf32>
      %15 = arith.addf %12, %14 : vector<16x128xf32>
      %c0_14 = arith.constant 0 : index
      %c0_15 = arith.constant 0 : index
      %16 = vector.load %arg6[%c0_14, %c0_15] : memref<16x128xbf16, #tpu.memory_space<vmem>>, vector<16x128xbf16>
      %17 = arith.extf %16 : vector<16x128xbf16> to vector<16x128xf32>
      %18 = arith.addf %15, %17 : vector<16x128xf32>
      %cst_16 = arith.constant dense<0.000000e+00> : vector<16xf32>
      %19 = vector.multi_reduction <add>, %18, %cst_16 [1] : vector<16x128xf32> to vector<16xf32>
      %20 = vector.shape_cast %19 : vector<16xf32> to vector<16x1xf32>
      %cst_17 = arith.constant 1.280000e+02 : f32
      %21 = vector.broadcast %cst_17 : f32 to vector<16x1xf32>
      %22 = arith.divf %20, %21 : vector<16x1xf32>
      %23 = vector.broadcast %22 : vector<16x1xf32> to vector<16x128xf32>
      %24 = arith.subf %18, %23 : vector<16x128xf32>
      %25 = arith.mulf %24, %24 : vector<16x128xf32>
      %cst_18 = arith.constant dense<0.000000e+00> : vector<16xf32>
      %26 = vector.multi_reduction <add>, %25, %cst_18 [1] : vector<16x128xf32> to vector<16xf32>
      %27 = vector.shape_cast %26 : vector<16xf32> to vector<16x1xf32>
      %cst_19 = arith.constant 1.280000e+02 : f32
      %28 = vector.broadcast %cst_19 : f32 to vector<16x1xf32>
      %29 = arith.divf %27, %28 : vector<16x1xf32>
      %30 = vector.broadcast %22 : vector<16x1xf32> to vector<16x128xf32>
      %31 = arith.subf %18, %30 : vector<16x128xf32>
      %cst_20 = arith.constant 9.99999974E-6 : f32
      %32 = vector.broadcast %cst_20 : f32 to vector<16x1xf32>
      %33 = arith.addf %29, %32 : vector<16x1xf32>
      %34 = math.rsqrt %33 : vector<16x1xf32>
      %35 = vector.broadcast %34 : vector<16x1xf32> to vector<16x128xf32>
      %36 = arith.mulf %31, %35 : vector<16x128xf32>
      %c0_21 = arith.constant 0 : index
      %c0_22 = arith.constant 0 : index
      %37 = vector.load %arg7[%c0_21, %c0_22] : memref<1x128xf32, #tpu.memory_space<vmem>>, vector<1x128xf32>
      %38 = vector.broadcast %37 : vector<1x128xf32> to vector<16x128xf32>
      %39 = arith.mulf %36, %38 : vector<16x128xf32>
      %c0_23 = arith.constant 0 : index
      %c0_24 = arith.constant 0 : index
      %40 = vector.load %arg8[%c0_23, %c0_24] : memref<1x128xf32, #tpu.memory_space<vmem>>, vector<1x128xf32>
      %41 = vector.broadcast %40 : vector<1x128xf32> to vector<16x128xf32>
      %42 = arith.addf %39, %41 : vector<16x128xf32>
      %43 = arith.truncf %42 : vector<16x128xf32> to vector<16x128xbf16>
      %c0_25 = arith.constant 0 : index
      %c0_26 = arith.constant 0 : index
      %44 = vector.load %arg9[%c0_25, %c0_26] : memref<16x128xbf16, #tpu.memory_space<vmem>>, vector<16x128xbf16>
      tpu.vector_store %arg9[%c0_25, %c0_26], %43 {strides = array<i32>} : memref<16x128xbf16, #tpu.memory_space<vmem>>, vector<16x128xbf16>,
    } else {
    }
    return
  }
  func.func @transform_0(%arg0: i32, %arg1: i32, %arg2: i32) -> (i32, i32) {
    %c0_i32 = arith.constant 0 : i32
    return %arg0, %arg2 : i32, i32
  }
  func.func @transform_1(%arg0: i32, %arg1: i32, %arg2: i32) -> (i32, i32) {
    %c0_i32 = arith.constant 0 : i32
    return %arg2, %arg1 : i32, i32
  }
  func.func @transform_2(%arg0: i32, %arg1: i32, %arg2: i32) -> (i32, i32) {
    %c0_i32 = arith.constant 0 : i32
    %c0_i32_0 = arith.constant 0 : i32
    return %c0_i32, %arg1 : i32, i32
  }
  func.func @transform_3(%arg0: i32, %arg1: i32, %arg2: i32) -> (i32, i32) {
    %c0_i32 = arith.constant 0 : i32
    return %arg0, %arg1 : i32, i32
  }
  func.func @transform_4(%arg0: i32, %arg1: i32, %arg2: i32) -> (i32, i32) {
    %c0_i32 = arith.constant 0 : i32
    %c0_i32_0 = arith.constant 0 : i32
    return %c0_i32, %arg1 : i32, i32
  }
  func.func @transform_5(%arg0: i32, %arg1: i32, %arg2: i32) -> (i32, i32) {
    %c0_i32 = arith.constant 0 : i32
    %c0_i32_0 = arith.constant 0 : i32
    return %c0_i32, %arg1 : i32, i32
  }
  func.func @transform_6(%arg0: i32, %arg1: i32, %arg2: i32) -> (i32, i32) {
    %c0_i32 = arith.constant 0 : i32
    return %arg0, %arg1 : i32, i32
  }
}

module attributes {stable_mosaic.version = 11 : i64} {
  func.func @_matmul_kernel(%arg0: i32, %arg1: i32, %arg2: i32, %arg3: memref<16x128xbf16, #tpu.memory_space<vmem>>, %arg4: memref<128x128xbf16, #tpu.memory_space<vmem>>, %arg5: memref<1x128xf32, #tpu.memory_space<vmem>>, %arg6: memref<16x128xbf16, #tpu.memory_space<vmem>>, %arg7: memref<16x128xf32, #tpu.memory_space<vmem>>) attributes {dimension_semantics = [#tpu.dimension_semantics<parallel>, #tpu.dimension_semantics<parallel>, #tpu.dimension_semantics<arbitrary>], iteration_bounds = array<i64: 1, 1, 1>, scalar_prefetch = 0 : i64, scratch_operands = 1 : i64, tpu.core_type = #tpu.core_type<tc>, window_params = [{transform_indices = @transform_0, window_bounds = array<i64: 16, 128>}, {transform_indices = @transform_1, window_bounds = array<i64: 128, 128>}, {transform_indices = @transform_2, window_bounds = array<i64: 1, 128>}, {transform_indices = @transform_3, window_bounds = array<i64: 16, 128>}]} {
    %c0_i32 = arith.constant 0 : i32
    %0 = arith.cmpi eq, %arg2, %c0_i32 : i32
    %1 = arith.extui %0 : i1 to i32
    %c0_i32_0 = arith.constant 0 : i32
    %2 = arith.cmpi ne, %1, %c0_i32_0 : i32
    scf.if %2 {
      %cst_10 = arith.constant 0.000000e+00 : f32
      %12 = vector.broadcast %cst_10 : f32 to vector<16x128xf32>
      %c0_11 = arith.constant 0 : index
      %c0_12 = arith.constant 0 : index
      %13 = vector.load %arg7[%c0_11, %c0_12] : memref<16x128xf32, #tpu.memory_space<vmem>>, vector<16x128xf32>
      tpu.vector_store %arg7[%c0_11, %c0_12], %12 {strides = array<i32>} : memref<16x128xf32, #tpu.memory_space<vmem>>, vector<16x128xf32>,
    } else {
    }
    %c0 = arith.constant 0 : index
    %c0_1 = arith.constant 0 : index
    %3 = vector.load %arg7[%c0, %c0_1] : memref<16x128xf32, #tpu.memory_space<vmem>>, vector<16x128xf32>
    %c0_2 = arith.constant 0 : index
    %c0_3 = arith.constant 0 : index
    %4 = vector.load %arg3[%c0_2, %c0_3] : memref<16x128xbf16, #tpu.memory_space<vmem>>, vector<16x128xbf16>
    %c0_4 = arith.constant 0 : index
    %c0_5 = arith.constant 0 : index
    %5 = vector.load %arg4[%c0_4, %c0_5] : memref<128x128xbf16, #tpu.memory_space<vmem>>, vector<128x128xbf16>
    %cst = arith.constant dense<0.000000e+00> : vector<16x128xf32>
    %6 = tpu.matmul %4, %5, %cst {dimension_numbers = #tpu.dot_dimension_numbers<[1], [0], [0], [1], [0, 0, 1, 1], [], []>} : vector<16x128xbf16>, vector<128x128xbf16>, vector<16x128xf32> -> vector<16x128xf32>
    %7 = arith.addf %3, %6 : vector<16x128xf32>
    %c0_6 = arith.constant 0 : index
    %c0_7 = arith.constant 0 : index
    %8 = vector.load %arg7[%c0_6, %c0_7] : memref<16x128xf32, #tpu.memory_space<vmem>>, vector<16x128xf32>
    tpu.vector_store %arg7[%c0_6, %c0_7], %7 {strides = array<i32>} : memref<16x128xf32, #tpu.memory_space<vmem>>, vector<16x128xf32>,
    %c0_i32_8 = arith.constant 0 : i32
    %9 = arith.cmpi eq, %arg2, %c0_i32_8 : i32
    %10 = arith.extui %9 : i1 to i32
    %c0_i32_9 = arith.constant 0 : i32
    %11 = arith.cmpi ne, %10, %c0_i32_9 : i32
    scf.if %11 {
      %c0_10 = arith.constant 0 : index
      %c0_11 = arith.constant 0 : index
      %12 = vector.load %arg7[%c0_10, %c0_11] : memref<16x128xf32, #tpu.memory_space<vmem>>, vector<16x128xf32>
      %c0_12 = arith.constant 0 : index
      %c0_13 = arith.constant 0 : index
      %13 = vector.load %arg5[%c0_12, %c0_13] : memref<1x128xf32, #tpu.memory_space<vmem>>, vector<1x128xf32>
      %14 = vector.broadcast %13 : vector<1x128xf32> to vector<16x128xf32>
      %15 = arith.addf %12, %14 : vector<16x128xf32>
      %16 = arith.truncf %15 : vector<16x128xf32> to vector<16x128xbf16>
      %c0_14 = arith.constant 0 : index
      %c0_15 = arith.constant 0 : index
      %17 = vector.load %arg6[%c0_14, %c0_15] : memref<16x128xbf16, #tpu.memory_space<vmem>>, vector<16x128xbf16>
      tpu.vector_store %arg6[%c0_14, %c0_15], %16 {strides = array<i32>} : memref<16x128xbf16, #tpu.memory_space<vmem>>, vector<16x128xbf16>,
    } else {
    }
    return
  }
  func.func @transform_0(%arg0: i32, %arg1: i32, %arg2: i32) -> (i32, i32) {
    %c0_i32 = arith.constant 0 : i32
    return %arg0, %arg2 : i32, i32
  }
  func.func @transform_1(%arg0: i32, %arg1: i32, %arg2: i32) -> (i32, i32) {
    %c0_i32 = arith.constant 0 : i32
    return %arg2, %arg1 : i32, i32
  }
  func.func @transform_2(%arg0: i32, %arg1: i32, %arg2: i32) -> (i32, i32) {
    %c0_i32 = arith.constant 0 : i32
    %c0_i32_0 = arith.constant 0 : i32
    return %c0_i32, %arg1 : i32, i32
  }
  func.func @transform_3(%arg0: i32, %arg1: i32, %arg2: i32) -> (i32, i32) {
    %c0_i32 = arith.constant 0 : i32
    return %arg0, %arg1 : i32, i32
  }
}

module attributes {stable_mosaic.version = 11 : i64} {
  func.func @_flash_attn_kernel(%arg0: i32, %arg1: i32, %arg2: memref<4x8x32xbf16, #tpu.memory_space<vmem>>, %arg3: memref<4x8x32xbf16, #tpu.memory_space<vmem>>, %arg4: memref<4x8x32xbf16, #tpu.memory_space<vmem>>, %arg5: memref<4x8x32xbf16, #tpu.memory_space<vmem>>, %arg6: memref<4x8x1xf32, #tpu.memory_space<vmem>>, %arg7: memref<4x8x1xf32, #tpu.memory_space<vmem>>, %arg8: memref<4x8x32xf32, #tpu.memory_space<vmem>>) attributes {dimension_semantics = [#tpu.dimension_semantics<parallel>, #tpu.dimension_semantics<arbitrary>], iteration_bounds = array<i64: 2, 1>, scalar_prefetch = 0 : i64, scratch_operands = 3 : i64, tpu.core_type = #tpu.core_type<tc>, window_params = [{transform_indices = @transform_0, window_bounds = array<i64: 4, 8, 32>}, {transform_indices = @transform_1, window_bounds = array<i64: 4, 8, 32>}, {transform_indices = @transform_2, window_bounds = array<i64: 4, 8, 32>}, {transform_indices = @transform_3, window_bounds = array<i64: 4, 8, 32>}]} {
    %c0_i32 = arith.constant 0 : i32
    %0 = arith.cmpi eq, %arg1, %c0_i32 : i32
    %1 = arith.extui %0 : i1 to i32
    %c0_i32_0 = arith.constant 0 : i32
    %2 = arith.cmpi ne, %1, %c0_i32_0 : i32
    scf.if %2 {
      %cst_36 = arith.constant 0xFF800000 : f32
      %36 = vector.broadcast %cst_36 : f32 to vector<4x8x1xf32>
      %c0_37 = arith.constant 0 : index
      %c0_38 = arith.constant 0 : index
      %c0_39 = arith.constant 0 : index
      %37 = vector.load %arg6[%c0_37, %c0_38, %c0_39] : memref<4x8x1xf32, #tpu.memory_space<vmem>>, vector<4x8x1xf32>
      tpu.vector_store %arg6[%c0_37, %c0_38, %c0_39], %36 {strides = array<i32>} : memref<4x8x1xf32, #tpu.memory_space<vmem>>, vector<4x8x1xf32>,
      %cst_40 = arith.constant 0.000000e+00 : f32
      %38 = vector.broadcast %cst_40 : f32 to vector<4x8x1xf32>
      %c0_41 = arith.constant 0 : index
      %c0_42 = arith.constant 0 : index
      %c0_43 = arith.constant 0 : index
      %39 = vector.load %arg7[%c0_41, %c0_42, %c0_43] : memref<4x8x1xf32, #tpu.memory_space<vmem>>, vector<4x8x1xf32>
      tpu.vector_store %arg7[%c0_41, %c0_42, %c0_43], %38 {strides = array<i32>} : memref<4x8x1xf32, #tpu.memory_space<vmem>>, vector<4x8x1xf32>,
      %cst_44 = arith.constant 0.000000e+00 : f32
      %40 = vector.broadcast %cst_44 : f32 to vector<4x8x32xf32>
      %c0_45 = arith.constant 0 : index
      %c0_46 = arith.constant 0 : index
      %c0_47 = arith.constant 0 : index
      %41 = vector.load %arg8[%c0_45, %c0_46, %c0_47] : memref<4x8x32xf32, #tpu.memory_space<vmem>>, vector<4x8x32xf32>
      tpu.vector_store %arg8[%c0_45, %c0_46, %c0_47], %40 {strides = array<i32>} : memref<4x8x32xf32, #tpu.memory_space<vmem>>, vector<4x8x32xf32>,
    } else {
    }
    %c0 = arith.constant 0 : index
    %c0_1 = arith.constant 0 : index
    %c0_2 = arith.constant 0 : index
    %3 = vector.load %arg2[%c0, %c0_1, %c0_2] : memref<4x8x32xbf16, #tpu.memory_space<vmem>>, vector<4x8x32xbf16>
    %c0_3 = arith.constant 0 : index
    %c0_4 = arith.constant 0 : index
    %c0_5 = arith.constant 0 : index
    %4 = vector.load %arg3[%c0_3, %c0_4, %c0_5] : memref<4x8x32xbf16, #tpu.memory_space<vmem>>, vector<4x8x32xbf16>
    %c0_6 = arith.constant 0 : index
    %c0_7 = arith.constant 0 : index
    %c0_8 = arith.constant 0 : index
    %5 = vector.load %arg4[%c0_6, %c0_7, %c0_8] : memref<4x8x32xbf16, #tpu.memory_space<vmem>>, vector<4x8x32xbf16>
    %cst = arith.constant dense<0.000000e+00> : vector<4x8x8xf32>
    %6 = tpu.matmul %3, %4, %cst {dimension_numbers = #tpu.dot_dimension_numbers<[2], [2], [1], [1], [0, 0, 0, 1, 1, 1], [0], [0]>} : vector<4x8x32xbf16>, vector<4x8x32xbf16>, vector<4x8x8xf32> -> vector<4x8x8xf32>
    %cst_9 = arith.constant 0.176776692 : f32
    %7 = vector.broadcast %cst_9 : f32 to vector<4x8x8xf32>
    %8 = arith.mulf %6, %7 : vector<4x8x8xf32>
    %c0_10 = arith.constant 0 : index
    %c0_11 = arith.constant 0 : index
    %c0_12 = arith.constant 0 : index
    %9 = vector.load %arg6[%c0_10, %c0_11, %c0_12] : memref<4x8x1xf32, #tpu.memory_space<vmem>>, vector<4x8x1xf32>
    %cst_13 = arith.constant dense<0xFF800000> : vector<4x8xf32>
    %10 = vector.multi_reduction <maximumf>, %8, %cst_13 [2] : vector<4x8x8xf32> to vector<4x8xf32>
    %11 = vector.shape_cast %10 : vector<4x8xf32> to vector<4x8x1xf32>
    %12 = arith.maximumf %9, %11 : vector<4x8x1xf32>
    %c0_14 = arith.constant 0 : index
    %c0_15 = arith.constant 0 : index
    %c0_16 = arith.constant 0 : index
    %13 = vector.load %arg6[%c0_14, %c0_15, %c0_16] : memref<4x8x1xf32, #tpu.memory_space<vmem>>, vector<4x8x1xf32>
    %14 = arith.subf %13, %12 : vector<4x8x1xf32>
    %15 = math.exp %14 : vector<4x8x1xf32>
    %16 = vector.broadcast %12 : vector<4x8x1xf32> to vector<4x8x8xf32>
    %17 = arith.subf %8, %16 : vector<4x8x8xf32>
    %18 = math.exp %17 : vector<4x8x8xf32>
    %c0_17 = arith.constant 0 : index
    %c0_18 = arith.constant 0 : index
    %c0_19 = arith.constant 0 : index
    %19 = vector.load %arg7[%c0_17, %c0_18, %c0_19] : memref<4x8x1xf32, #tpu.memory_space<vmem>>, vector<4x8x1xf32>
    %20 = arith.mulf %15, %19 : vector<4x8x1xf32>
    %cst_20 = arith.constant dense<0.000000e+00> : vector<4x8xf32>
    %21 = vector.multi_reduction <add>, %18, %cst_20 [2] : vector<4x8x8xf32> to vector<4x8xf32>
    %22 = vector.shape_cast %21 : vector<4x8xf32> to vector<4x8x1xf32>
    %23 = arith.addf %20, %22 : vector<4x8x1xf32>
    %c0_21 = arith.constant 0 : index
    %c0_22 = arith.constant 0 : index
    %c0_23 = arith.constant 0 : index
    %24 = vector.load %arg7[%c0_21, %c0_22, %c0_23] : memref<4x8x1xf32, #tpu.memory_space<vmem>>, vector<4x8x1xf32>
    tpu.vector_store %arg7[%c0_21, %c0_22, %c0_23], %23 {strides = array<i32>} : memref<4x8x1xf32, #tpu.memory_space<vmem>>, vector<4x8x1xf32>,
    %c0_24 = arith.constant 0 : index
    %c0_25 = arith.constant 0 : index
    %c0_26 = arith.constant 0 : index
    %25 = vector.load %arg8[%c0_24, %c0_25, %c0_26] : memref<4x8x32xf32, #tpu.memory_space<vmem>>, vector<4x8x32xf32>
    %26 = vector.broadcast %15 : vector<4x8x1xf32> to vector<4x8x32xf32>
    %27 = arith.mulf %26, %25 : vector<4x8x32xf32>
    %28 = arith.truncf %18 : vector<4x8x8xf32> to vector<4x8x8xbf16>
    %cst_27 = arith.constant dense<0.000000e+00> : vector<4x8x32xf32>
    %29 = tpu.matmul %28, %5, %cst_27 {dimension_numbers = #tpu.dot_dimension_numbers<[2], [1], [1], [2], [0, 0, 0, 1, 1, 2], [0], [0]>} : vector<4x8x8xbf16>, vector<4x8x32xbf16>, vector<4x8x32xf32> -> vector<4x8x32xf32>
    %30 = arith.addf %27, %29 : vector<4x8x32xf32>
    %c0_28 = arith.constant 0 : index
    %c0_29 = arith.constant 0 : index
    %c0_30 = arith.constant 0 : index
    %31 = vector.load %arg8[%c0_28, %c0_29, %c0_30] : memref<4x8x32xf32, #tpu.memory_space<vmem>>, vector<4x8x32xf32>
    tpu.vector_store %arg8[%c0_28, %c0_29, %c0_30], %30 {strides = array<i32>} : memref<4x8x32xf32, #tpu.memory_space<vmem>>, vector<4x8x32xf32>,
    %c0_31 = arith.constant 0 : index
    %c0_32 = arith.constant 0 : index
    %c0_33 = arith.constant 0 : index
    %32 = vector.load %arg6[%c0_31, %c0_32, %c0_33] : memref<4x8x1xf32, #tpu.memory_space<vmem>>, vector<4x8x1xf32>
    tpu.vector_store %arg6[%c0_31, %c0_32, %c0_33], %12 {strides = array<i32>} : memref<4x8x1xf32, #tpu.memory_space<vmem>>, vector<4x8x1xf32>,
    %c0_i32_34 = arith.constant 0 : i32
    %33 = arith.cmpi eq, %arg1, %c0_i32_34 : i32
    %34 = arith.extui %33 : i1 to i32
    %c0_i32_35 = arith.constant 0 : i32
    %35 = arith.cmpi ne, %34, %c0_i32_35 : i32
    scf.if %35 {
      %c0_36 = arith.constant 0 : index
      %c0_37 = arith.constant 0 : index
      %c0_38 = arith.constant 0 : index
      %36 = vector.load %arg7[%c0_36, %c0_37, %c0_38] : memref<4x8x1xf32, #tpu.memory_space<vmem>>, vector<4x8x1xf32>
      %37 = tpu.reciprocal %36 {approx = true} : vector<4x8x1xf32> -> vector<4x8x1xf32>
      %c0_39 = arith.constant 0 : index
      %c0_40 = arith.constant 0 : index
      %c0_41 = arith.constant 0 : index
      %38 = vector.load %arg8[%c0_39, %c0_40, %c0_41] : memref<4x8x32xf32, #tpu.memory_space<vmem>>, vector<4x8x32xf32>
      %39 = vector.broadcast %37 : vector<4x8x1xf32> to vector<4x8x32xf32>
      %40 = arith.mulf %38, %39 : vector<4x8x32xf32>
      %41 = arith.truncf %40 : vector<4x8x32xf32> to vector<4x8x32xbf16>
      %c0_42 = arith.constant 0 : index
      %c0_43 = arith.constant 0 : index
      %c0_44 = arith.constant 0 : index
      %42 = vector.load %arg5[%c0_42, %c0_43, %c0_44] : memref<4x8x32xbf16, #tpu.memory_space<vmem>>, vector<4x8x32xbf16>
      tpu.vector_store %arg5[%c0_42, %c0_43, %c0_44], %41 {strides = array<i32>} : memref<4x8x32xbf16, #tpu.memory_space<vmem>>, vector<4x8x32xbf16>,
    } else {
    }
    return
  }
  func.func @transform_0(%arg0: i32, %arg1: i32) -> (i32, i32, i32) {
    %c0_i32 = arith.constant 0 : i32
    %c0_i32_0 = arith.constant 0 : i32
    %c0_i32_1 = arith.constant 0 : i32
    return %arg0, %c0_i32, %c0_i32_0 : i32, i32, i32
  }
  func.func @transform_1(%arg0: i32, %arg1: i32) -> (i32, i32, i32) {
    %c0_i32 = arith.constant 0 : i32
    %c0_i32_0 = arith.constant 0 : i32
    return %arg0, %arg1, %c0_i32 : i32, i32, i32
  }
  func.func @transform_2(%arg0: i32, %arg1: i32) -> (i32, i32, i32) {
    %c0_i32 = arith.constant 0 : i32
    %c0_i32_0 = arith.constant 0 : i32
    return %arg0, %arg1, %c0_i32 : i32, i32, i32
  }
  func.func @transform_3(%arg0: i32, %arg1: i32) -> (i32, i32, i32) {
    %c0_i32 = arith.constant 0 : i32
    %c0_i32_0 = arith.constant 0 : i32
    %c0_i32_1 = arith.constant 0 : i32
    return %arg0, %c0_i32, %c0_i32_0 : i32, i32, i32
  }
}

module attributes {stable_mosaic.version = 11 : i64} {
  func.func @_matmul_kernel(%arg0: i32, %arg1: i32, %arg2: i32, %arg3: memref<16x128xbf16, #tpu.memory_space<vmem>>, %arg4: memref<128x256xbf16, #tpu.memory_space<vmem>>, %arg5: memref<1x256xf32, #tpu.memory_space<vmem>>, %arg6: memref<16x256xbf16, #tpu.memory_space<vmem>>, %arg7: memref<16x256xf32, #tpu.memory_space<vmem>>) attributes {dimension_semantics = [#tpu.dimension_semantics<parallel>, #tpu.dimension_semantics<parallel>, #tpu.dimension_semantics<arbitrary>], iteration_bounds = array<i64: 1, 1, 1>, scalar_prefetch = 0 : i64, scratch_operands = 1 : i64, tpu.core_type = #tpu.core_type<tc>, window_params = [{transform_indices = @transform_0, window_bounds = array<i64: 16, 128>}, {transform_indices = @transform_1, window_bounds = array<i64: 128, 256>}, {transform_indices = @transform_2, window_bounds = array<i64: 1, 256>}, {transform_indices = @transform_3, window_bounds = array<i64: 16, 256>}]} {
    %c0_i32 = arith.constant 0 : i32
    %0 = arith.cmpi eq, %arg2, %c0_i32 : i32
    %1 = arith.extui %0 : i1 to i32
    %c0_i32_0 = arith.constant 0 : i32
    %2 = arith.cmpi ne, %1, %c0_i32_0 : i32
    scf.if %2 {
      %cst_10 = arith.constant 0.000000e+00 : f32
      %12 = vector.broadcast %cst_10 : f32 to vector<16x256xf32>
      %c0_11 = arith.constant 0 : index
      %c0_12 = arith.constant 0 : index
      %13 = vector.load %arg7[%c0_11, %c0_12] : memref<16x256xf32, #tpu.memory_space<vmem>>, vector<16x256xf32>
      tpu.vector_store %arg7[%c0_11, %c0_12], %12 {strides = array<i32>} : memref<16x256xf32, #tpu.memory_space<vmem>>, vector<16x256xf32>,
    } else {
    }
    %c0 = arith.constant 0 : index
    %c0_1 = arith.constant 0 : index
    %3 = vector.load %arg7[%c0, %c0_1] : memref<16x256xf32, #tpu.memory_space<vmem>>, vector<16x256xf32>
    %c0_2 = arith.constant 0 : index
    %c0_3 = arith.constant 0 : index
    %4 = vector.load %arg3[%c0_2, %c0_3] : memref<16x128xbf16, #tpu.memory_space<vmem>>, vector<16x128xbf16>
    %c0_4 = arith.constant 0 : index
    %c0_5 = arith.constant 0 : index
    %5 = vector.load %arg4[%c0_4, %c0_5] : memref<128x256xbf16, #tpu.memory_space<vmem>>, vector<128x256xbf16>
    %cst = arith.constant dense<0.000000e+00> : vector<16x256xf32>
    %6 = tpu.matmul %4, %5, %cst {dimension_numbers = #tpu.dot_dimension_numbers<[1], [0], [0], [1], [0, 0, 1, 1], [], []>} : vector<16x128xbf16>, vector<128x256xbf16>, vector<16x256xf32> -> vector<16x256xf32>
    %7 = arith.addf %3, %6 : vector<16x256xf32>
    %c0_6 = arith.constant 0 : index
    %c0_7 = arith.constant 0 : index
    %8 = vector.load %arg7[%c0_6, %c0_7] : memref<16x256xf32, #tpu.memory_space<vmem>>, vector<16x256xf32>
    tpu.vector_store %arg7[%c0_6, %c0_7], %7 {strides = array<i32>} : memref<16x256xf32, #tpu.memory_space<vmem>>, vector<16x256xf32>,
    %c0_i32_8 = arith.constant 0 : i32
    %9 = arith.cmpi eq, %arg2, %c0_i32_8 : i32
    %10 = arith.extui %9 : i1 to i32
    %c0_i32_9 = arith.constant 0 : i32
    %11 = arith.cmpi ne, %10, %c0_i32_9 : i32
    scf.if %11 {
      %c0_10 = arith.constant 0 : index
      %c0_11 = arith.constant 0 : index
      %12 = vector.load %arg7[%c0_10, %c0_11] : memref<16x256xf32, #tpu.memory_space<vmem>>, vector<16x256xf32>
      %c0_12 = arith.constant 0 : index
      %c0_13 = arith.constant 0 : index
      %13 = vector.load %arg5[%c0_12, %c0_13] : memref<1x256xf32, #tpu.memory_space<vmem>>, vector<1x256xf32>
      %14 = vector.broadcast %13 : vector<1x256xf32> to vector<16x256xf32>
      %15 = arith.addf %12, %14 : vector<16x256xf32>
      %cst_14 = arith.constant 0.000000e+00 : f32
      %16 = vector.broadcast %cst_14 : f32 to vector<16x256xf32>
      %17 = arith.maximumf %15, %16 : vector<16x256xf32>
      %18 = arith.truncf %17 : vector<16x256xf32> to vector<16x256xbf16>
      %c0_15 = arith.constant 0 : index
      %c0_16 = arith.constant 0 : index
      %19 = vector.load %arg6[%c0_15, %c0_16] : memref<16x256xbf16, #tpu.memory_space<vmem>>, vector<16x256xbf16>
      tpu.vector_store %arg6[%c0_15, %c0_16], %18 {strides = array<i32>} : memref<16x256xbf16, #tpu.memory_space<vmem>>, vector<16x256xbf16>,
    } else {
    }
    return
  }
  func.func @transform_0(%arg0: i32, %arg1: i32, %arg2: i32) -> (i32, i32) {
    %c0_i32 = arith.constant 0 : i32
    return %arg0, %arg2 : i32, i32
  }
  func.func @transform_1(%arg0: i32, %arg1: i32, %arg2: i32) -> (i32, i32) {
    %c0_i32 = arith.constant 0 : i32
    return %arg2, %arg1 : i32, i32
  }
  func.func @transform_2(%arg0: i32, %arg1: i32, %arg2: i32) -> (i32, i32) {
    %c0_i32 = arith.constant 0 : i32
    %c0_i32_0 = arith.constant 0 : i32
    return %c0_i32, %arg1 : i32, i32
  }
  func.func @transform_3(%arg0: i32, %arg1: i32, %arg2: i32) -> (i32, i32) {
    %c0_i32 = arith.constant 0 : i32
    return %arg0, %arg1 : i32, i32
  }
}

module attributes {stable_mosaic.version = 11 : i64} {
  func.func @_matmul_kernel(%arg0: i32, %arg1: i32, %arg2: i32, %arg3: memref<16x256xbf16, #tpu.memory_space<vmem>>, %arg4: memref<256x128xbf16, #tpu.memory_space<vmem>>, %arg5: memref<1x128xf32, #tpu.memory_space<vmem>>, %arg6: memref<16x128xbf16, #tpu.memory_space<vmem>>, %arg7: memref<1x128xf32, #tpu.memory_space<vmem>>, %arg8: memref<1x128xf32, #tpu.memory_space<vmem>>, %arg9: memref<16x128xbf16, #tpu.memory_space<vmem>>, %arg10: memref<16x128xf32, #tpu.memory_space<vmem>>) attributes {dimension_semantics = [#tpu.dimension_semantics<parallel>, #tpu.dimension_semantics<parallel>, #tpu.dimension_semantics<arbitrary>], iteration_bounds = array<i64: 1, 1, 1>, scalar_prefetch = 0 : i64, scratch_operands = 1 : i64, tpu.core_type = #tpu.core_type<tc>, window_params = [{transform_indices = @transform_0, window_bounds = array<i64: 16, 256>}, {transform_indices = @transform_1, window_bounds = array<i64: 256, 128>}, {transform_indices = @transform_2, window_bounds = array<i64: 1, 128>}, {transform_indices = @transform_3, window_bounds = array<i64: 16, 128>}, {transform_indices = @transform_4, window_bounds = array<i64: 1, 128>}, {transform_indices = @transform_5, window_bounds = array<i64: 1, 128>}, {transform_indices = @transform_6, window_bounds = array<i64: 16, 128>}]} {
    %c0_i32 = arith.constant 0 : i32
    %0 = arith.cmpi eq, %arg2, %c0_i32 : i32
    %1 = arith.extui %0 : i1 to i32
    %c0_i32_0 = arith.constant 0 : i32
    %2 = arith.cmpi ne, %1, %c0_i32_0 : i32
    scf.if %2 {
      %cst_10 = arith.constant 0.000000e+00 : f32
      %12 = vector.broadcast %cst_10 : f32 to vector<16x128xf32>
      %c0_11 = arith.constant 0 : index
      %c0_12 = arith.constant 0 : index
      %13 = vector.load %arg10[%c0_11, %c0_12] : memref<16x128xf32, #tpu.memory_space<vmem>>, vector<16x128xf32>
      tpu.vector_store %arg10[%c0_11, %c0_12], %12 {strides = array<i32>} : memref<16x128xf32, #tpu.memory_space<vmem>>, vector<16x128xf32>,
    } else {
    }
    %c0 = arith.constant 0 : index
    %c0_1 = arith.constant 0 : index
    %3 = vector.load %arg10[%c0, %c0_1] : memref<16x128xf32, #tpu.memory_space<vmem>>, vector<16x128xf32>
    %c0_2 = arith.constant 0 : index
    %c0_3 = arith.constant 0 : index
    %4 = vector.load %arg3[%c0_2, %c0_3] : memref<16x256xbf16, #tpu.memory_space<vmem>>, vector<16x256xbf16>
    %c0_4 = arith.constant 0 : index
    %c0_5 = arith.constant 0 : index
    %5 = vector.load %arg4[%c0_4, %c0_5] : memref<256x128xbf16, #tpu.memory_space<vmem>>, vector<256x128xbf16>
    %cst = arith.constant dense<0.000000e+00> : vector<16x128xf32>
    %6 = tpu.matmul %4, %5, %cst {dimension_numbers = #tpu.dot_dimension_numbers<[1], [0], [0], [1], [0, 0, 1, 1], [], []>} : vector<16x256xbf16>, vector<256x128xbf16>, vector<16x128xf32> -> vector<16x128xf32>
    %7 = arith.addf %3, %6 : vector<16x128xf32>
    %c0_6 = arith.constant 0 : index
    %c0_7 = arith.constant 0 : index
    %8 = vector.load %arg10[%c0_6, %c0_7] : memref<16x128xf32, #tpu.memory_space<vmem>>, vector<16x128xf32>
    tpu.vector_store %arg10[%c0_6, %c0_7], %7 {strides = array<i32>} : memref<16x128xf32, #tpu.memory_space<vmem>>, vector<16x128xf32>,
    %c0_i32_8 = arith.constant 0 : i32
    %9 = arith.cmpi eq, %arg2, %c0_i32_8 : i32
    %10 = arith.extui %9 : i1 to i32
    %c0_i32_9 = arith.constant 0 : i32
    %11 = arith.cmpi ne, %10, %c0_i32_9 : i32
    scf.if %11 {
      %c0_10 = arith.constant 0 : index
      %c0_11 = arith.constant 0 : index
      %12 = vector.load %arg10[%c0_10, %c0_11] : memref<16x128xf32, #tpu.memory_space<vmem>>, vector<16x128xf32>
      %c0_12 = arith.constant 0 : index
      %c0_13 = arith.constant 0 : index
      %13 = vector.load %arg5[%c0_12, %c0_13] : memref<1x128xf32, #tpu.memory_space<vmem>>, vector<1x128xf32>
      %14 = vector.broadcast %13 : vector<1x128xf32> to vector<16x128xf32>
      %15 = arith.addf %12, %14 : vector<16x128xf32>
      %c0_14 = arith.constant 0 : index
      %c0_15 = arith.constant 0 : index
      %16 = vector.load %arg6[%c0_14, %c0_15] : memref<16x128xbf16, #tpu.memory_space<vmem>>, vector<16x128xbf16>
      %17 = arith.extf %16 : vector<16x128xbf16> to vector<16x128xf32>
      %18 = arith.addf %15, %17 : vector<16x128xf32>
      %cst_16 = arith.constant dense<0.000000e+00> : vector<16xf32>
      %19 = vector.multi_reduction <add>, %18, %cst_16 [1] : vector<16x128xf32> to vector<16xf32>
      %20 = vector.shape_cast %19 : vector<16xf32> to vector<16x1xf32>
      %cst_17 = arith.constant 1.280000e+02 : f32
      %21 = vector.broadcast %cst_17 : f32 to vector<16x1xf32>
      %22 = arith.divf %20, %21 : vector<16x1xf32>
      %23 = vector.broadcast %22 : vector<16x1xf32> to vector<16x128xf32>
      %24 = arith.subf %18, %23 : vector<16x128xf32>
      %25 = arith.mulf %24, %24 : vector<16x128xf32>
      %cst_18 = arith.constant dense<0.000000e+00> : vector<16xf32>
      %26 = vector.multi_reduction <add>, %25, %cst_18 [1] : vector<16x128xf32> to vector<16xf32>
      %27 = vector.shape_cast %26 : vector<16xf32> to vector<16x1xf32>
      %cst_19 = arith.constant 1.280000e+02 : f32
      %28 = vector.broadcast %cst_19 : f32 to vector<16x1xf32>
      %29 = arith.divf %27, %28 : vector<16x1xf32>
      %30 = vector.broadcast %22 : vector<16x1xf32> to vector<16x128xf32>
      %31 = arith.subf %18, %30 : vector<16x128xf32>
      %cst_20 = arith.constant 9.99999974E-6 : f32
      %32 = vector.broadcast %cst_20 : f32 to vector<16x1xf32>
      %33 = arith.addf %29, %32 : vector<16x1xf32>
      %34 = math.rsqrt %33 : vector<16x1xf32>
      %35 = vector.broadcast %34 : vector<16x1xf32> to vector<16x128xf32>
      %36 = arith.mulf %31, %35 : vector<16x128xf32>
      %c0_21 = arith.constant 0 : index
      %c0_22 = arith.constant 0 : index
      %37 = vector.load %arg7[%c0_21, %c0_22] : memref<1x128xf32, #tpu.memory_space<vmem>>, vector<1x128xf32>
      %38 = vector.broadcast %37 : vector<1x128xf32> to vector<16x128xf32>
      %39 = arith.mulf %36, %38 : vector<16x128xf32>
      %c0_23 = arith.constant 0 : index
      %c0_24 = arith.constant 0 : index
      %40 = vector.load %arg8[%c0_23, %c0_24] : memref<1x128xf32, #tpu.memory_space<vmem>>, vector<1x128xf32>
      %41 = vector.broadcast %40 : vector<1x128xf32> to vector<16x128xf32>
      %42 = arith.addf %39, %41 : vector<16x128xf32>
      %43 = arith.truncf %42 : vector<16x128xf32> to vector<16x128xbf16>
      %c0_25 = arith.constant 0 : index
      %c0_26 = arith.constant 0 : index
      %44 = vector.load %arg9[%c0_25, %c0_26] : memref<16x128xbf16, #tpu.memory_space<vmem>>, vector<16x128xbf16>
      tpu.vector_store %arg9[%c0_25, %c0_26], %43 {strides = array<i32>} : memref<16x128xbf16, #tpu.memory_space<vmem>>, vector<16x128xbf16>,
    } else {
    }
    return
  }
  func.func @transform_0(%arg0: i32, %arg1: i32, %arg2: i32) -> (i32, i32) {
    %c0_i32 = arith.constant 0 : i32
    return %arg0, %arg2 : i32, i32
  }
  func.func @transform_1(%arg0: i32, %arg1: i32, %arg2: i32) -> (i32, i32) {
    %c0_i32 = arith.constant 0 : i32
    return %arg2, %arg1 : i32, i32
  }
  func.func @transform_2(%arg0: i32, %arg1: i32, %arg2: i32) -> (i32, i32) {
    %c0_i32 = arith.constant 0 : i32
    %c0_i32_0 = arith.constant 0 : i32
    return %c0_i32, %arg1 : i32, i32
  }
  func.func @transform_3(%arg0: i32, %arg1: i32, %arg2: i32) -> (i32, i32) {
    %c0_i32 = arith.constant 0 : i32
    return %arg0, %arg1 : i32, i32
  }
  func.func @transform_4(%arg0: i32, %arg1: i32, %arg2: i32) -> (i32, i32) {
    %c0_i32 = arith.constant 0 : i32
    %c0_i32_0 = arith.constant 0 : i32
    return %c0_i32, %arg1 : i32, i32
  }
  func.func @transform_5(%arg0: i32, %arg1: i32, %arg2: i32) -> (i32, i32) {
    %c0_i32 = arith.constant 0 : i32
    %c0_i32_0 = arith.constant 0 : i32
    return %c0_i32, %arg1 : i32, i32
  }
  func.func @transform_6(%arg0: i32, %arg1: i32, %arg2: i32) -> (i32, i32) {
    %c0_i32 = arith.constant 0 : i32
    return %arg0, %arg1 : i32, i32
  }
}

module attributes {stable_mosaic.version = 11 : i64} {
  func.func @_matmul_kernel(%arg0: i32, %arg1: i32, %arg2: i32, %arg3: memref<16x128xbf16, #tpu.memory_space<vmem>>, %arg4: memref<128x256xbf16, #tpu.memory_space<vmem>>, %arg5: memref<1x256xf32, #tpu.memory_space<vmem>>, %arg6: memref<16x256xbf16, #tpu.memory_space<vmem>>, %arg7: memref<16x256xf32, #tpu.memory_space<vmem>>) attributes {dimension_semantics = [#tpu.dimension_semantics<parallel>, #tpu.dimension_semantics<parallel>, #tpu.dimension_semantics<arbitrary>], iteration_bounds = array<i64: 1, 1, 1>, scalar_prefetch = 0 : i64, scratch_operands = 1 : i64, tpu.core_type = #tpu.core_type<tc>, window_params = [{transform_indices = @transform_0, window_bounds = array<i64: 16, 128>}, {transform_indices = @transform_1, window_bounds = array<i64: 128, 256>}, {transform_indices = @transform_2, window_bounds = array<i64: 1, 256>}, {transform_indices = @transform_3, window_bounds = array<i64: 16, 256>}]} {
    %c0_i32 = arith.constant 0 : i32
    %0 = arith.cmpi eq, %arg2, %c0_i32 : i32
    %1 = arith.extui %0 : i1 to i32
    %c0_i32_0 = arith.constant 0 : i32
    %2 = arith.cmpi ne, %1, %c0_i32_0 : i32
    scf.if %2 {
      %cst_10 = arith.constant 0.000000e+00 : f32
      %12 = vector.broadcast %cst_10 : f32 to vector<16x256xf32>
      %c0_11 = arith.constant 0 : index
      %c0_12 = arith.constant 0 : index
      %13 = vector.load %arg7[%c0_11, %c0_12] : memref<16x256xf32, #tpu.memory_space<vmem>>, vector<16x256xf32>
      tpu.vector_store %arg7[%c0_11, %c0_12], %12 {strides = array<i32>} : memref<16x256xf32, #tpu.memory_space<vmem>>, vector<16x256xf32>,
    } else {
    }
    %c0 = arith.constant 0 : index
    %c0_1 = arith.constant 0 : index
    %3 = vector.load %arg7[%c0, %c0_1] : memref<16x256xf32, #tpu.memory_space<vmem>>, vector<16x256xf32>
    %c0_2 = arith.constant 0 : index
    %c0_3 = arith.constant 0 : index
    %4 = vector.load %arg3[%c0_2, %c0_3] : memref<16x128xbf16, #tpu.memory_space<vmem>>, vector<16x128xbf16>
    %c0_4 = arith.constant 0 : index
    %c0_5 = arith.constant 0 : index
    %5 = vector.load %arg4[%c0_4, %c0_5] : memref<128x256xbf16, #tpu.memory_space<vmem>>, vector<128x256xbf16>
    %cst = arith.constant dense<0.000000e+00> : vector<16x256xf32>
    %6 = tpu.matmul %4, %5, %cst {dimension_numbers = #tpu.dot_dimension_numbers<[1], [0], [0], [1], [0, 0, 1, 1], [], []>} : vector<16x128xbf16>, vector<128x256xbf16>, vector<16x256xf32> -> vector<16x256xf32>
    %7 = arith.addf %3, %6 : vector<16x256xf32>
    %c0_6 = arith.constant 0 : index
    %c0_7 = arith.constant 0 : index
    %8 = vector.load %arg7[%c0_6, %c0_7] : memref<16x256xf32, #tpu.memory_space<vmem>>, vector<16x256xf32>
    tpu.vector_store %arg7[%c0_6, %c0_7], %7 {strides = array<i32>} : memref<16x256xf32, #tpu.memory_space<vmem>>, vector<16x256xf32>,
    %c0_i32_8 = arith.constant 0 : i32
    %9 = arith.cmpi eq, %arg2, %c0_i32_8 : i32
    %10 = arith.extui %9 : i1 to i32
    %c0_i32_9 = arith.constant 0 : i32
    %11 = arith.cmpi ne, %10, %c0_i32_9 : i32
    scf.if %11 {
      %c0_10 = arith.constant 0 : index
      %c0_11 = arith.constant 0 : index
      %12 = vector.load %arg7[%c0_10, %c0_11] : memref<16x256xf32, #tpu.memory_space<vmem>>, vector<16x256xf32>
      %c0_12 = arith.constant 0 : index
      %c0_13 = arith.constant 0 : index
      %13 = vector.load %arg5[%c0_12, %c0_13] : memref<1x256xf32, #tpu.memory_space<vmem>>, vector<1x256xf32>
      %14 = vector.broadcast %13 : vector<1x256xf32> to vector<16x256xf32>
      %15 = arith.addf %12, %14 : vector<16x256xf32>
      %16 = arith.truncf %15 : vector<16x256xf32> to vector<16x256xbf16>
      %c0_14 = arith.constant 0 : index
      %c0_15 = arith.constant 0 : index
      %17 = vector.load %arg6[%c0_14, %c0_15] : memref<16x256xbf16, #tpu.memory_space<vmem>>, vector<16x256xbf16>
      tpu.vector_store %arg6[%c0_14, %c0_15], %16 {strides = array<i32>} : memref<16x256xbf16, #tpu.memory_space<vmem>>, vector<16x256xbf16>,
    } else {
    }
    return
  }
  func.func @transform_0(%arg0: i32, %arg1: i32, %arg2: i32) -> (i32, i32) {
    %c0_i32 = arith.constant 0 : i32
    return %arg0, %arg2 : i32, i32
  }
  func.func @transform_1(%arg0: i32, %arg1: i32, %arg2: i32) -> (i32, i32) {
    %c0_i32 = arith.constant 0 : i32
    return %arg2, %arg1 : i32, i32
  }
  func.func @transform_2(%arg0: i32, %arg1: i32, %arg2: i32) -> (i32, i32) {
    %c0_i32 = arith.constant 0 : i32
    %c0_i32_0 = arith.constant 0 : i32
    return %c0_i32, %arg1 : i32, i32
  }
  func.func @transform_3(%arg0: i32, %arg1: i32, %arg2: i32) -> (i32, i32) {
    %c0_i32 = arith.constant 0 : i32
    return %arg0, %arg1 : i32, i32
  }
}

module attributes {stable_mosaic.version = 11 : i64} {
  func.func @_matmul_kernel(%arg0: i32, %arg1: i32, %arg2: i32, %arg3: memref<16x128xbf16, #tpu.memory_space<vmem>>, %arg4: memref<128x128xbf16, #tpu.memory_space<vmem>>, %arg5: memref<1x128xf32, #tpu.memory_space<vmem>>, %arg6: memref<16x128xf32, #tpu.memory_space<vmem>>, %arg7: memref<16x128xf32, #tpu.memory_space<vmem>>) attributes {dimension_semantics = [#tpu.dimension_semantics<parallel>, #tpu.dimension_semantics<parallel>, #tpu.dimension_semantics<arbitrary>], iteration_bounds = array<i64: 1, 1, 1>, scalar_prefetch = 0 : i64, scratch_operands = 1 : i64, tpu.core_type = #tpu.core_type<tc>, window_params = [{transform_indices = @transform_0, window_bounds = array<i64: 16, 128>}, {transform_indices = @transform_1, window_bounds = array<i64: 128, 128>}, {transform_indices = @transform_2, window_bounds = array<i64: 1, 128>}, {transform_indices = @transform_3, window_bounds = array<i64: 16, 128>}]} {
    %c0_i32 = arith.constant 0 : i32
    %0 = arith.cmpi eq, %arg2, %c0_i32 : i32
    %1 = arith.extui %0 : i1 to i32
    %c0_i32_0 = arith.constant 0 : i32
    %2 = arith.cmpi ne, %1, %c0_i32_0 : i32
    scf.if %2 {
      %cst_10 = arith.constant 0.000000e+00 : f32
      %12 = vector.broadcast %cst_10 : f32 to vector<16x128xf32>
      %c0_11 = arith.constant 0 : index
      %c0_12 = arith.constant 0 : index
      %13 = vector.load %arg7[%c0_11, %c0_12] : memref<16x128xf32, #tpu.memory_space<vmem>>, vector<16x128xf32>
      tpu.vector_store %arg7[%c0_11, %c0_12], %12 {strides = array<i32>} : memref<16x128xf32, #tpu.memory_space<vmem>>, vector<16x128xf32>,
    } else {
    }
    %c0 = arith.constant 0 : index
    %c0_1 = arith.constant 0 : index
    %3 = vector.load %arg7[%c0, %c0_1] : memref<16x128xf32, #tpu.memory_space<vmem>>, vector<16x128xf32>
    %c0_2 = arith.constant 0 : index
    %c0_3 = arith.constant 0 : index
    %4 = vector.load %arg3[%c0_2, %c0_3] : memref<16x128xbf16, #tpu.memory_space<vmem>>, vector<16x128xbf16>
    %c0_4 = arith.constant 0 : index
    %c0_5 = arith.constant 0 : index
    %5 = vector.load %arg4[%c0_4, %c0_5] : memref<128x128xbf16, #tpu.memory_space<vmem>>, vector<128x128xbf16>
    %cst = arith.constant dense<0.000000e+00> : vector<16x128xf32>
    %6 = tpu.matmul %4, %5, %cst {dimension_numbers = #tpu.dot_dimension_numbers<[1], [0], [0], [1], [0, 0, 1, 1], [], []>} : vector<16x128xbf16>, vector<128x128xbf16>, vector<16x128xf32> -> vector<16x128xf32>
    %7 = arith.addf %3, %6 : vector<16x128xf32>
    %c0_6 = arith.constant 0 : index
    %c0_7 = arith.constant 0 : index
    %8 = vector.load %arg7[%c0_6, %c0_7] : memref<16x128xf32, #tpu.memory_space<vmem>>, vector<16x128xf32>
    tpu.vector_store %arg7[%c0_6, %c0_7], %7 {strides = array<i32>} : memref<16x128xf32, #tpu.memory_space<vmem>>, vector<16x128xf32>,
    %c0_i32_8 = arith.constant 0 : i32
    %9 = arith.cmpi eq, %arg2, %c0_i32_8 : i32
    %10 = arith.extui %9 : i1 to i32
    %c0_i32_9 = arith.constant 0 : i32
    %11 = arith.cmpi ne, %10, %c0_i32_9 : i32
    scf.if %11 {
      %c0_10 = arith.constant 0 : index
      %c0_11 = arith.constant 0 : index
      %12 = vector.load %arg7[%c0_10, %c0_11] : memref<16x128xf32, #tpu.memory_space<vmem>>, vector<16x128xf32>
      %c0_12 = arith.constant 0 : index
      %c0_13 = arith.constant 0 : index
      %13 = vector.load %arg5[%c0_12, %c0_13] : memref<1x128xf32, #tpu.memory_space<vmem>>, vector<1x128xf32>
      %14 = vector.broadcast %13 : vector<1x128xf32> to vector<16x128xf32>
      %15 = arith.addf %12, %14 : vector<16x128xf32>
      %c0_14 = arith.constant 0 : index
      %c0_15 = arith.constant 0 : index
      %16 = vector.load %arg6[%c0_14, %c0_15] : memref<16x128xf32, #tpu.memory_space<vmem>>, vector<16x128xf32>
      tpu.vector_store %arg6[%c0_14, %c0_15], %15 {strides = array<i32>} : memref<16x128xf32, #tpu.memory_space<vmem>>, vector<16x128xf32>,
    } else {
    }
    return
  }
  func.func @transform_0(%arg0: i32, %arg1: i32, %arg2: i32) -> (i32, i32) {
    %c0_i32 = arith.constant 0 : i32
    return %arg0, %arg2 : i32, i32
  }
  func.func @transform_1(%arg0: i32, %arg1: i32, %arg2: i32) -> (i32, i32) {
    %c0_i32 = arith.constant 0 : i32
    return %arg2, %arg1 : i32, i32
  }
  func.func @transform_2(%arg0: i32, %arg1: i32, %arg2: i32) -> (i32, i32) {
    %c0_i32 = arith.constant 0 : i32
    %c0_i32_0 = arith.constant 0 : i32
    return %c0_i32, %arg1 : i32, i32
  }
  func.func @transform_3(%arg0: i32, %arg1: i32, %arg2: i32) -> (i32, i32) {
    %c0_i32 = arith.constant 0 : i32
    return %arg0, %arg1 : i32, i32
  }
}

module attributes {stable_mosaic.version = 11 : i64} {
  func.func @_ln_kernel(%arg0: i32, %arg1: memref<16x128xbf16, #tpu.memory_space<vmem>>, %arg2: memref<1x128xf32, #tpu.memory_space<vmem>>, %arg3: memref<1x128xf32, #tpu.memory_space<vmem>>, %arg4: memref<16x128xbf16, #tpu.memory_space<vmem>>) attributes {dimension_semantics = [#tpu.dimension_semantics<parallel>], iteration_bounds = array<i64: 1>, scalar_prefetch = 0 : i64, scratch_operands = 0 : i64, tpu.core_type = #tpu.core_type<tc>, window_params = [{transform_indices = @transform_0, window_bounds = array<i64: 16, 128>}, {pipeline_mode = #tpu.pipeline_mode<synchronous>, transform_indices = @transform_1, window_bounds = array<i64: 1, 128>}, {pipeline_mode = #tpu.pipeline_mode<synchronous>, transform_indices = @transform_2, window_bounds = array<i64: 1, 128>}, {transform_indices = @transform_3, window_bounds = array<i64: 16, 128>}]} {
    %c0 = arith.constant 0 : index
    %c0_0 = arith.constant 0 : index
    %0 = vector.load %arg1[%c0, %c0_0] : memref<16x128xbf16, #tpu.memory_space<vmem>>, vector<16x128xbf16>
    %1 = arith.extf %0 : vector<16x128xbf16> to vector<16x128xf32>
    %cst = arith.constant dense<0.000000e+00> : vector<16xf32>
    %2 = vector.multi_reduction <add>, %1, %cst [1] : vector<16x128xf32> to vector<16xf32>
    %3 = vector.shape_cast %2 : vector<16xf32> to vector<16x1xf32>
    %cst_1 = arith.constant 1.280000e+02 : f32
    %4 = vector.broadcast %cst_1 : f32 to vector<16x1xf32>
    %5 = arith.divf %3, %4 : vector<16x1xf32>
    %6 = vector.broadcast %5 : vector<16x1xf32> to vector<16x128xf32>
    %7 = arith.subf %1, %6 : vector<16x128xf32>
    %8 = arith.mulf %7, %7 : vector<16x128xf32>
    %cst_2 = arith.constant dense<0.000000e+00> : vector<16xf32>
    %9 = vector.multi_reduction <add>, %8, %cst_2 [1] : vector<16x128xf32> to vector<16xf32>
    %10 = vector.shape_cast %9 : vector<16xf32> to vector<16x1xf32>
    %cst_3 = arith.constant 1.280000e+02 : f32
    %11 = vector.broadcast %cst_3 : f32 to vector<16x1xf32>
    %12 = arith.divf %10, %11 : vector<16x1xf32>
    %13 = vector.broadcast %5 : vector<16x1xf32> to vector<16x128xf32>
    %14 = arith.subf %1, %13 : vector<16x128xf32>
    %cst_4 = arith.constant 9.99999974E-6 : f32
    %15 = vector.broadcast %cst_4 : f32 to vector<16x1xf32>
    %16 = arith.addf %12, %15 : vector<16x1xf32>
    %17 = math.rsqrt %16 : vector<16x1xf32>
    %18 = vector.broadcast %17 : vector<16x1xf32> to vector<16x128xf32>
    %19 = arith.mulf %14, %18 : vector<16x128xf32>
    %c0_5 = arith.constant 0 : index
    %c0_6 = arith.constant 0 : index
    %20 = vector.load %arg2[%c0_5, %c0_6] : memref<1x128xf32, #tpu.memory_space<vmem>>, vector<1x128xf32>
    %21 = vector.broadcast %20 : vector<1x128xf32> to vector<16x128xf32>
    %22 = arith.mulf %19, %21 : vector<16x128xf32>
    %c0_7 = arith.constant 0 : index
    %c0_8 = arith.constant 0 : index
    %23 = vector.load %arg3[%c0_7, %c0_8] : memref<1x128xf32, #tpu.memory_space<vmem>>, vector<1x128xf32>
    %24 = vector.broadcast %23 : vector<1x128xf32> to vector<16x128xf32>
    %25 = arith.addf %22, %24 : vector<16x128xf32>
    %26 = arith.truncf %25 : vector<16x128xf32> to vector<16x128xbf16>
    %c0_9 = arith.constant 0 : index
    %c0_10 = arith.constant 0 : index
    %27 = vector.load %arg4[%c0_9, %c0_10] : memref<16x128xbf16, #tpu.memory_space<vmem>>, vector<16x128xbf16>
    tpu.vector_store %arg4[%c0_9, %c0_10], %26 {strides = array<i32>} : memref<16x128xbf16, #tpu.memory_space<vmem>>, vector<16x128xbf16>,
    return
  }
  func.func @transform_0(%arg0: i32) -> (i32, i32) {
    %c0_i32 = arith.constant 0 : i32
    %c0_i32_0 = arith.constant 0 : i32
    return %arg0, %c0_i32 : i32, i32
  }
  func.func @transform_1(%arg0: i32) -> (i32, i32) {
    %c0_i32 = arith.constant 0 : i32
    %c0_i32_0 = arith.constant 0 : i32
    %c0_i32_1 = arith.constant 0 : i32
    return %c0_i32, %c0_i32_0 : i32, i32
  }
  func.func @transform_2(%arg0: i32) -> (i32, i32) {
    %c0_i32 = arith.constant 0 : i32
    %c0_i32_0 = arith.constant 0 : i32
    %c0_i32_1 = arith.constant 0 : i32
    return %c0_i32, %c0_i32_0 : i32, i32
  }
  func.func @transform_3(%arg0: i32) -> (i32, i32) {
    %c0_i32 = arith.constant 0 : i32
    %c0_i32_0 = arith.constant 0 : i32
    return %arg0, %c0_i32 : i32, i32
  }
}

</mosaic_0001>

<bundles_post_ra>
// kernel: transformer_forward.45
= control target key start
LH: loop header
LB: loop body
LE: loop exit
PB: predicated region body
PF: predicated region fallthrough
CT: control target
= control target key end

     0   :  { %v227_v0 = vmov 0.0   ;;  %vm228_vm0 = vmmov 0   ;;  %s282_s1 = inlined_call_operand.vmem [shape: bf16[128,128], index: 1, kind: input, shape index: {}]   ;;  %s283_s0 = inlined_call_operand.vmem [shape: bf16[16,128], index: 0, kind: input, shape index: {}]   ;;  %s284_s2 = inlined_call_operand.vmem [shape: f32[1,128], index: 2, kind: input, shape index: {}]   ;;  %s285_s3 = inlined_call_operand.vmem [shape: bf16[16,128], index: 3, kind: output, shape index: {}]  }
   0x1   :  { %196 = vmatprep.subr.bf16.mxu0 %v227_v0  ;;  %v218_v1 = vld [vmem:[%s282_s1] sm:$0xff]   ;;  %212 = vmatprep.mubr.msk.bf16.mxu0 %vm228_vm0, %v227_v0  ;;  %v219_v2 = vld [vmem:[%s282_s1 + $0x8] sm:$0xff]   ;;  %v220_v3 = vld [vmem:[%s282_s1 + $0x10] sm:$0xff]  }
   0x2   :  { %197 = vmatpush3.bf16.msra.mxu0 %v218_v1  ;;  %v221_v4 = vld [vmem:[%s282_s1 + $0x18] sm:$0xff]   ;;  %v222_v5 = vld [vmem:[%s282_s1 + $0x20] sm:$0xff]   ;;  %v223_v6 = vld [vmem:[%s282_s1 + $0x28] sm:$0xff]  }
   0x3   :  { %198 = vmatprep.subr.bf16.mxu0 %v227_v0  ;;  %v224_v7 = vld [vmem:[%s282_s1 + $0x30] sm:$0xff]   ;;  %v225_v8 = vld [vmem:[%s282_s1 + $0x38] sm:$0xff]   ;;  %v226_v9 = vld [vmem:[%s283_s0] sm:$0xff]  }
   0x4   :  { %v177_v11 = vld [vmem:[%s284_s2] ss:$0 sm:$0xff] }
   0x6   :  { %199 = vmatpush3.bf16.msra.mxu0 %v219_v2 }
   0x7   :  { %200 = vmatprep.subr.bf16.mxu0 %v227_v0 }
   0xa   :  { %201 = vmatpush3.bf16.msra.mxu0 %v220_v3 }
   0xb   :  { %202 = vmatprep.subr.bf16.mxu0 %v227_v0 }
   0xe   :  { %203 = vmatpush3.bf16.msra.mxu0 %v221_v4 }
   0xf   :  { %204 = vmatprep.subr.bf16.mxu0 %v227_v0 }
  0x12   :  { %205 = vmatpush3.bf16.msra.mxu0 %v222_v5 }
  0x13   :  { %206 = vmatprep.subr.bf16.mxu0 %v227_v0 }
  0x16   :  { %207 = vmatpush3.bf16.msra.mxu0 %v223_v6 }
  0x17   :  { %208 = vmatprep.subr.bf16.mxu0 %v227_v0 }
  0x1a   :  { %209 = vmatpush3.bf16.msra.mxu0 %v224_v7 }
  0x1b   :  { %210 = vmatprep.subr.bf16.mxu0 %v227_v0 }
  0x1e   :  { %211 = vmatpush3.bf16.msra.mxu0 %v225_v8 }
  0x21   :  { %213 = vmatmul.mubr.bf16.vlgmr.msra.gmra.mrb[0].mxu0 %v226_v9 }
  0xf4   :  { %v129_v10 = vpop.f32.mrb[0].mxu0 }
  0xf5   :  { %v214_v12 = vpop.f32.mrb[1].mxu0  ;;  %v152_v14 = vadd.f32 %v177_v11, %v129_v10 }
  0xf6   :  { %v132_v13 = vpop.f32.mrb[2].mxu0 }
  0xf7   :  { %v153_v15 = vadd.f32 %v177_v11, %v132_v13  ;;  %v215_v16 = vpop.f32.mrb[3].mxu0 }
  0xf9   :  { %v185_v17 = vpack.c.bf16 %v153_v15, %v152_v14 }
  0xfb   :  { %186 = vst [vmem:[%s285_s3] sm:$0xff] %v185_v17  }

// kernel: transformer_forward.44
= control target key start
LH: loop header
LB: loop body
LE: loop exit
PB: predicated region body
PF: predicated region fallthrough
CT: control target
= control target key end

     0   :  { %v293_v0 = vmov 0.0   ;;  %vm294_vm0 = vmmov 0   ;;  %s372_s1 = inlined_call_operand.vmem [shape: bf16[128,128], index: 1, kind: input, shape index: {}]   ;;  %s373_s0 = inlined_call_operand.vmem [shape: bf16[16,128], index: 0, kind: input, shape index: {}]   ;;  %s374_s3 = inlined_call_operand.vmem [shape: bf16[16,128], index: 3, kind: input, shape index: {}]   ;;  %s375_s2 = inlined_call_operand.vmem [shape: f32[1,128], index: 2, kind: input, shape index: {}]   ;;  %s376_s4 = inlined_call_operand.vmem [shape: f32[1,128], index: 4, kind: input, shape index: {}]   ;;  %s377_s5 = inlined_call_operand.vmem [shape: f32[1,128], index: 5, kind: input, shape index: {}]   ;;  %s378_s6 = inlined_call_operand.vmem [shape: bf16[16,128], index: 6, kind: output, shape index: {}]  }
   0x1   :  { %258 = vmatprep.subr.bf16.mxu0 %v293_v0  ;;  %v280_v1 = vld [vmem:[%s372_s1] sm:$0xff]   ;;  %274 = vmatprep.mubr.msk.bf16.mxu0 %vm294_vm0, %v293_v0  ;;  %v281_v2 = vld [vmem:[%s372_s1 + $0x8] sm:$0xff]   ;;  %v282_v3 = vld [vmem:[%s372_s1 + $0x10] sm:$0xff]  }
   0x2   :  { %259 = vmatpush3.bf16.msra.mxu0 %v280_v1  ;;  %v283_v4 = vld [vmem:[%s372_s1 + $0x18] sm:$0xff]   ;;  %v284_v5 = vld [vmem:[%s372_s1 + $0x20] sm:$0xff]   ;;  %v285_v6 = vld [vmem:[%s372_s1 + $0x28] sm:$0xff]  }
   0x3   :  { %260 = vmatprep.subr.bf16.mxu0 %v293_v0  ;;  %v286_v7 = vld [vmem:[%s372_s1 + $0x30] sm:$0xff]   ;;  %v287_v8 = vld [vmem:[%s372_s1 + $0x38] sm:$0xff]   ;;  %v288_v9 = vld [vmem:[%s373_s0] sm:$0xff]  }
   0x4   :  { %v241_v10 = vld [vmem:[%s374_s3] sm:$0xff]  }
   0x5   :  { %v233_v11 = vld [vmem:[%s375_s2] ss:$0 sm:$0xff]  ;;  %v242_v12 = vunpack.c.l.bf16 %v241_v10  ;;  %v243_v20 = vunpack.c.h.bf16 %v241_v10 }
   0x6   :  { %261 = vmatpush3.bf16.msra.mxu0 %v281_v2  ;;  %v234_v38 = vld [vmem:[%s376_s4] ss:$0 sm:$0xff] }
   0x7   :  { %262 = vmatprep.subr.bf16.mxu0 %v293_v0  ;;  %v235_v42 = vld [vmem:[%s377_s5] ss:$0 sm:$0xff] }
   0xa   :  { %263 = vmatpush3.bf16.msra.mxu0 %v282_v3 }
   0xb   :  { %264 = vmatprep.subr.bf16.mxu0 %v293_v0 }
   0xe   :  { %265 = vmatpush3.bf16.msra.mxu0 %v283_v4 }
   0xf   :  { %266 = vmatprep.subr.bf16.mxu0 %v293_v0 }
  0x12   :  { %267 = vmatpush3.bf16.msra.mxu0 %v284_v5 }
  0x13   :  { %268 = vmatprep.subr.bf16.mxu0 %v293_v0 }
  0x16   :  { %269 = vmatpush3.bf16.msra.mxu0 %v285_v6 }
  0x17   :  { %270 = vmatprep.subr.bf16.mxu0 %v293_v0 }
  0x1a   :  { %271 = vmatpush3.bf16.msra.mxu0 %v286_v7 }
  0x1b   :  { %272 = vmatprep.subr.bf16.mxu0 %v293_v0 }
  0x1e   :  { %273 = vmatpush3.bf16.msra.mxu0 %v287_v8 }
  0x21   :  { %275 = vmatmul.mubr.bf16.vlgmr.msra.gmra.mrb[0].mxu0 %v288_v9 }
  0xf4   :  { %v138_v13 = vpop.f32.mrb[0].mxu0 }
  0xf5   :  { %v161_v14 = vadd.f32 %v233_v11, %v138_v13  ;;  %v276_v15 = vpop.f32.mrb[1].mxu0 }
  0xf6   :  { %v141_v16 = vpop.f32.mrb[2].mxu0 }
  0xf7   :  { %v162_v17 = vadd.f32 %v233_v11, %v141_v16  ;;  %v277_v18 = vpop.f32.mrb[3].mxu0  ;;  %v167_v19 = vadd.f32 %v242_v12, %v161_v14 }
  0xf9   :  { %169 = vadd.xlane.f32.xlu0 %v167_v19  ;;  %v168_v21 = vadd.f32 %v243_v20, %v162_v17 }
  0xfd   :  { %171 = vadd.xlane.f32.xlu0 %v168_v21 }
 0x186   :  { %v170_v22 = vpop.xlane.xlu0 %169 }
 0x187   :  { %v174_v23 = vmul.f32 0.0078125, %v170_v22 }
 0x189   :  { %v176_v24 = vsub.f32 %v167_v19, %v174_v23 }
 0x18a   :  { %v172_v25 = vpop.xlane.xlu0 %171 }
 0x18b   :  { %v175_v26 = vmul.f32 0.0078125, %v172_v25  ;;  %v178_v27 = vmul.f32 %v176_v24, %v176_v24 }
 0x18d   :  { %v177_v28 = vsub.f32 %v168_v21, %v175_v26  ;;  %180 = vadd.xlane.f32.xlu1 %v178_v27 }
 0x18f   :  { %v179_v29 = vmul.f32 %v177_v28, %v177_v28 }
 0x191   :  { %182 = vadd.xlane.f32.xlu1 %v179_v29 }
 0x21a   :  { %v181_v30 = vpop.xlane.xlu1 %180 }
 0x21b   :  { %v184_v31 = vmul.f32 0.0078125, %v181_v30 }
 0x21d   :  { %v186_v32 = vadd.f32 1e-05, %v184_v31 }
 0x21e   :  { %v183_v33 = vpop.xlane.xlu1 %182 }
 0x21f   :  { %289 = vrsqrt.f32 %v186_v32  ;;  %v185_v34 = vmul.f32 0.0078125, %v183_v33 }
 0x221   :  { %v187_v35 = vadd.f32 1e-05, %v185_v34 }
 0x223   :  { %291 = vrsqrt.f32 %v187_v35 }
 0x229   :  { %v290_v36 = vpop.eup %289 }
 0x22a   :  { %v190_v37 = vmul.f32 %v290_v36, %v176_v24 }
 0x22c   :  { %v199_v40 = vmul.f32 %v234_v38, %v190_v37 }
 0x22d   :  { %v292_v39 = vpop.eup %291 }
 0x22e   :  { %v191_v41 = vmul.f32 %v292_v39, %v177_v28  ;;  %v208_v44 = vadd.f32 %v235_v42, %v199_v40 }
 0x230   :  { %v200_v43 = vmul.f32 %v234_v38, %v191_v41 }
 0x232   :  { %v209_v45 = vadd.f32 %v235_v42, %v200_v43 }
 0x234   :  { %v247_v46 = vpack.c.bf16 %v209_v45, %v208_v44 }
 0x236   :  { %248 = vst [vmem:[%s378_s6] sm:$0xff] %v247_v46  }

// kernel: transformer_forward.42
= control target key start
LH: loop header
LB: loop body
LE: loop exit
PB: predicated region body
PF: predicated region fallthrough
CT: control target
= control target key end

     0   :  { %v453_v0 = vmov 0.0   ;;  %vm454_vm0 = vmmov 0   ;;  %v455_v3 = vmov 0   ;;  %v306_v27 = vlaneseq  ;;  %s566_s1 = inlined_call_operand.vmem [shape: bf16[128,384], index: 1, kind: input, shape index: {}]   ;;  %s567_s0 = inlined_call_operand.vmem [shape: bf16[16,128], index: 0, kind: input, shape index: {}]   ;;  %s568_s2 = inlined_call_operand.vmem [shape: f32[1,384], index: 2, kind: input, shape index: {}]   ;;  %s569_s3 = inlined_call_operand.vmem [shape: bf16[16,384], index: 3, kind: output, shape index: {}]  }
   0x1   :  { %397 = vmatprep.subr.bf16.mxu1 %v453_v0  ;;  %v420_v1 = vld [vmem:[%s566_s1 + $0x4] ss:$12 sps:$4 sm:$0xff]   ;;  %413 = vmatprep.mubr.msk.bf16.mxu1 %vm454_vm0, %v453_v0  ;;  %v422_v2 = vld [vmem:[%s566_s1 + $0x8] ss:$12 sps:$4 sm:$0xff]   ;;  %v423_v4 = vld [vmem:[%s566_s1] ss:$12 sps:$4 sm:$0xff]  }
   0x2   :  { %231 = vmatprep.mubr.bf16.mxu0 %v455_v3  ;;  %199 = vmatprep.subr.bf16.mxu0 %v420_v1  ;;  %v424_v5 = vld [vmem:[%s566_s1 + $0x1c] ss:$12 sps:$4 sm:$0xff]   ;;  %v426_v6 = vld [vmem:[%s566_s1 + $0x20] ss:$12 sps:$4 sm:$0xff]   ;;  %v427_v7 = vld [vmem:[%s566_s1 + $0x18] ss:$12 sps:$4 sm:$0xff]  }
   0x3   :  { %398 = vmatpush3.bf16.msra.mxu1 %v422_v2  ;;  %200 = vmatpush1.bf16.msra.mxu0 %v423_v4  ;;  %v428_v8 = vld [vmem:[%s566_s1 + $0x34] ss:$12 sps:$4 sm:$0xff]   ;;  %v430_v9 = vld [vmem:[%s566_s1 + $0x38] ss:$12 sps:$4 sm:$0xff]   ;;  %v431_v10 = vld [vmem:[%s566_s1 + $0x30] ss:$12 sps:$4 sm:$0xff]  }
   0x4   :  { %399 = vmatprep.subr.bf16.mxu1 %v453_v0  ;;  %201 = vmatprep.subr.bf16.mxu0 %v424_v5  ;;  %v432_v11 = vld [vmem:[%s566_s1 + $0x4c] ss:$12 sps:$4 sm:$0xff]   ;;  %v434_v12 = vld [vmem:[%s566_s1 + $0x50] ss:$12 sps:$4 sm:$0xff]   ;;  %v435_v13 = vld [vmem:[%s566_s1 + $0x48] ss:$12 sps:$4 sm:$0xff]  }
   0x5   :  { %v436_v14 = vld [vmem:[%s566_s1 + $0x64] ss:$12 sps:$4 sm:$0xff]   ;;  %v438_v15 = vld [vmem:[%s566_s1 + $0x68] ss:$12 sps:$4 sm:$0xff]   ;;  %v439_v16 = vld [vmem:[%s566_s1 + $0x60] ss:$12 sps:$4 sm:$0xff]  }
   0x6   :  { %v440_v17 = vld [vmem:[%s566_s1 + $0x7c] ss:$12 sps:$4 sm:$0xff]   ;;  %v442_v18 = vld [vmem:[%s566_s1 + $0x80] ss:$12 sps:$4 sm:$0xff]   ;;  %v443_v19 = vld [vmem:[%s566_s1 + $0x78] ss:$12 sps:$4 sm:$0xff]  }
   0x7   :  { %400 = vmatpush3.bf16.msra.mxu1 %v426_v6  ;;  %202 = vmatpush1.bf16.msra.mxu0 %v427_v7  ;;  %v444_v20 = vld [vmem:[%s566_s1 + $0x94] ss:$12 sps:$4 sm:$0xff]   ;;  %v446_v21 = vld [vmem:[%s566_s1 + $0x98] ss:$12 sps:$4 sm:$0xff]   ;;  %v447_v22 = vld [vmem:[%s566_s1 + $0x90] ss:$12 sps:$4 sm:$0xff]  }
   0x8   :  { %401 = vmatprep.subr.bf16.mxu1 %v453_v0  ;;  %203 = vmatprep.subr.bf16.mxu0 %v428_v8  ;;  %v448_v23 = vld [vmem:[%s566_s1 + $0xac] ss:$12 sps:$4 sm:$0xff]   ;;  %v450_v24 = vld [vmem:[%s566_s1 + $0xb0] ss:$12 sps:$4 sm:$0xff]   ;;  %v451_v25 = vld [vmem:[%s566_s1 + $0xa8] ss:$12 sps:$4 sm:$0xff]  }
   0x9   :  { %v452_v26 = vld [vmem:[%s567_s0] sm:$0xff]   ;;  %v307_v28 = vshrl.u32 %v306_v27, 7 }
   0xa   :  { %v304_v30 = vld [vmem:[%s568_s2] sm:$0x7] }
   0xb   :  { %402 = vmatpush3.bf16.msra.mxu1 %v430_v9  ;;  %204 = vmatpush1.bf16.msra.mxu0 %v431_v10  ;;  %v316_v29 = vsub.s32 2, %v307_v28  ;;  %v308_v31 = vsub.s32 0, %v307_v28  ;;  %v312_v32 = vsub.s32 1, %v307_v28 }
   0xc   :  { %403 = vmatprep.subr.bf16.mxu1 %v453_v0  ;;  %205 = vmatprep.subr.bf16.mxu0 %v432_v11 }
   0xd   :  { %v317_v33 = vrot.slane %v304_v30, %v316_v29  ;;  %v309_v34 = vrot.slane %v304_v30, %v308_v31  ;;  %v313_v35 = vrot.slane %v304_v30, %v312_v32 }
   0xf   :  { %404 = vmatpush3.bf16.msra.mxu1 %v434_v12  ;;  %206 = vmatpush1.bf16.msra.mxu0 %v435_v13 }
  0x10   :  { %405 = vmatprep.subr.bf16.mxu1 %v453_v0  ;;  %207 = vmatprep.subr.bf16.mxu0 %v436_v14 }
  0x13   :  { %406 = vmatpush3.bf16.msra.mxu1 %v438_v15  ;;  %208 = vmatpush1.bf16.msra.mxu0 %v439_v16 }
  0x14   :  { %407 = vmatprep.subr.bf16.mxu1 %v453_v0  ;;  %209 = vmatprep.subr.bf16.mxu0 %v440_v17 }
  0x17   :  { %408 = vmatpush3.bf16.msra.mxu1 %v442_v18  ;;  %210 = vmatpush1.bf16.msra.mxu0 %v443_v19 }
  0x18   :  { %409 = vmatprep.subr.bf16.mxu1 %v453_v0  ;;  %211 = vmatprep.subr.bf16.mxu0 %v444_v20 }
  0x1b   :  { %410 = vmatpush3.bf16.msra.mxu1 %v446_v21  ;;  %212 = vmatpush1.bf16.msra.mxu0 %v447_v22 }
  0x1c   :  { %411 = vmatprep.subr.bf16.mxu1 %v453_v0  ;;  %213 = vmatprep.subr.bf16.mxu0 %v448_v23 }
  0x1f   :  { %412 = vmatpush3.bf16.msra.mxu1 %v450_v24  ;;  %214 = vmatpush1.bf16.msra.mxu0 %v451_v25 }
  0x22   :  { %414 = vmatmul.mubr.bf16.vlgmr.msra.gmra.mrb[0].mxu1 %v452_v26  ;;  %232 = vmatmul.mubr.bf16.vlgmr.msra.gmra.mrb[0].mxu0 %v452_v26 }
  0xf5   :  { %v276_v36 = vpop.f32.mrb[0].mxu1  ;;  %v233_v38 = vpop.f32.mrb[0].mxu0 }
  0xf6   :  { %v323_v37 = vadd.f32 %v317_v33, %v276_v36  ;;  %v415_v39 = vpop.f32.mrb[1].mxu1  ;;  %v321_v40 = vadd.f32 %v309_v34, %v233_v38  ;;  %v235_v41 = vpop.f32.mrb[1].mxu0 }
  0xf7   :  { %v279_v42 = vpop.f32.mrb[2].mxu1  ;;  %v322_v44 = vadd.f32 %v313_v35, %v235_v41  ;;  %v237_v46 = vpop.f32.mrb[2].mxu0 }
  0xf8   :  { %v385_v43 = vpack.c.bf16 %v323_v37, %v323_v37  ;;  %v326_v45 = vadd.f32 %v317_v33, %v279_v42  ;;  %v416_v47 = vpop.f32.mrb[3].mxu1  ;;  %v324_v48 = vadd.f32 %v309_v34, %v237_v46  ;;  %v239_v49 = vpop.f32.mrb[3].mxu0 }
  0xf9   :  { %v384_v50 = vpack.c.bf16 %v322_v44, %v321_v40  ;;  %v325_v52 = vadd.f32 %v313_v35, %v239_v49 }
  0xfa   :  { %348 = vst [vmem:[%s569_s3 + $0x8] sm:$0xf] %v385_v43  ;;  %v387_v51 = vpack.c.bf16 %v326_v45, %v326_v45 }
  0xfb   :  { %347 = vst [vmem:[%s569_s3] sm:$0xff] %v384_v50  ;;  %v386_v53 = vpack.c.bf16 %v325_v52, %v324_v48 }
  0xfc   :  { %350 = vst [vmem:[%s569_s3 + $0x14] sm:$0xf] %v387_v51 }
  0xfd   :  { %349 = vst [vmem:[%s569_s3 + $0xc] sm:$0xff] %v386_v53 }

// kernel: transformer_forward.43
= control target key start
LH: loop header
LB: loop body
LE: loop exit
PB: predicated region body
PF: predicated region fallthrough
CT: control target
= control target key end

     0   :  { %s1197_s15 = smov 0   ;;  %s1199_s16 = smov 0   ;;  %s1378_s0 = inlined_call_operand.vmem [shape: bf16[8,8,32], index: 0, kind: input, shape index: {}]   ;;  %s1379_s1 = inlined_call_operand.vmem [shape: bf16[8,8,32], index: 1, kind: input, shape index: {}]   ;;  %s1380_s2 = inlined_call_operand.vmem [shape: bf16[8,8,32], index: 2, kind: input, shape index: {}]   ;;  %s1381_s3 = inlined_call_operand.vmem [shape: f32[8,8], index: 3, kind: input, shape index: {}]   ;;  %s1382_s4 = inlined_call_operand.vmem [shape: bf16[8,8,32], index: 4, kind: output, shape index: {}]  }
   0x1   :  { %s1201_s17 = smov 0  }
   0x2 LB: > { %s26_s18 = sadd.s32 1, %s1162_s16  ;;  %p1007_p0 = scmp.ge.s32.totalorder %s1166_s17, 1  ;;  %s1166_s17 = sphi %s1201_s17, %s14_s17   ;;  %s1162_s16 = sphi %s1199_s16, %s1384_s16   ;;  %s1158_s15 = sphi %s1197_s15, %s1383_s15  }
   0x3   : > { %p28_p1 = scmp.ge.s32.totalorder %s26_s18, 2  ;;  %p216_p2 = scmp.lt.s32.totalorder %s1166_s17, 3 }
   0x5   : > { %s1386_s18 = smov (%p28_p1, %s26_s18), 0  ;;  %p217_p3 = pnand %p1007_p0, %p216_p2 }
   0x6   : > { %s1008_s19 = sshll.u32 (!%p217_p3), %s1158_s15, 2  ;;  %vm310_vm0 = vcmask (!%p217_p3), 261120   ;;  %v1168_v0 = vmov (!%p217_p3), 0.0   ;;  %vm1169_vm1 = vmmov (!%p217_p3), 0   ;;  %vm301_vm2 = vcmask (!%p217_p3), 7168   ;;  %v516_v16 = vld [vmem:[%s1381_s3] sm:$0xff] (!%p217_p3) }
   0x7   : > { %220 = sbr.rel (%p217_p3) target bundleno = 839 (0x347), region = 36  ;;  %1042 = vmatprep.subr.bf16.mxu0 (!%p217_p3), %v1168_v0  ;;  %p263_p4 = scmp.lt.s32.totalorder (!%p217_p3), %s1008_s19, 7  ;;  %311 = vst.msk [vmem:[#allocation4] sm:$0xff] (!%p217_p3), %vm310_vm0, %v1168_v0  ;;  %312 = vst.msk [vmem:[#allocation4 + $0x8] sm:$0xff] (!%p217_p3), %vm310_vm0, %v1168_v0  ;;  %1048 = vmatprep.subr.bf16.mxu1 (!%p217_p3), %v1168_v0  ;;  %v1170_v13 = vmov (!%p217_p3), -inf   ;;  %vm525_vm3 = vcmask (!%p217_p3), 64512  }
   0x8   : > { %313 = vst.msk [vmem:[#allocation4 + $0x10] sm:$0xff] (!%p217_p3), %vm310_vm0, %v1168_v0  ;;  %314 = vst.msk [vmem:[#allocation4 + $0x18] sm:$0xff] (!%p217_p3), %vm310_vm0, %v1168_v0  ;;  %1044 = vmatprep.mubr.msk.bf16.mxu0 (!%p217_p3), %vm1169_vm1, %v1168_v0  ;;  %1050 = vmatprep.mubr.msk.bf16.mxu1 (!%p217_p3), %vm1169_vm1, %v1168_v0  ;;  %v1171_v43 = vmov (!%p217_p3), 0   ;;  %vm650_vm4 = vcmask (!%p217_p3), 1043456   ;;  %vm887_vm5 = vcmask (!%p217_p3), 257024  }
   0x9   : > { %302 = vst.msk [vmem:[#allocation2] sm:$0xff] (!%p217_p3), %vm301_vm2, %v1170_v13  ;;  %303 = vst.msk [vmem:[#allocation2 + $0x8] sm:$0xff] (!%p217_p3), %vm301_vm2, %v1170_v13  ;;  %1118 = vset.pattern.permute.xlu0 (!%p217_p3), %v1171_v43  ;;  %1119 = vset.pattern.permute.xlu1 (!%p217_p3), %v1171_v43 }
   0xa   : > { %304 = vst.msk [vmem:[#allocation2 + $0x10] sm:$0xff] (!%p217_p3), %vm301_vm2, %v1170_v13  ;;  %305 = vst.msk [vmem:[#allocation2 + $0x18] sm:$0xff] (!%p217_p3), %vm301_vm2, %v1170_v13 }
   0xb   : > { %306 = vst.msk [vmem:[#allocation3] sm:$0xff] (!%p217_p3), %vm301_vm2, %v1168_v0  ;;  %307 = vst.msk [vmem:[#allocation3 + $0x8] sm:$0xff] (!%p217_p3), %vm301_vm2, %v1168_v0 }
   0xc   : > { %308 = vst.msk [vmem:[#allocation3 + $0x10] sm:$0xff] (!%p217_p3), %vm301_vm2, %v1168_v0  ;;  %309 = vst.msk [vmem:[#allocation3 + $0x18] sm:$0xff] (!%p217_p3), %vm301_vm2, %v1168_v0 }
   0xe   : > { %s1388_s19 = smov (!%p263_p4, %s1008_s19), 7 }
   0xf   : > { %s1229_s20 = sshll.u32 %s1388_s19, 2 }
  0x10   : > { %s275_s23 = scalar_lea.vmem %s1379_s1, %s1229_s20  ;;  %s266_s26 = scalar_lea.vmem %s1378_s0, %s1229_s20  ;;  %v1284_v44 = vld [vmem:[#allocation2] sm:$0xff]  ;;  %v1289_v47 = vld [vmem:[#allocation2 + $0x8] sm:$0xff] }
  0x11   : > { %v319_v1 = vld [vmem:[%s275_s23] sm:$0xf]  ;;  %v320_v2 = vld [vmem:[%s275_s23 + $0x4] sm:$0xf]  ;;  %v321_v5 = vld [vmem:[%s275_s23 + $0x8] sm:$0xf]  ;;  %s284_s5 = scalar_lea.vmem %s1380_s2, %s1229_s20  ;;  %s294_s8 = scalar_lea.vmem %s1382_s4, %s1229_s20 }
  0x12   : > { %v332_v3 = vsel %vm310_vm0, %v319_v1, 0  ;;  %v378_v4 = vsel %vm310_vm0, %v320_v2, 0  ;;  %v322_v6 = vld [vmem:[%s275_s23 + $0xc] sm:$0xf]  ;;  %v315_v7 = vld [vmem:[%s266_s26] sm:$0xf] }
  0x13   : > { %1043 = vmatpush3.bf16.xpose.msra.mxu0 %v332_v3  ;;  %1049 = vmatpush3.bf16.xpose.msra.mxu1 %v378_v4  ;;  %v316_v8 = vld [vmem:[%s266_s26 + $0x4] sm:$0xf]  ;;  %v424_v9 = vsel %vm310_vm0, %v321_v5, 0  ;;  %v470_v10 = vsel %vm310_vm0, %v322_v6, 0  ;;  %v317_v11 = vld [vmem:[%s266_s26 + $0x8] sm:$0xf] }
  0x14   : > { %1054 = vmatprep.subr.bf16.mxu0 %v1168_v0  ;;  %1060 = vmatprep.subr.bf16.mxu1 %v1168_v0  ;;  %v318_v12 = vld [vmem:[%s266_s26 + $0xc] sm:$0xf]  ;;  %v1299_v51 = vld [vmem:[#allocation2 + $0x10] sm:$0xff]  ;;  %v1309_v55 = vld [vmem:[#allocation2 + $0x18] sm:$0xff] }
  0x15   : > { %v323_v60 = vld [vmem:[%s284_s5] sm:$0xf]  ;;  %v324_v62 = vld [vmem:[%s284_s5 + $0x4] sm:$0xf]  ;;  %v325_v1 = vld [vmem:[%s284_s5 + $0x8] sm:$0xf] }
  0x16   : > { %v652_v61 = vsel %vm650_vm4, %v323_v60, 0  ;;  %v698_v63 = vsel %vm650_vm4, %v324_v62, 0  ;;  %v744_v2 = vsel %vm650_vm4, %v325_v1, 0  ;;  %v326_v3 = vld [vmem:[%s284_s5 + $0xc] sm:$0xf]  ;;  %v588_v43 = vld [vmem:[#allocation3 + $0x10] sm:$0xff] }
  0x17   : > { %v790_v4 = vsel %vm650_vm4, %v326_v3, 0  ;;  %v615_v60 = vld [vmem:[#allocation4] sm:$0xff] }
  0x1a   : > { %1045 = vmatmul.mubr.msk.bf16.vlgmr.msra.gmra.mrb[0].mxu0 %vm310_vm0, %v315_v7  ;;  %1051 = vmatmul.mubr.msk.bf16.vlgmr.msra.gmra.mrb[0].mxu1 %vm310_vm0, %v316_v8 }
  0x1b   : > { %1055 = vmatpush3.bf16.xpose.msra.mxu0 %v424_v9  ;;  %1061 = vmatpush3.bf16.xpose.msra.mxu1 %v470_v10 }
  0x1c   : > { %1056 = vmatprep.mubr.msk.bf16.mxu0 %vm1169_vm1, %v1168_v0  ;;  %1062 = vmatprep.mubr.msk.bf16.mxu1 %vm1169_vm1, %v1168_v0 }
  0x1d   : > { %1066 = vmatprep.subr.bf16.mxu0 %v1168_v0  ;;  %1072 = vmatprep.subr.bf16.mxu1 %v1168_v0 }
  0x22   : > { %1057 = vmatmul.mubr.msk.bf16.vlgmr.msra.gmra.mrb[4].mxu0 %vm310_vm0, %v317_v11  ;;  %1063 = vmatmul.mubr.msk.bf16.vlgmr.msra.gmra.mrb[4].mxu1 %vm310_vm0, %v318_v12 }
  0x23   : > { %1068 = vmatprep.mubr.msk.bf16.mxu0 %vm1169_vm1, %v1168_v0  ;;  %1074 = vmatprep.mubr.msk.bf16.mxu1 %vm1169_vm1, %v1168_v0 }
  0x24   : > { %1067 = vmatpush3.bf16.msra.mxu0 %v652_v61  ;;  %1073 = vmatpush3.bf16.msra.mxu1 %v698_v63  ;;  %v616_v63 = vld [vmem:[#allocation4 + $0x8] sm:$0xff] }
  0x25   : > { %1078 = vmatprep.subr.bf16.mxu0 %v1168_v0  ;;  %1084 = vmatprep.subr.bf16.mxu1 %v1168_v0 }
  0xed   : > { %v368_v14 = vpop.f32.mrb[0].mxu0  ;;  %v414_v15 = vpop.f32.mrb[0].mxu1 }
  0xee   : > { %v512_v17 = vmul.f32 0.17677669, %v368_v14  ;;  %v1046_v18 = vpop.f32.mrb[1].mxu0  ;;  %v513_v19 = vmul.f32 0.17677669, %v414_v15  ;;  %v1052_v20 = vpop.f32.mrb[1].mxu1 }
  0xef   : > { %v371_v21 = vpop.f32.mrb[2].mxu0  ;;  %v417_v22 = vpop.f32.mrb[2].mxu1 }
  0xf0   : > { %v1047_v23 = vpop.f32.mrb[3].mxu0  ;;  %v1053_v24 = vpop.f32.mrb[3].mxu1  ;;  %v1274_v25 = vadd.f32 %v516_v16, %v512_v17  ;;  %v1276_v26 = vadd.f32 %v516_v16, %v513_v19 }
  0xf2   : > { %v526_v27 = vsel %vm525_vm3, %v1274_v25, -inf  ;;  %v529_v28 = vsel %vm525_vm3, %v1276_v26, -inf }
  0xf3   : > { %527 = vmax.xlane.f32.xlu0 %v526_v27 }
  0xf5   : > { %v460_v29 = vpop.f32.mrb[4].mxu0  ;;  %v506_v30 = vpop.f32.mrb[4].mxu1 }
  0xf6   : > { %v514_v31 = vmul.f32 0.17677669, %v460_v29  ;;  %v1058_v32 = vpop.f32.mrb[5].mxu0  ;;  %v515_v33 = vmul.f32 0.17677669, %v506_v30  ;;  %v1064_v34 = vpop.f32.mrb[5].mxu1 }
  0xf7   : > { %530 = vmax.xlane.f32.xlu0 %v529_v28  ;;  %v463_v35 = vpop.f32.mrb[6].mxu0  ;;  %v509_v36 = vpop.f32.mrb[6].mxu1 }
  0xf8   : > { %v1059_v37 = vpop.f32.mrb[7].mxu0  ;;  %v1065_v38 = vpop.f32.mrb[7].mxu1  ;;  %v519_v39 = vadd.f32 %v516_v16, %v514_v31  ;;  %v520_v40 = vadd.f32 %v516_v16, %v515_v33  ;;  %v586_v36 = vld [vmem:[#allocation3] sm:$0xff] }
  0xfa   : > { %v532_v41 = vsel %vm525_vm3, %v519_v39, -inf  ;;  %v535_v42 = vsel %vm525_vm3, %v520_v40, -inf }
  0xfb   : > { %533 = vmax.xlane.f32.xlu1 %v532_v41 }
  0xff   : > { %536 = vmax.xlane.f32.xlu1 %v535_v42 }
 0x180   : > { %v528_v45 = vpop.xlane.xlu0 %527 }
 0x181   : > { %v1287_v46 = vmax.f32 %v1284_v44, %v528_v45 }
 0x183   : > { %v542_v48 = vsub.f32 %v1284_v44, %v1287_v46  ;;  %840 = vst.msk [vmem:[#allocation2] sm:$0xff] %vm301_vm2, %v1287_v46  ;;  %556 = vperm.xlu0 %1118, %v1287_v46  }
 0x184   : > { %v531_v49 = vpop.xlane.xlu0 %530 }
 0x185   : > { %v1297_v50 = vmax.f32 %v1289_v47, %v531_v49 }
 0x187   : > { %v543_v52 = vsub.f32 %v1289_v47, %v1297_v50  ;;  %841 = vst.msk [vmem:[#allocation2 + $0x8] sm:$0xff] %vm301_vm2, %v1297_v50  ;;  %561 = vperm.xlu1 %1119, %v1297_v50   ;;  %v589_v47 = vld [vmem:[#allocation3 + $0x18] sm:$0xff] }
 0x188   : > { %v534_v53 = vpop.xlane.xlu1 %533 }
 0x189   : > { %v1307_v54 = vmax.f32 %v1299_v51, %v534_v53  ;;  %v548_v27 = vmul.f32 1.442695, %v543_v52 }
 0x18b   : > { %v544_v56 = vsub.f32 %v1299_v51, %v1307_v54  ;;  %842 = vst.msk [vmem:[#allocation2 + $0x10] sm:$0xff] %vm301_vm2, %v1307_v54  ;;  %566 = vperm.xlu1 %1119, %v1307_v54  }
 0x18c   : > { %v537_v57 = vpop.xlane.xlu1 %536 }
 0x18d   : > { %v1317_v58 = vmax.f32 %v1309_v55, %v537_v57  ;;  %v550_v30 = vmul.f32 1.442695, %v544_v56 }
 0x18f   : > { %v545_v59 = vsub.f32 %v1309_v55, %v1317_v58  ;;  %843 = vst.msk [vmem:[#allocation2 + $0x18] sm:$0xff] %vm301_vm2, %v1317_v58  ;;  %571 = vperm.xlu1 %1119, %v1317_v58  }
 0x191   : > { %v552_v31 = vmul.f32 1.442695, %v545_v59 }
 0x202   : > { %v557_v5 = vpop.permute.xlu0 %556 }
 0x203   : > { %v574_v6 = vsub.f32 %v1274_v25, %v557_v5 }
 0x205   : > { %v578_v7 = vmul.f32 1.442695, %v574_v6 }
 0x206   : > { %v562_v8 = vpop.permute.xlu1 %561 }
 0x207   : > { %1120 = vpow2.f32 %v578_v7  ;;  %v575_v9 = vsub.f32 %v1276_v26, %v562_v8 }
 0x209   : > { %v580_v10 = vmul.f32 1.442695, %v575_v9  ;;  %v617_v9 = vld [vmem:[#allocation4 + $0x10] sm:$0xff] }
 0x20a   : > { %v567_v11 = vpop.permute.xlu1 %566 }
 0x20b   : > { %1122 = vpow2.f32 %v580_v10  ;;  %v576_v12 = vsub.f32 %v519_v39, %v567_v11  ;;  %v587_v39 = vld [vmem:[#allocation3 + $0x8] sm:$0xff] }
 0x20d   : > { %v582_v13 = vmul.f32 1.442695, %v576_v12 }
 0x20e   : > { %v572_v14 = vpop.permute.xlu1 %571 }
 0x20f   : > { %1124 = vpow2.f32 %v582_v13  ;;  %v577_v15 = vsub.f32 %v520_v40, %v572_v14 }
 0x211   : > { %v1121_v16 = vpop.eup %1120  ;;  %v584_v17 = vmul.f32 1.442695, %v577_v15 }
 0x212   : > { %v594_v18 = vsel %vm525_vm3, %v1121_v16, 0.0  ;;  %v643_v19 = vpack.c.bf16 %v1121_v16, %v1121_v16  ;;  %v618_v16 = vld [vmem:[#allocation4 + $0x18] sm:$0xff] }
 0x213   : > { %1126 = vpow2.f32 %v584_v17  ;;  %595 = vadd.xlane.f32.xlu1 %v594_v18 }
 0x214   : > { %1069 = vmatmul.mubr.msk.bf16.vlgmr.msra.gmra.mrb[8].mxu0 %vm525_vm3, %v643_v19  ;;  %1128 = vpow2.f32 %v548_v27 }
 0x215   : > { %v1123_v20 = vpop.eup %1122  ;;  %1079 = vmatpush3.bf16.msra.mxu0 %v744_v2  ;;  %1080 = vmatprep.mubr.msk.bf16.mxu0 %vm1169_vm1, %v1168_v0 }
 0x216   : > { %v597_v21 = vsel %vm525_vm3, %v1123_v20, 0.0  ;;  %v644_v22 = vpack.c.bf16 %v1123_v20, %v1123_v20 }
 0x217   : > { %598 = vadd.xlane.f32.xlu0 %v597_v21 }
 0x218   : > { %1075 = vmatmul.mubr.msk.bf16.vlgmr.msra.gmra.mrb[8].mxu1 %vm525_vm3, %v644_v22 }
 0x219   : > { %v1125_v23 = vpop.eup %1124  ;;  %1085 = vmatpush3.bf16.msra.mxu1 %v790_v4  ;;  %1086 = vmatprep.mubr.msk.bf16.mxu1 %vm1169_vm1, %v1168_v0  ;;  %v546_v0 = vmul.f32 1.442695, %v542_v48 }
 0x21a   : > { %v600_v24 = vsel %vm525_vm3, %v1125_v23, 0.0  ;;  %v645_v25 = vpack.c.bf16 %v1125_v23, %v1125_v23 }
 0x21b   : > { %601 = vadd.xlane.f32.xlu1 %v600_v24  ;;  %1130 = vpow2.f32 %v546_v0 }
 0x21c   : > { %1081 = vmatmul.mubr.msk.bf16.vlgmr.msra.gmra.mrb[12].mxu0 %vm525_vm3, %v645_v25  ;;  %1132 = vpow2.f32 %v550_v30 }
 0x21d   : > { %v1127_v26 = vpop.eup %1126  ;;  %1134 = vpow2.f32 %v552_v31 }
 0x21e   : > { %v603_v28 = vsel %vm525_vm3, %v1127_v26, 0.0  ;;  %v646_v29 = vpack.c.bf16 %v1127_v26, %v1127_v26  ;;  %v1129_v32 = vpop.eup %1128 }
 0x21f   : > { %604 = vadd.xlane.f32.xlu1 %v603_v28  ;;  %v591_v41 = vmul.f32 %v1129_v32, %v587_v39 }
 0x220   : > { %1087 = vmatmul.mubr.msk.bf16.vlgmr.msra.gmra.mrb[12].mxu1 %vm525_vm3, %v646_v29 }
 0x225   : > { %v1131_v33 = vpop.eup %1130 }
 0x226   : > { %v1133_v34 = vpop.eup %1132  ;;  %v590_v37 = vmul.f32 %v1131_v33, %v586_v36 }
 0x227   : > { %v1135_v35 = vpop.eup %1134  ;;  %v592_v45 = vmul.f32 %v1133_v34, %v588_v43 }
 0x228   : > { %v593_v50 = vmul.f32 %v1135_v35, %v589_v47 }
 0x22d   : > { %626 = vperm.xlu0 %1118, %v1129_v32  }
 0x230   : > { %621 = vperm.xlu1 %1119, %v1131_v33  }
 0x234   : > { %631 = vperm.xlu1 %1119, %v1133_v34  }
 0x238   : > { %636 = vperm.xlu1 %1119, %v1135_v35  }
 0x2a0   : > { %v596_v38 = vpop.xlane.xlu1 %595 }
 0x2a1   : > { %v606_v40 = vadd.f32 %v596_v38, %v590_v37 }
 0x2a3   : > { %611 = vst.msk [vmem:[#allocation3] sm:$0xff] %vm301_vm2, %v606_v40 }
 0x2a4   : > { %v599_v42 = vpop.xlane.xlu0 %598 }
 0x2a5   : > { %v607_v44 = vadd.f32 %v599_v42, %v591_v41 }
 0x2a7   : > { %612 = vst.msk [vmem:[#allocation3 + $0x8] sm:$0xff] %vm301_vm2, %v607_v44 }
 0x2a8   : > { %v602_v46 = vpop.xlane.xlu1 %601 }
 0x2a9   : > { %v608_v48 = vadd.f32 %v602_v46, %v592_v45 }
 0x2aa   : > { %v847_v49 = vld [vmem:[#allocation3] sm:$0xff] }
 0x2ab   : > { %613 = vst.msk [vmem:[#allocation3 + $0x10] sm:$0xff] %vm301_vm2, %v608_v48  ;;  %1136 = vrcp.f32 %v847_v49 }
 0x2ac   : > { %v605_v51 = vpop.xlane.xlu1 %604  ;;  %v627_v1 = vpop.permute.xlu0 %626 }
 0x2ad   : > { %v609_v52 = vadd.f32 %v605_v51, %v593_v50  ;;  %v640_v7 = vmul.f32 %v627_v1, %v616_v63 }
 0x2ae   : > { %v848_v53 = vld [vmem:[#allocation3 + $0x8] sm:$0xff] }
 0x2af   : > { %614 = vst.msk [vmem:[#allocation3 + $0x18] sm:$0xff] %vm301_vm2, %v609_v52  ;;  %1138 = vrcp.f32 %v848_v53 }
 0x2b0   : > { %v622_v61 = vpop.permute.xlu1 %621 }
 0x2b1   : > { %v639_v62 = vmul.f32 %v622_v61, %v615_v60 }
 0x2b2   : > { %v849_v54 = vld [vmem:[#allocation3 + $0x10] sm:$0xff] }
 0x2b3   : > { %1140 = vrcp.f32 %v849_v54 }
 0x2b4   : > { %v632_v5 = vpop.permute.xlu1 %631 }
 0x2b5   : > { %v1137_v55 = vpop.eup %1136  ;;  %v641_v14 = vmul.f32 %v632_v5, %v617_v9 }
 0x2b6   : > { %861 = vperm.xlu1 %1119, %v1137_v55   ;;  %v850_v56 = vld [vmem:[#allocation3 + $0x18] sm:$0xff] }
 0x2b7   : > { %1142 = vrcp.f32 %v850_v56 }
 0x2b8   : > { %v637_v17 = vpop.permute.xlu1 %636 }
 0x2b9   : > { %v1139_v57 = vpop.eup %1138  ;;  %v642_v22 = vmul.f32 %v637_v17, %v618_v16 }
 0x2ba   : > { %866 = vperm.xlu0 %1118, %v1139_v57  }
 0x2bd   : > { %v1141_v58 = vpop.eup %1140 }
 0x2be   : > { %871 = vperm.xlu1 %1119, %v1141_v58  }
 0x2c1   : > { %v1143_v59 = vpop.eup %1142 }
 0x2c2   : > { %876 = vperm.xlu0 %1118, %v1143_v59  }
 0x2e7   : > { %v688_v2 = vpop.f32.mrb[8].mxu0 }
 0x2e8   : > { %v832_v3 = vadd.f32 %v688_v2, %v639_v62  ;;  %v1070_v4 = vpop.f32.mrb[9].mxu0 }
 0x2e9   : > { %v691_v6 = vpop.f32.mrb[10].mxu0 }
 0x2ea   : > { %836 = vst.msk [vmem:[#allocation4] sm:$0xff] %vm310_vm0, %v832_v3  ;;  %v1071_v8 = vpop.f32.mrb[11].mxu0 }
 0x2eb   : > { %v734_v10 = vpop.f32.mrb[8].mxu1 }
 0x2ec   : > { %v833_v11 = vadd.f32 %v734_v10, %v640_v7  ;;  %v1076_v12 = vpop.f32.mrb[9].mxu1 }
 0x2ed   : > { %v737_v13 = vpop.f32.mrb[10].mxu1 }
 0x2ee   : > { %837 = vst.msk [vmem:[#allocation4 + $0x8] sm:$0xff] %vm310_vm0, %v833_v11  ;;  %v1077_v15 = vpop.f32.mrb[11].mxu1 }
 0x2ef   : > { %v780_v18 = vpop.f32.mrb[12].mxu0 }
 0x2f0   : > { %v834_v19 = vadd.f32 %v780_v18, %v641_v14  ;;  %v1082_v20 = vpop.f32.mrb[13].mxu0 }
 0x2f1   : > { %v783_v21 = vpop.f32.mrb[14].mxu0  ;;  %v855_v0 = vld [vmem:[#allocation4] sm:$0xff] }
 0x2f2   : > { %838 = vst.msk [vmem:[#allocation4 + $0x10] sm:$0xff] %vm310_vm0, %v834_v19  ;;  %v1083_v23 = vpop.f32.mrb[15].mxu0 }
 0x2f3   : > { %v826_v24 = vpop.f32.mrb[12].mxu1 }
 0x2f4   : > { %v835_v25 = vadd.f32 %v826_v24, %v642_v22  ;;  %v1088_v26 = vpop.f32.mrb[13].mxu1 }
 0x2f5   : > { %v829_v27 = vpop.f32.mrb[14].mxu1  ;;  %v856_v32 = vld [vmem:[#allocation4 + $0x8] sm:$0xff] }
 0x2f6   : > { %839 = vst.msk [vmem:[#allocation4 + $0x18] sm:$0xff] %vm310_vm0, %v835_v25  ;;  %v1089_v28 = vpop.f32.mrb[15].mxu1 }
 0x2f9   : > { %v857_v37 = vld [vmem:[#allocation4 + $0x10] sm:$0xff] }
 0x2fd   : > { %v858_v41 = vld [vmem:[#allocation4 + $0x18] sm:$0xff] }
 0x335   : > { %v862_v29 = vpop.permute.xlu1 %861 }
 0x336   : > { %v879_v30 = vmul.f32 %v862_v29, %v855_v0 }
 0x338   : > { %v883_v31 = vpack.c.bf16 %v879_v30, %v879_v30 }
 0x339   : > { %v867_v33 = vpop.permute.xlu0 %866 }
 0x33a   : > { %888 = vst.msk [vmem:[%s294_s8] sm:$0xf] %vm887_vm5, %v883_v31  ;;  %v880_v34 = vmul.f32 %v867_v33, %v856_v32 }
 0x33c   : > { %v884_v35 = vpack.c.bf16 %v880_v34, %v880_v34 }
 0x33d   : > { %v872_v36 = vpop.permute.xlu1 %871 }
 0x33e   : > { %889 = vst.msk [vmem:[%s294_s8 + $0x4] sm:$0xf] %vm887_vm5, %v884_v35  ;;  %v881_v38 = vmul.f32 %v872_v36, %v857_v37 }
 0x340   : > { %v885_v39 = vpack.c.bf16 %v881_v38, %v881_v38 }
 0x341   : > { %v877_v40 = vpop.permute.xlu0 %876 }
 0x342   : > { %890 = vst.msk [vmem:[%s294_s8 + $0x8] sm:$0xf] %vm887_vm5, %v885_v39  ;;  %v882_v42 = vmul.f32 %v877_v40, %v858_v41 }
 0x344   : > { %v886_v43 = vpack.c.bf16 %v882_v42, %v882_v42 }
 0x346   : > { %891 = vst.msk [vmem:[%s294_s8 + $0xc] sm:$0xf] %vm887_vm5, %v886_v43 }
 0x347 PF: > { %s14_s17 = sadd.s32 1, %s1166_s17   ;;  %s1383_s15 = smov %s1162_s16 }
 0x348   : > { %p11_p5 = scmp.ge.s32.totalorder %s14_s17, 4   ;;  %s1384_s16 = smov %s1386_s18 }
 0x34a   :  { %13 = sbr.rel (!%p11_p5) target bundleno = 2 (0x2), region = 83 }

// kernel: transformer_forward.34
= control target key start
LH: loop header
LB: loop body
LE: loop exit
PB: predicated region body
PF: predicated region fallthrough
CT: control target
= control target key end

     0   :  { %v274_v1 = vmov 0   ;;  %v191_v18 = vlaneseq  ;;  %s355_s1 = inlined_call_operand.vmem [shape: bf16[128,256], index: 1, kind: input, shape index: {}]   ;;  %s356_s0 = inlined_call_operand.vmem [shape: bf16[16,128], index: 0, kind: input, shape index: {}]   ;;  %s357_s2 = inlined_call_operand.vmem [shape: f32[1,256], index: 2, kind: input, shape index: {}]   ;;  %s358_s3 = inlined_call_operand.vmem [shape: bf16[16,256], index: 3, kind: output, shape index: {}]  }
   0x1   :  { %v249_v0 = vld [vmem:[%s355_s1 + $0x4] ss:$8 sps:$4 sm:$0xff]   ;;  %163 = vmatprep.mubr.bf16.mxu0 %v274_v1  ;;  %v251_v2 = vld [vmem:[%s355_s1] ss:$8 sps:$4 sm:$0xff]   ;;  %v252_v3 = vld [vmem:[%s355_s1 + $0x14] ss:$8 sps:$4 sm:$0xff]  }
   0x2   :  { %131 = vmatprep.subr.bf16.mxu0 %v249_v0  ;;  %v254_v4 = vld [vmem:[%s355_s1 + $0x10] ss:$8 sps:$4 sm:$0xff]   ;;  %v255_v5 = vld [vmem:[%s355_s1 + $0x24] ss:$8 sps:$4 sm:$0xff]   ;;  %v257_v6 = vld [vmem:[%s355_s1 + $0x20] ss:$8 sps:$4 sm:$0xff]  }
   0x3   :  { %132 = vmatpush1.bf16.msra.mxu0 %v251_v2  ;;  %v258_v7 = vld [vmem:[%s355_s1 + $0x34] ss:$8 sps:$4 sm:$0xff]   ;;  %v260_v8 = vld [vmem:[%s355_s1 + $0x30] ss:$8 sps:$4 sm:$0xff]   ;;  %v261_v9 = vld [vmem:[%s355_s1 + $0x44] ss:$8 sps:$4 sm:$0xff]  }
   0x4   :  { %133 = vmatprep.subr.bf16.mxu0 %v252_v3  ;;  %v263_v10 = vld [vmem:[%s355_s1 + $0x40] ss:$8 sps:$4 sm:$0xff]   ;;  %v264_v11 = vld [vmem:[%s355_s1 + $0x54] ss:$8 sps:$4 sm:$0xff]   ;;  %v266_v12 = vld [vmem:[%s355_s1 + $0x50] ss:$8 sps:$4 sm:$0xff]  }
   0x5   :  { %v267_v13 = vld [vmem:[%s355_s1 + $0x64] ss:$8 sps:$4 sm:$0xff]   ;;  %v269_v14 = vld [vmem:[%s355_s1 + $0x60] ss:$8 sps:$4 sm:$0xff]   ;;  %v270_v15 = vld [vmem:[%s355_s1 + $0x74] ss:$8 sps:$4 sm:$0xff]  }
   0x6   :  { %v272_v16 = vld [vmem:[%s355_s1 + $0x70] ss:$8 sps:$4 sm:$0xff]   ;;  %v273_v17 = vld [vmem:[%s356_s0] sm:$0xff]   ;;  %v192_v19 = vshrl.u32 %v191_v18, 7 }
   0x7   :  { %134 = vmatpush1.bf16.msra.mxu0 %v254_v4  ;;  %v189_v21 = vld [vmem:[%s357_s2] sm:$0x3] }
   0x8   :  { %135 = vmatprep.subr.bf16.mxu0 %v255_v5  ;;  %v193_v20 = vsub.s32 0, %v192_v19  ;;  %v197_v22 = vsub.s32 1, %v192_v19 }
   0xa   :  { %v194_v23 = vrot.slane %v189_v21, %v193_v20  ;;  %v198_v24 = vrot.slane %v189_v21, %v197_v22 }
   0xb   :  { %136 = vmatpush1.bf16.msra.mxu0 %v257_v6 }
   0xc   :  { %137 = vmatprep.subr.bf16.mxu0 %v258_v7 }
   0xf   :  { %138 = vmatpush1.bf16.msra.mxu0 %v260_v8 }
  0x10   :  { %139 = vmatprep.subr.bf16.mxu0 %v261_v9 }
  0x13   :  { %140 = vmatpush1.bf16.msra.mxu0 %v263_v10 }
  0x14   :  { %141 = vmatprep.subr.bf16.mxu0 %v264_v11 }
  0x17   :  { %142 = vmatpush1.bf16.msra.mxu0 %v266_v12 }
  0x18   :  { %143 = vmatprep.subr.bf16.mxu0 %v267_v13 }
  0x1b   :  { %144 = vmatpush1.bf16.msra.mxu0 %v269_v14 }
  0x1c   :  { %145 = vmatprep.subr.bf16.mxu0 %v270_v15 }
  0x1f   :  { %146 = vmatpush1.bf16.msra.mxu0 %v272_v16 }
  0x22   :  { %164 = vmatmul.mubr.bf16.vlgmr.msra.gmra.mrb[0].mxu0 %v273_v17 }
  0xf5   :  { %v165_v25 = vpop.f32.mrb[0].mxu0 }
  0xf6   :  { %v201_v26 = vadd.f32 %v194_v23, %v165_v25  ;;  %v167_v27 = vpop.f32.mrb[1].mxu0 }
  0xf7   :  { %v202_v28 = vadd.f32 %v198_v24, %v167_v27  ;;  %v169_v29 = vpop.f32.mrb[2].mxu0 }
  0xf8   :  { %v205_v30 = vmax.f32 %v201_v26, 0.0  ;;  %v203_v31 = vadd.f32 %v194_v23, %v169_v29  ;;  %v171_v32 = vpop.f32.mrb[3].mxu0 }
  0xf9   :  { %v206_v33 = vmax.f32 %v202_v28, 0.0  ;;  %v204_v34 = vadd.f32 %v198_v24, %v171_v32 }
  0xfa   :  { %v207_v35 = vmax.f32 %v203_v31, 0.0 }
  0xfb   :  { %v246_v36 = vpack.c.bf16 %v206_v33, %v205_v30  ;;  %v208_v37 = vmax.f32 %v204_v34, 0.0 }
  0xfd   :  { %221 = vst [vmem:[%s358_s3] sm:$0xff] %v246_v36  ;;  %v247_v38 = vpack.c.bf16 %v208_v37, %v207_v35 }
  0xff   :  { %222 = vst [vmem:[%s358_s3 + $0x8] sm:$0xff] %v247_v38 }

// kernel: transformer_forward.32
= control target key start
LH: loop header
LB: loop body
LE: loop exit
PB: predicated region body
PF: predicated region fallthrough
CT: control target
= control target key end

     0   :  { %s1127_s12 = smov 0   ;;  %s1129_s13 = smov 0   ;;  %s1313_s0 = inlined_call_operand.vmem [shape: bf16[8,8,32], index: 0, kind: input, shape index: {}]   ;;  %s1314_s1 = inlined_call_operand.vmem [shape: bf16[8,8,32], index: 1, kind: input, shape index: {}]   ;;  %s1315_s2 = inlined_call_operand.vmem [shape: bf16[8,8,32], index: 2, kind: input, shape index: {}]   ;;  %s1316_s3 = inlined_call_operand.vmem [shape: bf16[8,8,32], index: 3, kind: output, shape index: {}]  }
   0x1   :  { %s1131_s14 = smov 0  }
   0x2 LB: > { %s25_s15 = sadd.s32 1, %s1097_s13  ;;  %p942_p0 = scmp.ge.s32.totalorder %s1101_s14, 1  ;;  %s1101_s14 = sphi %s1131_s14, %s13_s14   ;;  %s1097_s13 = sphi %s1129_s13, %s1318_s13   ;;  %s1093_s12 = sphi %s1127_s12, %s1317_s12  }
   0x3   : > { %p27_p1 = scmp.ge.s32.totalorder %s25_s15, 2  ;;  %p182_p2 = scmp.lt.s32.totalorder %s1101_s14, 3 }
   0x5   : > { %s1320_s15 = smov (%p27_p1, %s25_s15), 0  ;;  %p183_p3 = pnand %p942_p0, %p182_p2 }
   0x6   : > { %s943_s16 = sshll.u32 (!%p183_p3), %s1093_s12, 2  ;;  %vm266_vm0 = vcmask (!%p183_p3), 261120   ;;  %v1103_v0 = vmov (!%p183_p3), 0.0   ;;  %vm1104_vm1 = vmmov (!%p183_p3), 0   ;;  %vm257_vm2 = vcmask (!%p183_p3), 7168  }
   0x7   : > { %186 = sbr.rel (%p183_p3) target bundleno = 837 (0x345), region = 32  ;;  %977 = vmatprep.subr.bf16.mxu0 (!%p183_p3), %v1103_v0  ;;  %p223_p4 = scmp.lt.s32.totalorder (!%p183_p3), %s943_s16, 7  ;;  %267 = vst.msk [vmem:[#allocation4] sm:$0xff] (!%p183_p3), %vm266_vm0, %v1103_v0  ;;  %268 = vst.msk [vmem:[#allocation4 + $0x8] sm:$0xff] (!%p183_p3), %vm266_vm0, %v1103_v0  ;;  %983 = vmatprep.subr.bf16.mxu1 (!%p183_p3), %v1103_v0  ;;  %v1105_v13 = vmov (!%p183_p3), -inf   ;;  %vm476_vm3 = vcmask (!%p183_p3), 64512  }
   0x8   : > { %269 = vst.msk [vmem:[#allocation4 + $0x10] sm:$0xff] (!%p183_p3), %vm266_vm0, %v1103_v0  ;;  %270 = vst.msk [vmem:[#allocation4 + $0x18] sm:$0xff] (!%p183_p3), %vm266_vm0, %v1103_v0  ;;  %979 = vmatprep.mubr.msk.bf16.mxu0 (!%p183_p3), %vm1104_vm1, %v1103_v0  ;;  %985 = vmatprep.mubr.msk.bf16.mxu1 (!%p183_p3), %vm1104_vm1, %v1103_v0  ;;  %v1106_v38 = vmov (!%p183_p3), 0   ;;  %vm601_vm4 = vcmask (!%p183_p3), 1043456   ;;  %vm838_vm5 = vcmask (!%p183_p3), 257024  }
   0x9   : > { %258 = vst.msk [vmem:[#allocation2] sm:$0xff] (!%p183_p3), %vm257_vm2, %v1105_v13  ;;  %259 = vst.msk [vmem:[#allocation2 + $0x8] sm:$0xff] (!%p183_p3), %vm257_vm2, %v1105_v13  ;;  %1053 = vset.pattern.permute.xlu0 (!%p183_p3), %v1106_v38  ;;  %1054 = vset.pattern.permute.xlu1 (!%p183_p3), %v1106_v38 }
   0xa   : > { %260 = vst.msk [vmem:[#allocation2 + $0x10] sm:$0xff] (!%p183_p3), %vm257_vm2, %v1105_v13  ;;  %261 = vst.msk [vmem:[#allocation2 + $0x18] sm:$0xff] (!%p183_p3), %vm257_vm2, %v1105_v13 }
   0xb   : > { %262 = vst.msk [vmem:[#allocation3] sm:$0xff] (!%p183_p3), %vm257_vm2, %v1103_v0  ;;  %263 = vst.msk [vmem:[#allocation3 + $0x8] sm:$0xff] (!%p183_p3), %vm257_vm2, %v1103_v0 }
   0xc   : > { %264 = vst.msk [vmem:[#allocation3 + $0x10] sm:$0xff] (!%p183_p3), %vm257_vm2, %v1103_v0  ;;  %265 = vst.msk [vmem:[#allocation3 + $0x18] sm:$0xff] (!%p183_p3), %vm257_vm2, %v1103_v0 }
   0xe   : > { %s1322_s16 = smov (!%p223_p4, %s943_s16), 7 }
   0xf   : > { %s1159_s17 = sshll.u32 %s1322_s16, 2 }
  0x10   : > { %s235_s20 = scalar_lea.vmem %s1314_s1, %s1159_s17  ;;  %s226_s23 = scalar_lea.vmem %s1313_s0, %s1159_s17  ;;  %v1217_v39 = vld [vmem:[#allocation2] sm:$0xff]  ;;  %v1222_v42 = vld [vmem:[#allocation2 + $0x8] sm:$0xff] }
  0x11   : > { %v275_v1 = vld [vmem:[%s235_s20] sm:$0xf]  ;;  %v276_v2 = vld [vmem:[%s235_s20 + $0x4] sm:$0xf]  ;;  %v277_v5 = vld [vmem:[%s235_s20 + $0x8] sm:$0xf]  ;;  %s244_s26 = scalar_lea.vmem %s1315_s2, %s1159_s17  ;;  %s250_s29 = scalar_lea.vmem %s1316_s3, %s1159_s17 }
  0x12   : > { %v288_v3 = vsel %vm266_vm0, %v275_v1, 0  ;;  %v334_v4 = vsel %vm266_vm0, %v276_v2, 0  ;;  %v278_v6 = vld [vmem:[%s235_s20 + $0xc] sm:$0xf]  ;;  %v271_v7 = vld [vmem:[%s226_s23] sm:$0xf] }
  0x13   : > { %978 = vmatpush3.bf16.xpose.msra.mxu0 %v288_v3  ;;  %984 = vmatpush3.bf16.xpose.msra.mxu1 %v334_v4  ;;  %v272_v8 = vld [vmem:[%s226_s23 + $0x4] sm:$0xf]  ;;  %v380_v9 = vsel %vm266_vm0, %v277_v5, 0  ;;  %v426_v10 = vsel %vm266_vm0, %v278_v6, 0  ;;  %v273_v11 = vld [vmem:[%s226_s23 + $0x8] sm:$0xf] }
  0x14   : > { %989 = vmatprep.subr.bf16.mxu0 %v1103_v0  ;;  %995 = vmatprep.subr.bf16.mxu1 %v1103_v0  ;;  %v274_v12 = vld [vmem:[%s226_s23 + $0xc] sm:$0xf]  ;;  %v1232_v46 = vld [vmem:[#allocation2 + $0x10] sm:$0xff]  ;;  %v1242_v50 = vld [vmem:[#allocation2 + $0x18] sm:$0xff] }
  0x15   : > { %v279_v55 = vld [vmem:[%s244_s26] sm:$0xf]  ;;  %v280_v57 = vld [vmem:[%s244_s26 + $0x4] sm:$0xf]  ;;  %v281_v59 = vld [vmem:[%s244_s26 + $0x8] sm:$0xf] }
  0x16   : > { %v603_v56 = vsel %vm601_vm4, %v279_v55, 0  ;;  %v649_v58 = vsel %vm601_vm4, %v280_v57, 0  ;;  %v695_v60 = vsel %vm601_vm4, %v281_v59, 0  ;;  %v282_v61 = vld [vmem:[%s244_s26 + $0xc] sm:$0xf]  ;;  %v539_v38 = vld [vmem:[#allocation3 + $0x10] sm:$0xff] }
  0x17   : > { %v741_v62 = vsel %vm601_vm4, %v282_v61, 0  ;;  %v566_v55 = vld [vmem:[#allocation4] sm:$0xff] }
  0x1a   : > { %980 = vmatmul.mubr.msk.bf16.vlgmr.msra.gmra.mrb[0].mxu0 %vm266_vm0, %v271_v7  ;;  %986 = vmatmul.mubr.msk.bf16.vlgmr.msra.gmra.mrb[0].mxu1 %vm266_vm0, %v272_v8 }
  0x1b   : > { %990 = vmatpush3.bf16.xpose.msra.mxu0 %v380_v9  ;;  %996 = vmatpush3.bf16.xpose.msra.mxu1 %v426_v10 }
  0x1c   : > { %991 = vmatprep.mubr.msk.bf16.mxu0 %vm1104_vm1, %v1103_v0  ;;  %997 = vmatprep.mubr.msk.bf16.mxu1 %vm1104_vm1, %v1103_v0 }
  0x1d   : > { %1001 = vmatprep.subr.bf16.mxu0 %v1103_v0  ;;  %1007 = vmatprep.subr.bf16.mxu1 %v1103_v0 }
  0x22   : > { %992 = vmatmul.mubr.msk.bf16.vlgmr.msra.gmra.mrb[4].mxu0 %vm266_vm0, %v273_v11  ;;  %998 = vmatmul.mubr.msk.bf16.vlgmr.msra.gmra.mrb[4].mxu1 %vm266_vm0, %v274_v12 }
  0x23   : > { %1003 = vmatprep.mubr.msk.bf16.mxu0 %vm1104_vm1, %v1103_v0  ;;  %1009 = vmatprep.mubr.msk.bf16.mxu1 %vm1104_vm1, %v1103_v0 }
  0x24   : > { %1002 = vmatpush3.bf16.msra.mxu0 %v603_v56  ;;  %1008 = vmatpush3.bf16.msra.mxu1 %v649_v58  ;;  %v567_v58 = vld [vmem:[#allocation4 + $0x8] sm:$0xff] }
  0x25   : > { %1013 = vmatprep.subr.bf16.mxu0 %v1103_v0  ;;  %1019 = vmatprep.subr.bf16.mxu1 %v1103_v0 }
  0xed   : > { %v324_v14 = vpop.f32.mrb[0].mxu0  ;;  %v370_v15 = vpop.f32.mrb[0].mxu1 }
  0xee   : > { %v1201_v16 = vmul.f32 0.17677669, %v324_v14  ;;  %v981_v17 = vpop.f32.mrb[1].mxu0  ;;  %v1203_v18 = vmul.f32 0.17677669, %v370_v15  ;;  %v987_v19 = vpop.f32.mrb[1].mxu1 }
  0xef   : > { %v327_v20 = vpop.f32.mrb[2].mxu0  ;;  %v373_v21 = vpop.f32.mrb[2].mxu1 }
  0xf0   : > { %v982_v22 = vpop.f32.mrb[3].mxu0  ;;  %v477_v23 = vsel %vm476_vm3, %v1201_v16, -inf  ;;  %v988_v24 = vpop.f32.mrb[3].mxu1  ;;  %v480_v25 = vsel %vm476_vm3, %v1203_v18, -inf }
  0xf1   : > { %478 = vmax.xlane.f32.xlu0 %v477_v23 }
  0xf5   : > { %481 = vmax.xlane.f32.xlu0 %v480_v25  ;;  %v416_v26 = vpop.f32.mrb[4].mxu0  ;;  %v462_v27 = vpop.f32.mrb[4].mxu1 }
  0xf6   : > { %v1209_v28 = vmul.f32 0.17677669, %v416_v26  ;;  %v993_v29 = vpop.f32.mrb[5].mxu0  ;;  %v1211_v30 = vmul.f32 0.17677669, %v462_v27  ;;  %v999_v31 = vpop.f32.mrb[5].mxu1 }
  0xf7   : > { %v419_v32 = vpop.f32.mrb[6].mxu0  ;;  %v465_v33 = vpop.f32.mrb[6].mxu1  ;;  %v537_v31 = vld [vmem:[#allocation3] sm:$0xff] }
  0xf8   : > { %v994_v34 = vpop.f32.mrb[7].mxu0  ;;  %v483_v35 = vsel %vm476_vm3, %v1209_v28, -inf  ;;  %v1000_v36 = vpop.f32.mrb[7].mxu1  ;;  %v486_v37 = vsel %vm476_vm3, %v1211_v30, -inf }
  0xf9   : > { %484 = vmax.xlane.f32.xlu1 %v483_v35  ;;  %v538_v34 = vld [vmem:[#allocation3 + $0x8] sm:$0xff] }
  0xfd   : > { %487 = vmax.xlane.f32.xlu1 %v486_v37 }
 0x17e   : > { %v479_v40 = vpop.xlane.xlu0 %478 }
 0x17f   : > { %v1220_v41 = vmax.f32 %v1217_v39, %v479_v40 }
 0x181   : > { %v493_v43 = vsub.f32 %v1217_v39, %v1220_v41  ;;  %791 = vst.msk [vmem:[#allocation2] sm:$0xff] %vm257_vm2, %v1220_v41  ;;  %507 = vperm.xlu0 %1053, %v1220_v41  }
 0x182   : > { %v482_v44 = vpop.xlane.xlu0 %481 }
 0x183   : > { %v1230_v45 = vmax.f32 %v1222_v42, %v482_v44 }
 0x185   : > { %v494_v47 = vsub.f32 %v1222_v42, %v1230_v45  ;;  %792 = vst.msk [vmem:[#allocation2 + $0x8] sm:$0xff] %vm257_vm2, %v1230_v45  ;;  %512 = vperm.xlu1 %1054, %v1230_v45   ;;  %v540_v42 = vld [vmem:[#allocation3 + $0x18] sm:$0xff] }
 0x186   : > { %v485_v48 = vpop.xlane.xlu1 %484 }
 0x187   : > { %v1240_v49 = vmax.f32 %v1232_v46, %v485_v48  ;;  %v499_v22 = vmul.f32 1.442695, %v494_v47 }
 0x189   : > { %v495_v51 = vsub.f32 %v1232_v46, %v1240_v49  ;;  %793 = vst.msk [vmem:[#allocation2 + $0x10] sm:$0xff] %vm257_vm2, %v1240_v49  ;;  %517 = vperm.xlu1 %1054, %v1240_v49  }
 0x18a   : > { %v488_v52 = vpop.xlane.xlu1 %487 }
 0x18b   : > { %v1250_v53 = vmax.f32 %v1242_v50, %v488_v52  ;;  %v501_v25 = vmul.f32 1.442695, %v495_v51 }
 0x18d   : > { %v496_v54 = vsub.f32 %v1242_v50, %v1250_v53  ;;  %794 = vst.msk [vmem:[#allocation2 + $0x18] sm:$0xff] %vm257_vm2, %v1250_v53  ;;  %522 = vperm.xlu1 %1054, %v1250_v53  }
 0x18f   : > { %v503_v26 = vmul.f32 1.442695, %v496_v54 }
 0x200   : > { %v508_v63 = vpop.permute.xlu0 %507 }
 0x201   : > { %v525_v1 = vsub.f32 %v1201_v16, %v508_v63 }
 0x203   : > { %v529_v2 = vmul.f32 1.442695, %v525_v1 }
 0x204   : > { %v513_v3 = vpop.permute.xlu1 %512 }
 0x205   : > { %1055 = vpow2.f32 %v529_v2  ;;  %v526_v4 = vsub.f32 %v1203_v18, %v513_v3 }
 0x207   : > { %v531_v5 = vmul.f32 1.442695, %v526_v4  ;;  %v568_v4 = vld [vmem:[#allocation4 + $0x10] sm:$0xff] }
 0x208   : > { %v518_v6 = vpop.permute.xlu1 %517 }
 0x209   : > { %1057 = vpow2.f32 %v531_v5  ;;  %v527_v7 = vsub.f32 %v1209_v28, %v518_v6 }
 0x20b   : > { %v533_v8 = vmul.f32 1.442695, %v527_v7 }
 0x20c   : > { %v523_v9 = vpop.permute.xlu1 %522 }
 0x20d   : > { %1059 = vpow2.f32 %v533_v8  ;;  %v528_v10 = vsub.f32 %v1211_v30, %v523_v9 }
 0x20f   : > { %v1056_v11 = vpop.eup %1055  ;;  %v535_v12 = vmul.f32 1.442695, %v528_v10 }
 0x210   : > { %v545_v13 = vsel %vm476_vm3, %v1056_v11, 0.0  ;;  %v594_v14 = vpack.c.bf16 %v1056_v11, %v1056_v11  ;;  %v569_v11 = vld [vmem:[#allocation4 + $0x18] sm:$0xff] }
 0x211   : > { %1061 = vpow2.f32 %v535_v12  ;;  %546 = vadd.xlane.f32.xlu1 %v545_v13 }
 0x212   : > { %1004 = vmatmul.mubr.msk.bf16.vlgmr.msra.gmra.mrb[8].mxu0 %vm476_vm3, %v594_v14  ;;  %1063 = vpow2.f32 %v499_v22 }
 0x213   : > { %v1058_v15 = vpop.eup %1057  ;;  %1014 = vmatpush3.bf16.msra.mxu0 %v695_v60  ;;  %1015 = vmatprep.mubr.msk.bf16.mxu0 %vm1104_vm1, %v1103_v0 }
 0x214   : > { %v548_v16 = vsel %vm476_vm3, %v1058_v15, 0.0  ;;  %v595_v17 = vpack.c.bf16 %v1058_v15, %v1058_v15 }
 0x215   : > { %549 = vadd.xlane.f32.xlu0 %v548_v16 }
 0x216   : > { %1010 = vmatmul.mubr.msk.bf16.vlgmr.msra.gmra.mrb[8].mxu1 %vm476_vm3, %v595_v17 }
 0x217   : > { %v1060_v18 = vpop.eup %1059  ;;  %1020 = vmatpush3.bf16.msra.mxu1 %v741_v62  ;;  %1021 = vmatprep.mubr.msk.bf16.mxu1 %vm1104_vm1, %v1103_v0  ;;  %v497_v0 = vmul.f32 1.442695, %v493_v43 }
 0x218   : > { %v551_v19 = vsel %vm476_vm3, %v1060_v18, 0.0  ;;  %v596_v20 = vpack.c.bf16 %v1060_v18, %v1060_v18 }
 0x219   : > { %552 = vadd.xlane.f32.xlu1 %v551_v19  ;;  %1065 = vpow2.f32 %v497_v0 }
 0x21a   : > { %1016 = vmatmul.mubr.msk.bf16.vlgmr.msra.gmra.mrb[12].mxu0 %vm476_vm3, %v596_v20  ;;  %1067 = vpow2.f32 %v501_v25 }
 0x21b   : > { %v1062_v21 = vpop.eup %1061  ;;  %1069 = vpow2.f32 %v503_v26 }
 0x21c   : > { %v554_v23 = vsel %vm476_vm3, %v1062_v21, 0.0  ;;  %v597_v24 = vpack.c.bf16 %v1062_v21, %v1062_v21  ;;  %v1064_v27 = vpop.eup %1063 }
 0x21d   : > { %555 = vadd.xlane.f32.xlu1 %v554_v23  ;;  %v542_v36 = vmul.f32 %v1064_v27, %v538_v34 }
 0x21e   : > { %1022 = vmatmul.mubr.msk.bf16.vlgmr.msra.gmra.mrb[12].mxu1 %vm476_vm3, %v597_v24 }
 0x223   : > { %v1066_v28 = vpop.eup %1065 }
 0x224   : > { %v1068_v29 = vpop.eup %1067  ;;  %v541_v32 = vmul.f32 %v1066_v28, %v537_v31 }
 0x225   : > { %v1070_v30 = vpop.eup %1069  ;;  %v543_v40 = vmul.f32 %v1068_v29, %v539_v38 }
 0x226   : > { %v544_v45 = vmul.f32 %v1070_v30, %v540_v42 }
 0x22b   : > { %577 = vperm.xlu0 %1053, %v1064_v27  }
 0x22e   : > { %572 = vperm.xlu1 %1054, %v1066_v28  }
 0x232   : > { %582 = vperm.xlu1 %1054, %v1068_v29  }
 0x236   : > { %587 = vperm.xlu1 %1054, %v1070_v30  }
 0x29e   : > { %v547_v33 = vpop.xlane.xlu1 %546 }
 0x29f   : > { %v557_v35 = vadd.f32 %v547_v33, %v541_v32 }
 0x2a1   : > { %562 = vst.msk [vmem:[#allocation3] sm:$0xff] %vm257_vm2, %v557_v35 }
 0x2a2   : > { %v550_v37 = vpop.xlane.xlu0 %549 }
 0x2a3   : > { %v558_v39 = vadd.f32 %v550_v37, %v542_v36 }
 0x2a5   : > { %563 = vst.msk [vmem:[#allocation3 + $0x8] sm:$0xff] %vm257_vm2, %v558_v39 }
 0x2a6   : > { %v553_v41 = vpop.xlane.xlu1 %552 }
 0x2a7   : > { %v559_v43 = vadd.f32 %v553_v41, %v543_v40 }
 0x2a8   : > { %v798_v44 = vld [vmem:[#allocation3] sm:$0xff] }
 0x2a9   : > { %564 = vst.msk [vmem:[#allocation3 + $0x10] sm:$0xff] %vm257_vm2, %v559_v43  ;;  %1071 = vrcp.f32 %v798_v44 }
 0x2aa   : > { %v556_v46 = vpop.xlane.xlu1 %555  ;;  %v578_v59 = vpop.permute.xlu0 %577 }
 0x2ab   : > { %v560_v47 = vadd.f32 %v556_v46, %v544_v45  ;;  %v591_v2 = vmul.f32 %v578_v59, %v567_v58 }
 0x2ac   : > { %v799_v48 = vld [vmem:[#allocation3 + $0x8] sm:$0xff] }
 0x2ad   : > { %565 = vst.msk [vmem:[#allocation3 + $0x18] sm:$0xff] %vm257_vm2, %v560_v47  ;;  %1073 = vrcp.f32 %v799_v48 }
 0x2ae   : > { %v573_v56 = vpop.permute.xlu1 %572 }
 0x2af   : > { %v590_v57 = vmul.f32 %v573_v56, %v566_v55 }
 0x2b0   : > { %v800_v49 = vld [vmem:[#allocation3 + $0x10] sm:$0xff] }
 0x2b1   : > { %1075 = vrcp.f32 %v800_v49 }
 0x2b2   : > { %v583_v63 = vpop.permute.xlu1 %582 }
 0x2b3   : > { %v1072_v50 = vpop.eup %1071  ;;  %v592_v9 = vmul.f32 %v583_v63, %v568_v4 }
 0x2b4   : > { %812 = vperm.xlu1 %1054, %v1072_v50   ;;  %v801_v51 = vld [vmem:[#allocation3 + $0x18] sm:$0xff] }
 0x2b5   : > { %1077 = vrcp.f32 %v801_v51 }
 0x2b6   : > { %v588_v12 = vpop.permute.xlu1 %587 }
 0x2b7   : > { %v1074_v52 = vpop.eup %1073  ;;  %v593_v17 = vmul.f32 %v588_v12, %v569_v11 }
 0x2b8   : > { %817 = vperm.xlu0 %1053, %v1074_v52  }
 0x2bb   : > { %v1076_v53 = vpop.eup %1075 }
 0x2bc   : > { %822 = vperm.xlu1 %1054, %v1076_v53  }
 0x2bf   : > { %v1078_v54 = vpop.eup %1077 }
 0x2c0   : > { %827 = vperm.xlu0 %1053, %v1078_v54  }
 0x2e5   : > { %v639_v60 = vpop.f32.mrb[8].mxu0 }
 0x2e6   : > { %v783_v61 = vadd.f32 %v639_v60, %v590_v57  ;;  %v1005_v62 = vpop.f32.mrb[9].mxu0 }
 0x2e7   : > { %v642_v1 = vpop.f32.mrb[10].mxu0 }
 0x2e8   : > { %787 = vst.msk [vmem:[#allocation4] sm:$0xff] %vm266_vm0, %v783_v61  ;;  %v1006_v3 = vpop.f32.mrb[11].mxu0 }
 0x2e9   : > { %v685_v5 = vpop.f32.mrb[8].mxu1 }
 0x2ea   : > { %v784_v6 = vadd.f32 %v685_v5, %v591_v2  ;;  %v1011_v7 = vpop.f32.mrb[9].mxu1 }
 0x2eb   : > { %v688_v8 = vpop.f32.mrb[10].mxu1 }
 0x2ec   : > { %788 = vst.msk [vmem:[#allocation4 + $0x8] sm:$0xff] %vm266_vm0, %v784_v6  ;;  %v1012_v10 = vpop.f32.mrb[11].mxu1 }
 0x2ed   : > { %v731_v13 = vpop.f32.mrb[12].mxu0 }
 0x2ee   : > { %v785_v14 = vadd.f32 %v731_v13, %v592_v9  ;;  %v1017_v15 = vpop.f32.mrb[13].mxu0 }
 0x2ef   : > { %v734_v16 = vpop.f32.mrb[14].mxu0  ;;  %v806_v0 = vld [vmem:[#allocation4] sm:$0xff] }
 0x2f0   : > { %789 = vst.msk [vmem:[#allocation4 + $0x10] sm:$0xff] %vm266_vm0, %v785_v14  ;;  %v1018_v18 = vpop.f32.mrb[15].mxu0 }
 0x2f1   : > { %v777_v19 = vpop.f32.mrb[12].mxu1 }
 0x2f2   : > { %v786_v20 = vadd.f32 %v777_v19, %v593_v17  ;;  %v1023_v21 = vpop.f32.mrb[13].mxu1 }
 0x2f3   : > { %v780_v22 = vpop.f32.mrb[14].mxu1  ;;  %v807_v27 = vld [vmem:[#allocation4 + $0x8] sm:$0xff] }
 0x2f4   : > { %790 = vst.msk [vmem:[#allocation4 + $0x18] sm:$0xff] %vm266_vm0, %v786_v20  ;;  %v1024_v23 = vpop.f32.mrb[15].mxu1 }
 0x2f7   : > { %v808_v32 = vld [vmem:[#allocation4 + $0x10] sm:$0xff] }
 0x2fb   : > { %v809_v36 = vld [vmem:[#allocation4 + $0x18] sm:$0xff] }
 0x333   : > { %v813_v24 = vpop.permute.xlu1 %812 }
 0x334   : > { %v830_v25 = vmul.f32 %v813_v24, %v806_v0 }
 0x336   : > { %v834_v26 = vpack.c.bf16 %v830_v25, %v830_v25 }
 0x337   : > { %v818_v28 = vpop.permute.xlu0 %817 }
 0x338   : > { %839 = vst.msk [vmem:[%s250_s29] sm:$0xf] %vm838_vm5, %v834_v26  ;;  %v831_v29 = vmul.f32 %v818_v28, %v807_v27 }
 0x33a   : > { %v835_v30 = vpack.c.bf16 %v831_v29, %v831_v29 }
 0x33b   : > { %v823_v31 = vpop.permute.xlu1 %822 }
 0x33c   : > { %840 = vst.msk [vmem:[%s250_s29 + $0x4] sm:$0xf] %vm838_vm5, %v835_v30  ;;  %v832_v33 = vmul.f32 %v823_v31, %v808_v32 }
 0x33e   : > { %v836_v34 = vpack.c.bf16 %v832_v33, %v832_v33 }
 0x33f   : > { %v828_v35 = vpop.permute.xlu0 %827 }
 0x340   : > { %841 = vst.msk [vmem:[%s250_s29 + $0x8] sm:$0xf] %vm838_vm5, %v836_v34  ;;  %v833_v37 = vmul.f32 %v828_v35, %v809_v36 }
 0x342   : > { %v837_v38 = vpack.c.bf16 %v833_v37, %v833_v37 }
 0x344   : > { %842 = vst.msk [vmem:[%s250_s29 + $0xc] sm:$0xf] %vm838_vm5, %v837_v38 }
 0x345 PF: > { %s13_s14 = sadd.s32 1, %s1101_s14   ;;  %s1317_s12 = smov %s1097_s13 }
 0x346   : > { %p10_p5 = scmp.ge.s32.totalorder %s13_s14, 4   ;;  %s1318_s13 = smov %s1320_s15 }
 0x348   :  { %12 = sbr.rel (!%p10_p5) target bundleno = 2 (0x2), region = 76 }

// kernel: transformer_forward.35
= control target key start
LH: loop header
LB: loop body
LE: loop exit
PB: predicated region body
PF: predicated region fallthrough
CT: control target
= control target key end

     0   :  { %s475_s1 = inlined_call_operand.vmem [shape: bf16[256,128], index: 1, kind: input, shape index: {}]   ;;  %s476_s0 = inlined_call_operand.vmem [shape: bf16[16,256], index: 0, kind: input, shape index: {}]   ;;  %s477_s3 = inlined_call_operand.vmem [shape: bf16[16,128], index: 3, kind: input, shape index: {}]   ;;  %s478_s2 = inlined_call_operand.vmem [shape: f32[1,128], index: 2, kind: input, shape index: {}]   ;;  %s479_s4 = inlined_call_operand.vmem [shape: f32[1,128], index: 4, kind: input, shape index: {}]   ;;  %s480_s5 = inlined_call_operand.vmem [shape: f32[1,128], index: 5, kind: input, shape index: {}]   ;;  %s481_s6 = inlined_call_operand.vmem [shape: bf16[16,128], index: 6, kind: output, shape index: {}]  }
   0x1   :  { %v348_v0 = vld [vmem:[%s475_s1 + $0x40] sm:$0xff]   ;;  %v350_v2 = vld [vmem:[%s475_s1 + $0x48] sm:$0xff]   ;;  %v352_v4 = vld [vmem:[%s475_s1 + $0x50] sm:$0xff]  }
   0x2   :  { %v349_v1 = vld [vmem:[%s475_s1] sm:$0xff]   ;;  %326 = vmatprep.subr.bf16.mxu0 %v348_v0  ;;  %v351_v3 = vld [vmem:[%s475_s1 + $0x8] sm:$0xff]   ;;  %v353_v5 = vld [vmem:[%s475_s1 + $0x10] sm:$0xff]  }
   0x3   :  { %327 = vmatpush3.bf16.msra.mxu0 %v349_v1  ;;  %v354_v6 = vld [vmem:[%s475_s1 + $0x58] sm:$0xff]   ;;  %v356_v8 = vld [vmem:[%s475_s1 + $0x60] sm:$0xff]   ;;  %v358_v10 = vld [vmem:[%s475_s1 + $0x68] sm:$0xff]  }
   0x4   :  { %328 = vmatprep.subr.bf16.mxu0 %v350_v2  ;;  %v355_v7 = vld [vmem:[%s475_s1 + $0x18] sm:$0xff]   ;;  %v357_v9 = vld [vmem:[%s475_s1 + $0x20] sm:$0xff]   ;;  %v359_v12 = vld [vmem:[%s475_s1 + $0x28] sm:$0xff]  }
   0x5   :  { %v366_v11 = vld [vmem:[%s476_s0 + $0x4] ss:$8 sps:$4 sm:$0xff]   ;;  %v360_v13 = vld [vmem:[%s475_s1 + $0x70] sm:$0xff]   ;;  %v362_v15 = vld [vmem:[%s475_s1 + $0x78] sm:$0xff]  }
   0x6   :  { %204 = vmatprep.mubr.bf16.mxu0 %v366_v11  ;;  %v361_v14 = vld [vmem:[%s475_s1 + $0x30] sm:$0xff]   ;;  %v363_v16 = vld [vmem:[%s475_s1 + $0x38] sm:$0xff]   ;;  %v364_v17 = vld [vmem:[%s476_s0] ss:$8 sps:$4 sm:$0xff]  }
   0x7   :  { %329 = vmatpush3.bf16.msra.mxu0 %v351_v3  ;;  %v318_v18 = vld [vmem:[%s477_s3] sm:$0xff]  }
   0x8   :  { %330 = vmatprep.subr.bf16.mxu0 %v352_v4  ;;  %v310_v21 = vld [vmem:[%s478_s2] ss:$0 sm:$0xff]  ;;  %v319_v24 = vunpack.c.l.bf16 %v318_v18  ;;  %v320_v30 = vunpack.c.h.bf16 %v318_v18 }
   0x9   :  { %v311_v48 = vld [vmem:[%s479_s4] ss:$0 sm:$0xff] }
   0xa   :  { %v312_v52 = vld [vmem:[%s480_s5] ss:$0 sm:$0xff] }
   0xb   :  { %331 = vmatpush3.bf16.msra.mxu0 %v353_v5 }
   0xc   :  { %332 = vmatprep.subr.bf16.mxu0 %v354_v6 }
   0xf   :  { %333 = vmatpush3.bf16.msra.mxu0 %v355_v7 }
  0x10   :  { %334 = vmatprep.subr.bf16.mxu0 %v356_v8 }
  0x13   :  { %335 = vmatpush3.bf16.msra.mxu0 %v357_v9 }
  0x14   :  { %336 = vmatprep.subr.bf16.mxu0 %v358_v10 }
  0x17   :  { %337 = vmatpush3.bf16.msra.mxu0 %v359_v12 }
  0x18   :  { %338 = vmatprep.subr.bf16.mxu0 %v360_v13 }
  0x1b   :  { %339 = vmatpush3.bf16.msra.mxu0 %v361_v14 }
  0x1c   :  { %340 = vmatprep.subr.bf16.mxu0 %v362_v15 }
  0x1f   :  { %341 = vmatpush3.bf16.msra.mxu0 %v363_v16 }
  0x22   :  { %205 = vmatmul.mubr.bf16.vlgmr.msra.gmra.mrb[0].mxu0 %v364_v17 }
  0xf5   :  { %v342_v19 = vpop.f32.mrb[0].mxu0 }
  0xf6   :  { %v343_v20 = vpop.f32.mrb[1].mxu0 }
  0xf7   :  { %v344_v22 = vadd.f32 %v343_v20, %v342_v19  ;;  %v345_v23 = vpop.f32.mrb[2].mxu0 }
  0xf8   :  { %v346_v25 = vpop.f32.mrb[3].mxu0 }
  0xf9   :  { %v229_v26 = vadd.f32 %v344_v22, %v310_v21  ;;  %v347_v27 = vadd.f32 %v346_v25, %v345_v23 }
  0xfb   :  { %v230_v28 = vadd.f32 %v347_v27, %v310_v21  ;;  %v235_v29 = vadd.f32 %v319_v24, %v229_v26 }
  0xfd   :  { %237 = vadd.xlane.f32.xlu0 %v235_v29  ;;  %v236_v31 = vadd.f32 %v320_v30, %v230_v28 }
 0x101   :  { %239 = vadd.xlane.f32.xlu0 %v236_v31 }
 0x18a   :  { %v238_v32 = vpop.xlane.xlu0 %237 }
 0x18b   :  { %v242_v33 = vmul.f32 0.0078125, %v238_v32 }
 0x18d   :  { %v244_v34 = vsub.f32 %v235_v29, %v242_v33 }
 0x18e   :  { %v240_v35 = vpop.xlane.xlu0 %239 }
 0x18f   :  { %v243_v36 = vmul.f32 0.0078125, %v240_v35  ;;  %v246_v37 = vmul.f32 %v244_v34, %v244_v34 }
 0x191   :  { %v245_v38 = vsub.f32 %v236_v31, %v243_v36  ;;  %248 = vadd.xlane.f32.xlu1 %v246_v37 }
 0x193   :  { %v247_v39 = vmul.f32 %v245_v38, %v245_v38 }
 0x195   :  { %250 = vadd.xlane.f32.xlu1 %v247_v39 }
 0x21e   :  { %v249_v40 = vpop.xlane.xlu1 %248 }
 0x21f   :  { %v252_v41 = vmul.f32 0.0078125, %v249_v40 }
 0x221   :  { %v254_v42 = vadd.f32 1e-05, %v252_v41 }
 0x222   :  { %v251_v43 = vpop.xlane.xlu1 %250 }
 0x223   :  { %367 = vrsqrt.f32 %v254_v42  ;;  %v253_v44 = vmul.f32 0.0078125, %v251_v43 }
 0x225   :  { %v255_v45 = vadd.f32 1e-05, %v253_v44 }
 0x227   :  { %369 = vrsqrt.f32 %v255_v45 }
 0x22d   :  { %v368_v46 = vpop.eup %367 }
 0x22e   :  { %v258_v47 = vmul.f32 %v368_v46, %v244_v34 }
 0x230   :  { %v267_v50 = vmul.f32 %v311_v48, %v258_v47 }
 0x231   :  { %v370_v49 = vpop.eup %369 }
 0x232   :  { %v259_v51 = vmul.f32 %v370_v49, %v245_v38  ;;  %v276_v54 = vadd.f32 %v312_v52, %v267_v50 }
 0x234   :  { %v268_v53 = vmul.f32 %v311_v48, %v259_v51 }
 0x236   :  { %v277_v55 = vadd.f32 %v312_v52, %v268_v53 }
 0x238   :  { %v324_v56 = vpack.c.bf16 %v277_v55, %v276_v54 }
 0x23a   :  { %325 = vst [vmem:[%s481_s6] sm:$0xff] %v324_v56  }

// kernel: transformer_forward.41
= control target key start
LH: loop header
LB: loop body
LE: loop exit
PB: predicated region body
PF: predicated region fallthrough
CT: control target
= control target key end

     0   :  { %s124_s0 = inlined_call_operand.vmem [shape: bf16[16,128], index: 0, kind: input, shape index: {}]   ;;  %s125_s1 = inlined_call_operand.vmem [shape: f32[1,128], index: 1, kind: input, shape index: {}]   ;;  %s126_s2 = inlined_call_operand.vmem [shape: f32[1,128], index: 2, kind: input, shape index: {}]   ;;  %s127_s3 = inlined_call_operand.vmem [shape: bf16[16,128], index: 3, kind: output, shape index: {}]  }
   0x1   :  { %v80_v0 = vld [vmem:[%s124_s0] sm:$0xff]  }
   0x2   :  { %v81_v1 = vunpack.c.l.bf16 %v80_v0  ;;  %v82_v2 = vunpack.c.h.bf16 %v80_v0  ;;  %v73_v19 = vld [vmem:[%s125_s1] ss:$0 sm:$0xff] }
   0x3   :  { %v74_v23 = vld [vmem:[%s126_s2] ss:$0 sm:$0xff] }
   0x4   :  { %18 = vadd.xlane.f32.xlu0 %v81_v1 }
   0x8   :  { %20 = vadd.xlane.f32.xlu0 %v82_v2 }
  0x91   :  { %v19_v3 = vpop.xlane.xlu0 %18 }
  0x92   :  { %v23_v4 = vmul.f32 0.0078125, %v19_v3 }
  0x94   :  { %v25_v5 = vsub.f32 %v81_v1, %v23_v4 }
  0x95   :  { %v21_v6 = vpop.xlane.xlu0 %20 }
  0x96   :  { %v24_v7 = vmul.f32 0.0078125, %v21_v6  ;;  %v27_v8 = vmul.f32 %v25_v5, %v25_v5 }
  0x98   :  { %v26_v9 = vsub.f32 %v82_v2, %v24_v7  ;;  %29 = vadd.xlane.f32.xlu1 %v27_v8 }
  0x9a   :  { %v28_v10 = vmul.f32 %v26_v9, %v26_v9 }
  0x9c   :  { %31 = vadd.xlane.f32.xlu1 %v28_v10 }
 0x125   :  { %v30_v11 = vpop.xlane.xlu1 %29 }
 0x126   :  { %v33_v12 = vmul.f32 0.0078125, %v30_v11 }
 0x128   :  { %v35_v13 = vadd.f32 1e-05, %v33_v12 }
 0x129   :  { %v32_v14 = vpop.xlane.xlu1 %31 }
 0x12a   :  { %88 = vrsqrt.f32 %v35_v13  ;;  %v34_v15 = vmul.f32 0.0078125, %v32_v14 }
 0x12c   :  { %v36_v16 = vadd.f32 1e-05, %v34_v15 }
 0x12e   :  { %90 = vrsqrt.f32 %v36_v16 }
 0x134   :  { %v89_v17 = vpop.eup %88 }
 0x135   :  { %v39_v18 = vmul.f32 %v89_v17, %v25_v5 }
 0x137   :  { %v48_v21 = vmul.f32 %v73_v19, %v39_v18 }
 0x138   :  { %v91_v20 = vpop.eup %90 }
 0x139   :  { %v40_v22 = vmul.f32 %v91_v20, %v26_v9  ;;  %v57_v25 = vadd.f32 %v74_v23, %v48_v21 }
 0x13b   :  { %v49_v24 = vmul.f32 %v73_v19, %v40_v22 }
 0x13d   :  { %v58_v26 = vadd.f32 %v74_v23, %v49_v24 }
 0x13f   :  { %v86_v27 = vpack.c.bf16 %v58_v26, %v57_v25 }
 0x141   :  { %87 = vst [vmem:[%s127_s3] sm:$0xff] %v86_v27  }

// kernel: transformer_forward.61
= control target key start
LH: loop header
LB: loop body
LE: loop exit
PB: predicated region body
PF: predicated region fallthrough
CT: control target
= control target key end

     0   :  { %v250_v1 = vmov 0.0   ;;  %vm251_vm0 = vmmov 0   ;;  %s317_s0 = inlined_call_operand.vmem [shape: bf16[16,128], index: 0, kind: input, shape index: {}]   ;;  %s318_s1 = inlined_call_operand.vmem [shape: bf16[128,128], index: 1, kind: input, shape index: {}]   ;;  %s319_s2 = inlined_call_operand.vmem [shape: f32[1,128], index: 2, kind: input, shape index: {}]   ;;  %s320_s3 = inlined_call_operand.hbm [shape: f32[16,128], index: 3, kind: output, shape index: {}]  }
   0x1   :  { %v217_v0 = vld [vmem:[%s318_s1] sm:$0xff]   ;;  %192 = vmatprep.subr.bf16.mxu0 %v250_v1  ;;  %v218_v2 = vld [vmem:[%s318_s1 + $0x8] sm:$0xff]   ;;  %208 = vmatprep.mubr.msk.bf16.mxu0 %vm251_vm0, %v250_v1  ;;  %v219_v3 = vld [vmem:[%s318_s1 + $0x10] sm:$0xff]  }
   0x2   :  { %193 = vmatpush3.bf16.msra.mxu0 %v217_v0 }
   0x3   :  { %194 = vmatprep.subr.bf16.mxu0 %v250_v1 }
   0x6   :  { %195 = vmatpush3.bf16.msra.mxu0 %v218_v2 }
   0x7   :  { %196 = vmatprep.subr.bf16.mxu0 %v250_v1 }
   0x8   :  { %8 = vsyncpa [#allocation4], 0  ;;  %v220_v4 = vld [vmem:[%s318_s1 + $0x18] sm:$0xff]   ;;  %v221_v5 = vld [vmem:[%s318_s1 + $0x20] sm:$0xff]   ;;  %s252_s5 = smov [#allocation3]  }
   0x9   :  { %v222_v6 = vld [vmem:[%s318_s1 + $0x28] sm:$0xff]   ;;  %v223_v7 = vld [vmem:[%s318_s1 + $0x30] sm:$0xff]   ;;  %v224_v8 = vld [vmem:[%s318_s1 + $0x38] sm:$0xff]   ;;  %s162_s6 = sshll.u32 %s252_s5, 4  ;;  %s163_s6 = int_to_ptr.vmem [resolvable:$true] %s162_s6 }
   0xa   :  { %197 = vmatpush3.bf16.msra.mxu0 %v219_v3  ;;  %v225_v9 = vld [vmem:[%s317_s0] sm:$0xff]   ;;  %s226_s1 = scalar_lea.vmem %s163_s6, 256  ;;  %p231_p1 = scmp.lt.s32.totalorder %s163_s6, %s163_s6 }
   0xb   :  { %198 = vmatprep.subr.bf16.mxu0 %v250_v1  ;;  %v182_v10 = vld [vmem:[%s319_s2] ss:$0 sm:$0xff]  ;;  %p227_p0 = scmp.ne.s32.totalorder %s163_s6, %s226_s1  ;;  %p232_p2 = scmp.lt.s32.totalorder %s226_s1, %s226_s1 }
   0xd   :  { %p233_p3 = por %p232_p2, %p231_p1 }
   0xe   :  { %199 = vmatpush3.bf16.msra.mxu0 %v220_v4 }
   0xf   :  { %200 = vmatprep.subr.bf16.mxu0 %v250_v1  ;;  %p234_p4 = pnand %p233_p3, %p227_p0 }
  0x12   :  { %201 = vmatpush3.bf16.msra.mxu0 %v221_v5 }
  0x13   :  { %202 = vmatprep.subr.bf16.mxu0 %v250_v1 }
  0x16   :  { %203 = vmatpush3.bf16.msra.mxu0 %v222_v6 }
  0x17   :  { %204 = vmatprep.subr.bf16.mxu0 %v250_v1 }
  0x1a   :  { %205 = vmatpush3.bf16.msra.mxu0 %v223_v7 }
  0x1b   :  { %206 = vmatprep.subr.bf16.mxu0 %v250_v1 }
  0x1e   :  { %207 = vmatpush3.bf16.msra.mxu0 %v224_v8 }
  0x21   :  { %209 = vmatmul.mubr.bf16.vlgmr.msra.gmra.mrb[0].mxu0 %v225_v9 }
  0xf4   :  { %v130_v11 = vpop.f32.mrb[0].mxu0 }
  0xf5   :  { %v153_v12 = vadd.f32 %v182_v10, %v130_v11  ;;  %v210_v13 = vpop.f32.mrb[1].mxu0 }
  0xf6   :  { %v133_v14 = vpop.f32.mrb[2].mxu0 }
  0xf7   :  { %155 = vst [vmem:[#allocation3] sm:$0xff] %v153_v12  ;;  %v154_v15 = vadd.f32 %v182_v10, %v133_v14  ;;  %v211_v16 = vpop.f32.mrb[3].mxu0 }
  0xf9   :  { %156 = vst [vmem:[#allocation3 + $0x8] sm:$0xff] %v154_v15 }
  0xfa   :  { %237 = shalt.err (!%p234_p4)
}
  0xfb   :  { %s238_s7 = scalar_lea.hbm %s320_s3, 256 }
  0xfc   :  { %p239_p5 = scmp.ne.s32.totalorder %s320_s3, %s238_s7  ;;  %p242_p6 = scmp.lt.u32.totalorder %s238_s7, %s320_s3 }
  0xfe   :  { %p244_p7 = pnand %p242_p6, %p239_p5 }
 0x100   :  { %247 = shalt.err (!%p244_p7)
}
 0x101   :  { %s253_s12 = smov 128   ;;  %s254_s13 = smov 8  }
 0x102   :  { %168 = dma.vmem_to_hbm [thread:$0]  %s163_s6, 256, %s320_s3, [#allocation4], %s253_s12, %s253_s12, %s254_s13  }
 0x103   :  { %248 = dma.done.wait [#allocation4], 256  }
 0x104   :  { %249 = vsyncadd [#allocation4], 4294967040 }
 0x105   :  { %172 = vsyncpa [#allocation4], 1 }

// kernel: transformer_forward.46
= control target key start
LH: loop header
LB: loop body
LE: loop exit
PB: predicated region body
PF: predicated region fallthrough
CT: control target
= control target key end

     0   :  { %v270_v1 = vmov 0   ;;  %v191_v18 = vlaneseq  ;;  %s351_s1 = inlined_call_operand.vmem [shape: bf16[128,256], index: 1, kind: input, shape index: {}]   ;;  %s352_s0 = inlined_call_operand.vmem [shape: bf16[16,128], index: 0, kind: input, shape index: {}]   ;;  %s353_s2 = inlined_call_operand.vmem [shape: f32[1,256], index: 2, kind: input, shape index: {}]   ;;  %s354_s3 = inlined_call_operand.vmem [shape: bf16[16,256], index: 3, kind: output, shape index: {}]  }
   0x1   :  { %v245_v0 = vld [vmem:[%s351_s1 + $0x4] ss:$8 sps:$4 sm:$0xff]   ;;  %163 = vmatprep.mubr.bf16.mxu0 %v270_v1  ;;  %v247_v2 = vld [vmem:[%s351_s1] ss:$8 sps:$4 sm:$0xff]   ;;  %v248_v3 = vld [vmem:[%s351_s1 + $0x14] ss:$8 sps:$4 sm:$0xff]  }
   0x2   :  { %131 = vmatprep.subr.bf16.mxu0 %v245_v0  ;;  %v250_v4 = vld [vmem:[%s351_s1 + $0x10] ss:$8 sps:$4 sm:$0xff]   ;;  %v251_v5 = vld [vmem:[%s351_s1 + $0x24] ss:$8 sps:$4 sm:$0xff]   ;;  %v253_v6 = vld [vmem:[%s351_s1 + $0x20] ss:$8 sps:$4 sm:$0xff]  }
   0x3   :  { %132 = vmatpush1.bf16.msra.mxu0 %v247_v2  ;;  %v254_v7 = vld [vmem:[%s351_s1 + $0x34] ss:$8 sps:$4 sm:$0xff]   ;;  %v256_v8 = vld [vmem:[%s351_s1 + $0x30] ss:$8 sps:$4 sm:$0xff]   ;;  %v257_v9 = vld [vmem:[%s351_s1 + $0x44] ss:$8 sps:$4 sm:$0xff]  }
   0x4   :  { %133 = vmatprep.subr.bf16.mxu0 %v248_v3  ;;  %v259_v10 = vld [vmem:[%s351_s1 + $0x40] ss:$8 sps:$4 sm:$0xff]   ;;  %v260_v11 = vld [vmem:[%s351_s1 + $0x54] ss:$8 sps:$4 sm:$0xff]   ;;  %v262_v12 = vld [vmem:[%s351_s1 + $0x50] ss:$8 sps:$4 sm:$0xff]  }
   0x5   :  { %v263_v13 = vld [vmem:[%s351_s1 + $0x64] ss:$8 sps:$4 sm:$0xff]   ;;  %v265_v14 = vld [vmem:[%s351_s1 + $0x60] ss:$8 sps:$4 sm:$0xff]   ;;  %v266_v15 = vld [vmem:[%s351_s1 + $0x74] ss:$8 sps:$4 sm:$0xff]  }
   0x6   :  { %v268_v16 = vld [vmem:[%s351_s1 + $0x70] ss:$8 sps:$4 sm:$0xff]   ;;  %v269_v17 = vld [vmem:[%s352_s0] sm:$0xff]   ;;  %v192_v19 = vshrl.u32 %v191_v18, 7 }
   0x7   :  { %134 = vmatpush1.bf16.msra.mxu0 %v250_v4  ;;  %v189_v21 = vld [vmem:[%s353_s2] sm:$0x3] }
   0x8   :  { %135 = vmatprep.subr.bf16.mxu0 %v251_v5  ;;  %v193_v20 = vsub.s32 0, %v192_v19  ;;  %v197_v22 = vsub.s32 1, %v192_v19 }
   0xa   :  { %v194_v23 = vrot.slane %v189_v21, %v193_v20  ;;  %v198_v24 = vrot.slane %v189_v21, %v197_v22 }
   0xb   :  { %136 = vmatpush1.bf16.msra.mxu0 %v253_v6 }
   0xc   :  { %137 = vmatprep.subr.bf16.mxu0 %v254_v7 }
   0xf   :  { %138 = vmatpush1.bf16.msra.mxu0 %v256_v8 }
  0x10   :  { %139 = vmatprep.subr.bf16.mxu0 %v257_v9 }
  0x13   :  { %140 = vmatpush1.bf16.msra.mxu0 %v259_v10 }
  0x14   :  { %141 = vmatprep.subr.bf16.mxu0 %v260_v11 }
  0x17   :  { %142 = vmatpush1.bf16.msra.mxu0 %v262_v12 }
  0x18   :  { %143 = vmatprep.subr.bf16.mxu0 %v263_v13 }
  0x1b   :  { %144 = vmatpush1.bf16.msra.mxu0 %v265_v14 }
  0x1c   :  { %145 = vmatprep.subr.bf16.mxu0 %v266_v15 }
  0x1f   :  { %146 = vmatpush1.bf16.msra.mxu0 %v268_v16 }
  0x22   :  { %164 = vmatmul.mubr.bf16.vlgmr.msra.gmra.mrb[0].mxu0 %v269_v17 }
  0xf5   :  { %v165_v25 = vpop.f32.mrb[0].mxu0 }
  0xf6   :  { %v201_v26 = vadd.f32 %v194_v23, %v165_v25  ;;  %v167_v27 = vpop.f32.mrb[1].mxu0 }
  0xf7   :  { %v202_v28 = vadd.f32 %v198_v24, %v167_v27  ;;  %v169_v29 = vpop.f32.mrb[2].mxu0 }
  0xf8   :  { %v203_v30 = vadd.f32 %v194_v23, %v169_v29  ;;  %v171_v31 = vpop.f32.mrb[3].mxu0 }
  0xf9   :  { %v242_v32 = vpack.c.bf16 %v202_v28, %v201_v26  ;;  %v204_v33 = vadd.f32 %v198_v24, %v171_v31 }
  0xfb   :  { %217 = vst [vmem:[%s354_s3] sm:$0xff] %v242_v32  ;;  %v243_v34 = vpack.c.bf16 %v204_v33, %v203_v30 }
  0xfd   :  { %218 = vst [vmem:[%s354_s3 + $0x8] sm:$0xff] %v243_v34 }

</bundles_post_ra>
